<compile_context>
chip_gen: v6e
topology: v6e:2x2x1
jax: 0.10.0
libtpu: 0.0.40
codegen_flags: <defaults>
</compile_context>

<pallas_src>
import jax
import jax.numpy as jnp
from jax.experimental import pallas as pl
from jax.experimental.pallas import tpu as pltpu

# ---- model hyperparameters (PyTorch module defaults) -----------------------
IN_CH = 2
TIMESTEPS = 17
NUM_CLASSES = 3
HIDDEN = 64
LSTM_IN = 128
BN_EPS = 1e-5

K1 = 8                       # padded im2col depth for conv1 (3*IN_CH=6 -> 8)
T1 = (TIMESTEPS // 2) * 2    # 16 conv1 outputs actually consumed by MaxPool


def _round_up(n, m):
    return ((n + m - 1) // m) * m


# ---- Pallas kernel: one batch block per grid step ---------------------------
def cnn_lstm_kernel(x_ref,
                    w1_ref, b1_ref, sh1_ref,
                    w2_ref, b2_ref, sh2_ref,
                    w3_ref, b3_ref, sh3_ref,
                    wih_ref, whh_ref, bl_ref,
                    wf1_ref, bf1_ref, wf2_ref, bf2_ref,
                    out_ref, st2, st3):
    # x_ref : (16*8, bblk) f32  -- pre-im2col'd conv1 windows, 8 rows each
    # st2   : (32*10, bblk) bf16 staging scratch (conv2 input, zero halos)
    # st3   : (64*6,  bblk) bf16 staging scratch (conv3 input, zero halos)
    f32 = jnp.float32
    bf16 = jnp.bfloat16
    bblk = x_ref.shape[1]
    H = HIDDEN

    # --- Conv1d(2->32,k3,p1) + ReLU + BN + MaxPool(2), fused ----------------
    # BN scale is folded into w1/b1; BN shift is added after the pool max.
    w1 = w1_ref[...]                                # (32, 8)  f32
    b1 = b1_ref[...]                                # (32, 1)
    sh1 = sh1_ref[...]                              # (32, 1)
    # zero the staging-scratch halo rows (Conv1d time padding = 1)
    st2[0:32, :] = jnp.zeros((32, bblk), bf16)
    st2[288:320, :] = jnp.zeros((32, bblk), bf16)
    for i in range(T1 // 2):                        # 8 pooled conv1 timesteps
        y0 = jnp.maximum(jnp.dot(w1, x_ref[pl.ds(16 * i, 8), :],
                                 preferred_element_type=f32) + b1, 0.0)
        y1 = jnp.maximum(jnp.dot(w1, x_ref[pl.ds(16 * i + 8, 8), :],
                                 preferred_element_type=f32) + b1, 0.0)
        st2[pl.ds(32 * (i + 1), 32), :] = (jnp.maximum(y0, y1) + sh1).astype(bf16)

    # --- Conv1d(32->64,k3,p1) + ReLU + BN + MaxPool(2), fused ---------------
    w2 = w2_ref[...]                                # (64, 96) bf16
    b2 = b2_ref[...]
    sh2 = sh2_ref[...]
    st3[0:64, :] = jnp.zeros((64, bblk), bf16)
    st3[320:384, :] = jnp.zeros((64, bblk), bf16)
    for i in range(4):                              # 4 pooled conv2 timesteps
        y0 = jnp.maximum(jnp.dot(w2, st2[pl.ds(64 * i, 96), :],
                                 preferred_element_type=f32) + b2, 0.0)
        y1 = jnp.maximum(jnp.dot(w2, st2[pl.ds(64 * i + 32, 96), :],
                                 preferred_element_type=f32) + b2, 0.0)
        st3[pl.ds(64 * (i + 1), 64), :] = (jnp.maximum(y0, y1) + sh2).astype(bf16)

    # --- Conv1d(64->128,k3,p1) + ReLU + BN + MaxPool(2), fused with the LSTM
    w3 = w3_ref[...]                                # (128, 192) bf16
    b3 = b3_ref[...]
    sh3 = sh3_ref[...]
    wih = wih_ref[...]                              # (256, 128) bf16, gates (i,o,f,g)
    whh = whh_ref[...]                              # (256, 64)  bf16
    bl = bl_ref[...]                                # (256, 1)   f32

    def conv3_pooled(i):
        y0 = jnp.maximum(jnp.dot(w3, st3[pl.ds(128 * i, 192), :],
                                 preferred_element_type=f32) + b3, 0.0)
        y1 = jnp.maximum(jnp.dot(w3, st3[pl.ds(128 * i + 64, 192), :],
                                 preferred_element_type=f32) + b3, 0.0)
        return jnp.maximum(y0, y1) + sh3            # (128, bblk) f32

    # LSTM step 0 specialized for zero initial state: no whh matmul, no f-gate.
    x0 = conv3_pooled(0).astype(bf16)
    g0 = jnp.dot(wih, x0, preferred_element_type=f32) + bl
    io = jax.nn.sigmoid(g0[0:2 * H])                # i, o (contiguous rows)
    c = io[0:H] * jnp.tanh(g0[3 * H:4 * H])
    h = io[H:2 * H] * jnp.tanh(c)

    # LSTM step 1 (full)
    x1 = conv3_pooled(1).astype(bf16)
    g1 = (jnp.dot(wih, x1, preferred_element_type=f32)
          + jnp.dot(whh, h.astype(bf16), preferred_element_type=f32) + bl)
    iof = jax.nn.sigmoid(g1[0:3 * H])               # i, o, f (one fused sigmoid)
    c = iof[2 * H:3 * H] * c + iof[0:H] * jnp.tanh(g1[3 * H:4 * H])
    h = iof[H:2 * H] * jnp.tanh(c)

    # --- FC head: Linear(64,64) -> ReLU -> Dropout(eval=id) -> Linear(64,NC)
    z = jnp.maximum(jnp.dot(wf1_ref[...], h.astype(bf16),
                            preferred_element_type=f32) + bf1_ref[...], 0.0)
    out_ref[...] = (jnp.dot(wf2_ref[...], z.astype(bf16),
                            preferred_element_type=f32) + bf2_ref[...])


# ---- wrapper ----------------------------------------------------------------
def cnn_lstm_forward(x, params, block_b=1024):
    B, T, C = x.shape
    assert T == TIMESTEPS and C == IN_CH
    bf16 = jnp.bfloat16

    # Lane-dense batch block, and >= 2 grid steps whenever B allows so the
    # "parallel" batch axis can shard across v7x's two TensorCores and the
    # next block's input DMA overlaps this block's compute.
    block_b = max(128, _round_up(block_b, 128))
    bblk = min(block_b, _round_up(pl.cdiv(B, 2), 128))
    B_pad = _round_up(B, bblk)

    # ---- host-side layout plumbing (no compute hoisted) --------------------
    # Conv1 im2col: 16 windows x 8 rows (6 data rows (k,cin) + 2 zero rows),
    # with the Conv1d time zero-padding folded in.  8-aligned window starts.
    xf = jnp.pad(x.astype(jnp.float32), ((0, B_pad - B), (0, 0), (0, 0)))
    xp = jnp.pad(xf, ((0, 0), (1, 1), (0, 0)))               # (B_pad, 19, 2)
    idx = jnp.arange(T1)[:, None] + jnp.arange(3)[None, :]   # (16, 3)
    win = xp[:, idx, :]                                      # (B_pad, 16, 3, 2)
    win = jnp.transpose(win, (1, 2, 3, 0)).reshape(T1, 3 * IN_CH, B_pad)
    win = jnp.pad(win, ((0, 0), (0, K1 - 3 * IN_CH), (0, 0)))
    x_im2col = win.reshape(T1 * K1, B_pad)                   # (128, B_pad) f32

    def fold_conv(w, b, scale, shift, k_pad):
        # Fold BN scale into conv weight/bias: relu(z)*s == relu(z*s) for s>0.
        try:
            ok = bool(jnp.all(scale > 0))
        except Exception:   # traced params: fresh BN running stats assumed
            ok = True
        assert ok, "BN-scale fold into conv weights requires per-channel scale > 0"
        kc, cout = w.shape[0] * w.shape[1], w.shape[2]
        wt = w.reshape(kc, cout)                       # rows ordered (k, cin)
        wf = jnp.pad((wt * scale).T, ((0, 0), (0, k_pad - kc)))   # (cout, k_pad)
        return wf, (b * scale).reshape(cout, 1), shift.reshape(cout, 1)

    def reorder_gates(m):   # rows (i, f, g, o) -> (i, o, f, g)
        Hh = HIDDEN
        return jnp.concatenate(
            [m[0:Hh], m[3 * Hh:4 * Hh], m[Hh:2 * Hh], m[2 * Hh:3 * Hh]], axis=0)

    w1, b1, sh1 = fold_conv(params["w1"], params["b1"], params["s1"], params["sh1"], K1)
    w2, b2, sh2 = fold_conv(params["w2"], params["b2"], params["s2"], params["sh2"], 96)
    w3, b3, sh3 = fold_conv(params["w3"], params["b3"], params["s3"], params["sh3"], 192)

    weights = [
        w1, b1, sh1,                                   # conv1 stays f32 (K=8)
        w2.astype(bf16), b2, sh2,
        w3.astype(bf16), b3, sh3,
        reorder_gates(params["wih"].T).astype(bf16),   # (256, 128)
        reorder_gates(params["whh"].T).astype(bf16),   # (256, 64)
        reorder_gates(params["bl"].T),                 # (256, 1) f32
        params["wf1"].T.astype(bf16), params["bf1"].T, # (64,64), (64,1)
        params["wf2"].T.astype(bf16), params["bf2"].T, # (3,64), (3,1)
    ]

    def const_spec(a):
        nd = a.ndim
        return pl.BlockSpec(a.shape, lambda b, _nd=nd: (0,) * _nd)

    in_specs = ([pl.BlockSpec((T1 * K1, bblk), lambda b: (0, b))]
                + [const_spec(w) for w in weights])
    out_spec = pl.BlockSpec((NUM_CLASSES, bblk), lambda b: (0, b))

    out = pl.pallas_call(
        cnn_lstm_kernel,
        out_shape=jax.ShapeDtypeStruct((NUM_CLASSES, B_pad), jnp.float32),
        grid=(B_pad // bblk,),
        in_specs=in_specs,
        out_specs=out_spec,
        scratch_shapes=[pltpu.VMEM((32 * 10, bblk), jnp.bfloat16),   # conv2 input
                        pltpu.VMEM((64 * 6, bblk), jnp.bfloat16)],   # conv3 input
        compiler_params=pltpu.CompilerParams(
            dimension_semantics=("parallel",),
            vmem_limit_bytes=48 * 1024 * 1024),      # safe on v5e/v6e/v7x
    )(x_im2col, *weights)
    return jnp.transpose(out[:, :B])                 # (B, NUM_CLASSES)


# ---- deterministic synthetic parameter init ---------------------------------
def init_params(key):
    ks = jax.random.split(key, 14)

    def u(k, shape, fan_in):
        bound = 1.0 / jnp.sqrt(jnp.float32(fan_in))
        return jax.random.uniform(k, shape, jnp.float32, -bound, bound)

    p = {}
    # Conv weights stored as (k, cin, cout) (torch stores (cout, cin, k)).
    p["w1"] = u(ks[0], (3, IN_CH, 32), IN_CH * 3)
    p["b1"] = u(ks[1], (1, 32), IN_CH * 3)
    p["w2"] = u(ks[2], (3, 32, 64), 32 * 3)
    p["b2"] = u(ks[3], (1, 64), 32 * 3)
    p["w3"] = u(ks[4], (3, 64, 128), 64 * 3)
    p["b3"] = u(ks[5], (1, 128), 64 * 3)
    # BatchNorm eval affine: fresh-module stats (gamma=1, beta=0, mean=0, var=1)
    for name, cch in (("1", 32), ("2", 64), ("3", 128)):
        gamma = jnp.ones((1, cch), jnp.float32)
        beta = jnp.zeros((1, cch), jnp.float32)
        mean = jnp.zeros((1, cch), jnp.float32)
        var = jnp.ones((1, cch), jnp.float32)
        scale = gamma / jnp.sqrt(var + BN_EPS)
        p["s" + name] = scale
        p["sh" + name] = beta - mean * scale
    # LSTM (input 128 -> hidden 64), torch gate order (i, f, g, o)
    p["wih"] = u(ks[6], (LSTM_IN, 4 * HIDDEN), HIDDEN)   # weight_ih_l0.T
    p["whh"] = u(ks[7], (HIDDEN, 4 * HIDDEN), HIDDEN)    # weight_hh_l0.T
    p["bl"] = u(ks[8], (1, 4 * HIDDEN), HIDDEN) + u(ks[9], (1, 4 * HIDDEN), HIDDEN)
    # FC head
    p["wf1"] = u(ks[10], (HIDDEN, HIDDEN), HIDDEN)
    p["bf1"] = u(ks[11], (1, HIDDEN), HIDDEN)
    p["wf2"] = u(ks[12], (HIDDEN, NUM_CLASSES), HIDDEN)
    p["bf2"] = u(ks[13], (1, NUM_CLASSES), HIDDEN)
    return p


# ---- pure-JAX reference (same math, f32, no Pallas) for a correctness check -
def reference_forward(x, p):
    def conv(xp, w, b):
        t = xp.shape[1] - 2
        return sum(jnp.einsum("btc,cd->btd", xp[:, k:k + t, :], w[k])
                   for k in range(3)) + b

    def block(xx, w, b, s, sh):
        xp = jnp.pad(xx, ((0, 0), (1, 1), (0, 0)))
        y = jnp.maximum(conv(xp, w, b), 0.0) * s + sh        # Conv -> ReLU -> BN
        t = (y.shape[1] // 2) * 2
        return jnp.maximum(y[:, 0:t:2, :], y[:, 1:t:2, :])   # MaxPool1d(2)

    y = block(x, p["w1"], p["b1"], p["s1"], p["sh1"])
    y = block(y, p["w2"], p["b2"], p["s2"], p["sh2"])
    y = block(y, p["w3"], p["b3"], p["s3"], p["sh3"])
    B = x.shape[0]
    h = jnp.zeros((B, HIDDEN), jnp.float32)
    c = jnp.zeros((B, HIDDEN), jnp.float32)
    for t in range(y.shape[1]):
        g = y[:, t, :] @ p["wih"] + h @ p["whh"] + p["bl"]
        i = jax.nn.sigmoid(g[:, :HIDDEN])
        f = jax.nn.sigmoid(g[:, HIDDEN:2 * HIDDEN])
        gg = jnp.tanh(g[:, 2 * HIDDEN:3 * HIDDEN])
        o = jax.nn.sigmoid(g[:, 3 * HIDDEN:])
        c = f * c + i * gg
        h = o * jnp.tanh(c)
    z = jnp.maximum(h @ p["wf1"] + p["bf1"], 0.0)
    return z @ p["wf2"] + p["bf2"]


if __name__ == "__main__":
    key = jax.random.PRNGKey(0)
    kx, kp = jax.random.split(key)
    B = 4
    x = jax.random.normal(kx, (B, TIMESTEPS, IN_CH), jnp.float32)
    params = init_params(kp)

    out = jax.block_until_ready(cnn_lstm_forward(x, params))
    assert out.shape == (B, NUM_CLASSES)

    with jax.default_matmul_precision("float32"):
        ref = jax.block_until_ready(reference_forward(x, params))
    # Tolerance loosened vs the all-f32 variant: matmul operands are bf16
    # (f32 MXU accumulation) per the performance review.
    if not jnp.allclose(out, ref, rtol=2e-2, atol=2e-2):
        raise AssertionError(f"kernel/reference mismatch:\n{out}\nvs\n{ref}")
    print("KERNEL_OK")
</pallas_src>

<mosaic_0001>
module attributes {stable_mosaic.version = 11 : i64} {
  func.func @cnn_lstm_kernel(%arg0: i32, %arg1: memref<128x128xf32, #tpu.memory_space<vmem>>, %arg2: memref<32x8xf32, #tpu.memory_space<vmem>>, %arg3: memref<32x1xf32, #tpu.memory_space<vmem>>, %arg4: memref<32x1xf32, #tpu.memory_space<vmem>>, %arg5: memref<64x96xbf16, #tpu.memory_space<vmem>>, %arg6: memref<64x1xf32, #tpu.memory_space<vmem>>, %arg7: memref<64x1xf32, #tpu.memory_space<vmem>>, %arg8: memref<128x192xbf16, #tpu.memory_space<vmem>>, %arg9: memref<128x1xf32, #tpu.memory_space<vmem>>, %arg10: memref<128x1xf32, #tpu.memory_space<vmem>>, %arg11: memref<256x128xbf16, #tpu.memory_space<vmem>>, %arg12: memref<256x64xbf16, #tpu.memory_space<vmem>>, %arg13: memref<256x1xf32, #tpu.memory_space<vmem>>, %arg14: memref<64x64xbf16, #tpu.memory_space<vmem>>, %arg15: memref<64x1xf32, #tpu.memory_space<vmem>>, %arg16: memref<3x64xbf16, #tpu.memory_space<vmem>>, %arg17: memref<3x1xf32, #tpu.memory_space<vmem>>, %arg18: memref<3x128xf32, #tpu.memory_space<vmem>>, %arg19: memref<320x128xbf16, #tpu.memory_space<vmem>>, %arg20: memref<384x128xbf16, #tpu.memory_space<vmem>>) attributes {dimension_semantics = [#tpu.dimension_semantics<parallel>], iteration_bounds = array<i64: 1>, scalar_prefetch = 0 : i64, scratch_operands = 2 : i64, tpu.core_type = #tpu.core_type<tc>, window_params = [{transform_indices = @transform_0, window_bounds = array<i64: 128, 128>}, {pipeline_mode = #tpu.pipeline_mode<synchronous>, transform_indices = @transform_1, window_bounds = array<i64: 32, 8>}, {pipeline_mode = #tpu.pipeline_mode<synchronous>, transform_indices = @transform_2, window_bounds = array<i64: 32, 1>}, {pipeline_mode = #tpu.pipeline_mode<synchronous>, transform_indices = @transform_3, window_bounds = array<i64: 32, 1>}, {pipeline_mode = #tpu.pipeline_mode<synchronous>, transform_indices = @transform_4, window_bounds = array<i64: 64, 96>}, {pipeline_mode = #tpu.pipeline_mode<synchronous>, transform_indices = @transform_5, window_bounds = array<i64: 64, 1>}, {pipeline_mode = #tpu.pipeline_mode<synchronous>, transform_indices = @transform_6, window_bounds = array<i64: 64, 1>}, {pipeline_mode = #tpu.pipeline_mode<synchronous>, transform_indices = @transform_7, window_bounds = array<i64: 128, 192>}, {pipeline_mode = #tpu.pipeline_mode<synchronous>, transform_indices = @transform_8, window_bounds = array<i64: 128, 1>}, {pipeline_mode = #tpu.pipeline_mode<synchronous>, transform_indices = @transform_9, window_bounds = array<i64: 128, 1>}, {pipeline_mode = #tpu.pipeline_mode<synchronous>, transform_indices = @transform_10, window_bounds = array<i64: 256, 128>}, {pipeline_mode = #tpu.pipeline_mode<synchronous>, transform_indices = @transform_11, window_bounds = array<i64: 256, 64>}, {pipeline_mode = #tpu.pipeline_mode<synchronous>, transform_indices = @transform_12, window_bounds = array<i64: 256, 1>}, {pipeline_mode = #tpu.pipeline_mode<synchronous>, transform_indices = @transform_13, window_bounds = array<i64: 64, 64>}, {pipeline_mode = #tpu.pipeline_mode<synchronous>, transform_indices = @transform_14, window_bounds = array<i64: 64, 1>}, {pipeline_mode = #tpu.pipeline_mode<synchronous>, transform_indices = @transform_15, window_bounds = array<i64: 3, 64>}, {pipeline_mode = #tpu.pipeline_mode<synchronous>, transform_indices = @transform_16, window_bounds = array<i64: 3, 1>}, {transform_indices = @transform_17, window_bounds = array<i64: 3, 128>}]} {
    %c0 = arith.constant 0 : index
    %c0_0 = arith.constant 0 : index
    %0 = vector.load %arg2[%c0, %c0_0] : memref<32x8xf32, #tpu.memory_space<vmem>>, vector<32x8xf32>
    %c0_1 = arith.constant 0 : index
    %c0_2 = arith.constant 0 : index
    %1 = vector.load %arg3[%c0_1, %c0_2] : memref<32x1xf32, #tpu.memory_space<vmem>>, vector<32x1xf32>
    %c0_3 = arith.constant 0 : index
    %c0_4 = arith.constant 0 : index
    %2 = vector.load %arg4[%c0_3, %c0_4] : memref<32x1xf32, #tpu.memory_space<vmem>>, vector<32x1xf32>
    %cst = arith.constant 0.000000e+00 : bf16
    %3 = vector.broadcast %cst : bf16 to vector<32x128xbf16>
    %c0_5 = arith.constant 0 : index
    %c0_6 = arith.constant 0 : index
    %4 = vector.load %arg19[%c0_5, %c0_6] : memref<320x128xbf16, #tpu.memory_space<vmem>>, vector<32x128xbf16>
    tpu.vector_store %arg19[%c0_5, %c0_6], %3 {strides = array<i32>} : memref<320x128xbf16, #tpu.memory_space<vmem>>, vector<32x128xbf16>,
    %cst_7 = arith.constant 0.000000e+00 : bf16
    %5 = vector.broadcast %cst_7 : bf16 to vector<32x128xbf16>
    %c288 = arith.constant 288 : index
    %c0_8 = arith.constant 0 : index
    %6 = vector.load %arg19[%c288, %c0_8] : memref<320x128xbf16, #tpu.memory_space<vmem>>, vector<32x128xbf16>
    tpu.vector_store %arg19[%c288, %c0_8], %5 {strides = array<i32>} : memref<320x128xbf16, #tpu.memory_space<vmem>>, vector<32x128xbf16>,
    %c0_9 = arith.constant 0 : index
    %c0_10 = arith.constant 0 : index
    %7 = vector.load %arg1[%c0_9, %c0_10] : memref<128x128xf32, #tpu.memory_space<vmem>>, vector<8x128xf32>
    %cst_11 = arith.constant dense<0.000000e+00> : vector<32x128xf32>
    %8 = tpu.matmul %0, %7, %cst_11 {dimension_numbers = #tpu.dot_dimension_numbers<[1], [0], [0], [1], [0, 0, 1, 1], [], []>} : vector<32x8xf32>, vector<8x128xf32>, vector<32x128xf32> -> vector<32x128xf32>
    %9 = vector.broadcast %1 : vector<32x1xf32> to vector<32x128xf32>
    %10 = arith.addf %8, %9 : vector<32x128xf32>
    %cst_12 = arith.constant 0.000000e+00 : f32
    %11 = vector.broadcast %cst_12 : f32 to vector<32x128xf32>
    %12 = arith.maximumf %10, %11 : vector<32x128xf32>
    %c8 = arith.constant 8 : index
    %c0_13 = arith.constant 0 : index
    %13 = vector.load %arg1[%c8, %c0_13] : memref<128x128xf32, #tpu.memory_space<vmem>>, vector<8x128xf32>
    %cst_14 = arith.constant dense<0.000000e+00> : vector<32x128xf32>
    %14 = tpu.matmul %0, %13, %cst_14 {dimension_numbers = #tpu.dot_dimension_numbers<[1], [0], [0], [1], [0, 0, 1, 1], [], []>} : vector<32x8xf32>, vector<8x128xf32>, vector<32x128xf32> -> vector<32x128xf32>
    %15 = vector.broadcast %1 : vector<32x1xf32> to vector<32x128xf32>
    %16 = arith.addf %14, %15 : vector<32x128xf32>
    %cst_15 = arith.constant 0.000000e+00 : f32
    %17 = vector.broadcast %cst_15 : f32 to vector<32x128xf32>
    %18 = arith.maximumf %16, %17 : vector<32x128xf32>
    %19 = arith.maximumf %12, %18 : vector<32x128xf32>
    %20 = vector.broadcast %2 : vector<32x1xf32> to vector<32x128xf32>
    %21 = arith.addf %19, %20 : vector<32x128xf32>
    %22 = arith.truncf %21 : vector<32x128xf32> to vector<32x128xbf16>
    %c32 = arith.constant 32 : index
    %c0_16 = arith.constant 0 : index
    %23 = vector.load %arg19[%c32, %c0_16] : memref<320x128xbf16, #tpu.memory_space<vmem>>, vector<32x128xbf16>
    tpu.vector_store %arg19[%c32, %c0_16], %22 {strides = array<i32>} : memref<320x128xbf16, #tpu.memory_space<vmem>>, vector<32x128xbf16>,
    %c16 = arith.constant 16 : index
    %c0_17 = arith.constant 0 : index
    %24 = vector.load %arg1[%c16, %c0_17] : memref<128x128xf32, #tpu.memory_space<vmem>>, vector<8x128xf32>
    %cst_18 = arith.constant dense<0.000000e+00> : vector<32x128xf32>
    %25 = tpu.matmul %0, %24, %cst_18 {dimension_numbers = #tpu.dot_dimension_numbers<[1], [0], [0], [1], [0, 0, 1, 1], [], []>} : vector<32x8xf32>, vector<8x128xf32>, vector<32x128xf32> -> vector<32x128xf32>
    %26 = vector.broadcast %1 : vector<32x1xf32> to vector<32x128xf32>
    %27 = arith.addf %25, %26 : vector<32x128xf32>
    %cst_19 = arith.constant 0.000000e+00 : f32
    %28 = vector.broadcast %cst_19 : f32 to vector<32x128xf32>
    %29 = arith.maximumf %27, %28 : vector<32x128xf32>
    %c24 = arith.constant 24 : index
    %c0_20 = arith.constant 0 : index
    %30 = vector.load %arg1[%c24, %c0_20] : memref<128x128xf32, #tpu.memory_space<vmem>>, vector<8x128xf32>
    %cst_21 = arith.constant dense<0.000000e+00> : vector<32x128xf32>
    %31 = tpu.matmul %0, %30, %cst_21 {dimension_numbers = #tpu.dot_dimension_numbers<[1], [0], [0], [1], [0, 0, 1, 1], [], []>} : vector<32x8xf32>, vector<8x128xf32>, vector<32x128xf32> -> vector<32x128xf32>
    %32 = vector.broadcast %1 : vector<32x1xf32> to vector<32x128xf32>
    %33 = arith.addf %31, %32 : vector<32x128xf32>
    %cst_22 = arith.constant 0.000000e+00 : f32
    %34 = vector.broadcast %cst_22 : f32 to vector<32x128xf32>
    %35 = arith.maximumf %33, %34 : vector<32x128xf32>
    %36 = arith.maximumf %29, %35 : vector<32x128xf32>
    %37 = vector.broadcast %2 : vector<32x1xf32> to vector<32x128xf32>
    %38 = arith.addf %36, %37 : vector<32x128xf32>
    %39 = arith.truncf %38 : vector<32x128xf32> to vector<32x128xbf16>
    %c64 = arith.constant 64 : index
    %c0_23 = arith.constant 0 : index
    %40 = vector.load %arg19[%c64, %c0_23] : memref<320x128xbf16, #tpu.memory_space<vmem>>, vector<32x128xbf16>
    tpu.vector_store %arg19[%c64, %c0_23], %39 {strides = array<i32>} : memref<320x128xbf16, #tpu.memory_space<vmem>>, vector<32x128xbf16>,
    %c32_24 = arith.constant 32 : index
    %c0_25 = arith.constant 0 : index
    %41 = vector.load %arg1[%c32_24, %c0_25] : memref<128x128xf32, #tpu.memory_space<vmem>>, vector<8x128xf32>
    %cst_26 = arith.constant dense<0.000000e+00> : vector<32x128xf32>
    %42 = tpu.matmul %0, %41, %cst_26 {dimension_numbers = #tpu.dot_dimension_numbers<[1], [0], [0], [1], [0, 0, 1, 1], [], []>} : vector<32x8xf32>, vector<8x128xf32>, vector<32x128xf32> -> vector<32x128xf32>
    %43 = vector.broadcast %1 : vector<32x1xf32> to vector<32x128xf32>
    %44 = arith.addf %42, %43 : vector<32x128xf32>
    %cst_27 = arith.constant 0.000000e+00 : f32
    %45 = vector.broadcast %cst_27 : f32 to vector<32x128xf32>
    %46 = arith.maximumf %44, %45 : vector<32x128xf32>
    %c40 = arith.constant 40 : index
    %c0_28 = arith.constant 0 : index
    %47 = vector.load %arg1[%c40, %c0_28] : memref<128x128xf32, #tpu.memory_space<vmem>>, vector<8x128xf32>
    %cst_29 = arith.constant dense<0.000000e+00> : vector<32x128xf32>
    %48 = tpu.matmul %0, %47, %cst_29 {dimension_numbers = #tpu.dot_dimension_numbers<[1], [0], [0], [1], [0, 0, 1, 1], [], []>} : vector<32x8xf32>, vector<8x128xf32>, vector<32x128xf32> -> vector<32x128xf32>
    %49 = vector.broadcast %1 : vector<32x1xf32> to vector<32x128xf32>
    %50 = arith.addf %48, %49 : vector<32x128xf32>
    %cst_30 = arith.constant 0.000000e+00 : f32
    %51 = vector.broadcast %cst_30 : f32 to vector<32x128xf32>
    %52 = arith.maximumf %50, %51 : vector<32x128xf32>
    %53 = arith.maximumf %46, %52 : vector<32x128xf32>
    %54 = vector.broadcast %2 : vector<32x1xf32> to vector<32x128xf32>
    %55 = arith.addf %53, %54 : vector<32x128xf32>
    %56 = arith.truncf %55 : vector<32x128xf32> to vector<32x128xbf16>
    %c96 = arith.constant 96 : index
    %c0_31 = arith.constant 0 : index
    %57 = vector.load %arg19[%c96, %c0_31] : memref<320x128xbf16, #tpu.memory_space<vmem>>, vector<32x128xbf16>
    tpu.vector_store %arg19[%c96, %c0_31], %56 {strides = array<i32>} : memref<320x128xbf16, #tpu.memory_space<vmem>>, vector<32x128xbf16>,
    %c48 = arith.constant 48 : index
    %c0_32 = arith.constant 0 : index
    %58 = vector.load %arg1[%c48, %c0_32] : memref<128x128xf32, #tpu.memory_space<vmem>>, vector<8x128xf32>
    %cst_33 = arith.constant dense<0.000000e+00> : vector<32x128xf32>
    %59 = tpu.matmul %0, %58, %cst_33 {dimension_numbers = #tpu.dot_dimension_numbers<[1], [0], [0], [1], [0, 0, 1, 1], [], []>} : vector<32x8xf32>, vector<8x128xf32>, vector<32x128xf32> -> vector<32x128xf32>
    %60 = vector.broadcast %1 : vector<32x1xf32> to vector<32x128xf32>
    %61 = arith.addf %59, %60 : vector<32x128xf32>
    %cst_34 = arith.constant 0.000000e+00 : f32
    %62 = vector.broadcast %cst_34 : f32 to vector<32x128xf32>
    %63 = arith.maximumf %61, %62 : vector<32x128xf32>
    %c56 = arith.constant 56 : index
    %c0_35 = arith.constant 0 : index
    %64 = vector.load %arg1[%c56, %c0_35] : memref<128x128xf32, #tpu.memory_space<vmem>>, vector<8x128xf32>
    %cst_36 = arith.constant dense<0.000000e+00> : vector<32x128xf32>
    %65 = tpu.matmul %0, %64, %cst_36 {dimension_numbers = #tpu.dot_dimension_numbers<[1], [0], [0], [1], [0, 0, 1, 1], [], []>} : vector<32x8xf32>, vector<8x128xf32>, vector<32x128xf32> -> vector<32x128xf32>
    %66 = vector.broadcast %1 : vector<32x1xf32> to vector<32x128xf32>
    %67 = arith.addf %65, %66 : vector<32x128xf32>
    %cst_37 = arith.constant 0.000000e+00 : f32
    %68 = vector.broadcast %cst_37 : f32 to vector<32x128xf32>
    %69 = arith.maximumf %67, %68 : vector<32x128xf32>
    %70 = arith.maximumf %63, %69 : vector<32x128xf32>
    %71 = vector.broadcast %2 : vector<32x1xf32> to vector<32x128xf32>
    %72 = arith.addf %70, %71 : vector<32x128xf32>
    %73 = arith.truncf %72 : vector<32x128xf32> to vector<32x128xbf16>
    %c128 = arith.constant 128 : index
    %c0_38 = arith.constant 0 : index
    %74 = vector.load %arg19[%c128, %c0_38] : memref<320x128xbf16, #tpu.memory_space<vmem>>, vector<32x128xbf16>
    tpu.vector_store %arg19[%c128, %c0_38], %73 {strides = array<i32>} : memref<320x128xbf16, #tpu.memory_space<vmem>>, vector<32x128xbf16>,
    %c64_39 = arith.constant 64 : index
    %c0_40 = arith.constant 0 : index
    %75 = vector.load %arg1[%c64_39, %c0_40] : memref<128x128xf32, #tpu.memory_space<vmem>>, vector<8x128xf32>
    %cst_41 = arith.constant dense<0.000000e+00> : vector<32x128xf32>
    %76 = tpu.matmul %0, %75, %cst_41 {dimension_numbers = #tpu.dot_dimension_numbers<[1], [0], [0], [1], [0, 0, 1, 1], [], []>} : vector<32x8xf32>, vector<8x128xf32>, vector<32x128xf32> -> vector<32x128xf32>
    %77 = vector.broadcast %1 : vector<32x1xf32> to vector<32x128xf32>
    %78 = arith.addf %76, %77 : vector<32x128xf32>
    %cst_42 = arith.constant 0.000000e+00 : f32
    %79 = vector.broadcast %cst_42 : f32 to vector<32x128xf32>
    %80 = arith.maximumf %78, %79 : vector<32x128xf32>
    %c72 = arith.constant 72 : index
    %c0_43 = arith.constant 0 : index
    %81 = vector.load %arg1[%c72, %c0_43] : memref<128x128xf32, #tpu.memory_space<vmem>>, vector<8x128xf32>
    %cst_44 = arith.constant dense<0.000000e+00> : vector<32x128xf32>
    %82 = tpu.matmul %0, %81, %cst_44 {dimension_numbers = #tpu.dot_dimension_numbers<[1], [0], [0], [1], [0, 0, 1, 1], [], []>} : vector<32x8xf32>, vector<8x128xf32>, vector<32x128xf32> -> vector<32x128xf32>
    %83 = vector.broadcast %1 : vector<32x1xf32> to vector<32x128xf32>
    %84 = arith.addf %82, %83 : vector<32x128xf32>
    %cst_45 = arith.constant 0.000000e+00 : f32
    %85 = vector.broadcast %cst_45 : f32 to vector<32x128xf32>
    %86 = arith.maximumf %84, %85 : vector<32x128xf32>
    %87 = arith.maximumf %80, %86 : vector<32x128xf32>
    %88 = vector.broadcast %2 : vector<32x1xf32> to vector<32x128xf32>
    %89 = arith.addf %87, %88 : vector<32x128xf32>
    %90 = arith.truncf %89 : vector<32x128xf32> to vector<32x128xbf16>
    %c160 = arith.constant 160 : index
    %c0_46 = arith.constant 0 : index
    %91 = vector.load %arg19[%c160, %c0_46] : memref<320x128xbf16, #tpu.memory_space<vmem>>, vector<32x128xbf16>
    tpu.vector_store %arg19[%c160, %c0_46], %90 {strides = array<i32>} : memref<320x128xbf16, #tpu.memory_space<vmem>>, vector<32x128xbf16>,
    %c80 = arith.constant 80 : index
    %c0_47 = arith.constant 0 : index
    %92 = vector.load %arg1[%c80, %c0_47] : memref<128x128xf32, #tpu.memory_space<vmem>>, vector<8x128xf32>
    %cst_48 = arith.constant dense<0.000000e+00> : vector<32x128xf32>
    %93 = tpu.matmul %0, %92, %cst_48 {dimension_numbers = #tpu.dot_dimension_numbers<[1], [0], [0], [1], [0, 0, 1, 1], [], []>} : vector<32x8xf32>, vector<8x128xf32>, vector<32x128xf32> -> vector<32x128xf32>
    %94 = vector.broadcast %1 : vector<32x1xf32> to vector<32x128xf32>
    %95 = arith.addf %93, %94 : vector<32x128xf32>
    %cst_49 = arith.constant 0.000000e+00 : f32
    %96 = vector.broadcast %cst_49 : f32 to vector<32x128xf32>
    %97 = arith.maximumf %95, %96 : vector<32x128xf32>
    %c88 = arith.constant 88 : index
    %c0_50 = arith.constant 0 : index
    %98 = vector.load %arg1[%c88, %c0_50] : memref<128x128xf32, #tpu.memory_space<vmem>>, vector<8x128xf32>
    %cst_51 = arith.constant dense<0.000000e+00> : vector<32x128xf32>
    %99 = tpu.matmul %0, %98, %cst_51 {dimension_numbers = #tpu.dot_dimension_numbers<[1], [0], [0], [1], [0, 0, 1, 1], [], []>} : vector<32x8xf32>, vector<8x128xf32>, vector<32x128xf32> -> vector<32x128xf32>
    %100 = vector.broadcast %1 : vector<32x1xf32> to vector<32x128xf32>
    %101 = arith.addf %99, %100 : vector<32x128xf32>
    %cst_52 = arith.constant 0.000000e+00 : f32
    %102 = vector.broadcast %cst_52 : f32 to vector<32x128xf32>
    %103 = arith.maximumf %101, %102 : vector<32x128xf32>
    %104 = arith.maximumf %97, %103 : vector<32x128xf32>
    %105 = vector.broadcast %2 : vector<32x1xf32> to vector<32x128xf32>
    %106 = arith.addf %104, %105 : vector<32x128xf32>
    %107 = arith.truncf %106 : vector<32x128xf32> to vector<32x128xbf16>
    %c192 = arith.constant 192 : index
    %c0_53 = arith.constant 0 : index
    %108 = vector.load %arg19[%c192, %c0_53] : memref<320x128xbf16, #tpu.memory_space<vmem>>, vector<32x128xbf16>
    tpu.vector_store %arg19[%c192, %c0_53], %107 {strides = array<i32>} : memref<320x128xbf16, #tpu.memory_space<vmem>>, vector<32x128xbf16>,
    %c96_54 = arith.constant 96 : index
    %c0_55 = arith.constant 0 : index
    %109 = vector.load %arg1[%c96_54, %c0_55] : memref<128x128xf32, #tpu.memory_space<vmem>>, vector<8x128xf32>
    %cst_56 = arith.constant dense<0.000000e+00> : vector<32x128xf32>
    %110 = tpu.matmul %0, %109, %cst_56 {dimension_numbers = #tpu.dot_dimension_numbers<[1], [0], [0], [1], [0, 0, 1, 1], [], []>} : vector<32x8xf32>, vector<8x128xf32>, vector<32x128xf32> -> vector<32x128xf32>
    %111 = vector.broadcast %1 : vector<32x1xf32> to vector<32x128xf32>
    %112 = arith.addf %110, %111 : vector<32x128xf32>
    %cst_57 = arith.constant 0.000000e+00 : f32
    %113 = vector.broadcast %cst_57 : f32 to vector<32x128xf32>
    %114 = arith.maximumf %112, %113 : vector<32x128xf32>
    %c104 = arith.constant 104 : index
    %c0_58 = arith.constant 0 : index
    %115 = vector.load %arg1[%c104, %c0_58] : memref<128x128xf32, #tpu.memory_space<vmem>>, vector<8x128xf32>
    %cst_59 = arith.constant dense<0.000000e+00> : vector<32x128xf32>
    %116 = tpu.matmul %0, %115, %cst_59 {dimension_numbers = #tpu.dot_dimension_numbers<[1], [0], [0], [1], [0, 0, 1, 1], [], []>} : vector<32x8xf32>, vector<8x128xf32>, vector<32x128xf32> -> vector<32x128xf32>
    %117 = vector.broadcast %1 : vector<32x1xf32> to vector<32x128xf32>
    %118 = arith.addf %116, %117 : vector<32x128xf32>
    %cst_60 = arith.constant 0.000000e+00 : f32
    %119 = vector.broadcast %cst_60 : f32 to vector<32x128xf32>
    %120 = arith.maximumf %118, %119 : vector<32x128xf32>
    %121 = arith.maximumf %114, %120 : vector<32x128xf32>
    %122 = vector.broadcast %2 : vector<32x1xf32> to vector<32x128xf32>
    %123 = arith.addf %121, %122 : vector<32x128xf32>
    %124 = arith.truncf %123 : vector<32x128xf32> to vector<32x128xbf16>
    %c224 = arith.constant 224 : index
    %c0_61 = arith.constant 0 : index
    %125 = vector.load %arg19[%c224, %c0_61] : memref<320x128xbf16, #tpu.memory_space<vmem>>, vector<32x128xbf16>
    tpu.vector_store %arg19[%c224, %c0_61], %124 {strides = array<i32>} : memref<320x128xbf16, #tpu.memory_space<vmem>>, vector<32x128xbf16>,
    %c112 = arith.constant 112 : index
    %c0_62 = arith.constant 0 : index
    %126 = vector.load %arg1[%c112, %c0_62] : memref<128x128xf32, #tpu.memory_space<vmem>>, vector<8x128xf32>
    %cst_63 = arith.constant dense<0.000000e+00> : vector<32x128xf32>
    %127 = tpu.matmul %0, %126, %cst_63 {dimension_numbers = #tpu.dot_dimension_numbers<[1], [0], [0], [1], [0, 0, 1, 1], [], []>} : vector<32x8xf32>, vector<8x128xf32>, vector<32x128xf32> -> vector<32x128xf32>
    %128 = vector.broadcast %1 : vector<32x1xf32> to vector<32x128xf32>
    %129 = arith.addf %127, %128 : vector<32x128xf32>
    %cst_64 = arith.constant 0.000000e+00 : f32
    %130 = vector.broadcast %cst_64 : f32 to vector<32x128xf32>
    %131 = arith.maximumf %129, %130 : vector<32x128xf32>
    %c120 = arith.constant 120 : index
    %c0_65 = arith.constant 0 : index
    %132 = vector.load %arg1[%c120, %c0_65] : memref<128x128xf32, #tpu.memory_space<vmem>>, vector<8x128xf32>
    %cst_66 = arith.constant dense<0.000000e+00> : vector<32x128xf32>
    %133 = tpu.matmul %0, %132, %cst_66 {dimension_numbers = #tpu.dot_dimension_numbers<[1], [0], [0], [1], [0, 0, 1, 1], [], []>} : vector<32x8xf32>, vector<8x128xf32>, vector<32x128xf32> -> vector<32x128xf32>
    %134 = vector.broadcast %1 : vector<32x1xf32> to vector<32x128xf32>
    %135 = arith.addf %133, %134 : vector<32x128xf32>
    %cst_67 = arith.constant 0.000000e+00 : f32
    %136 = vector.broadcast %cst_67 : f32 to vector<32x128xf32>
    %137 = arith.maximumf %135, %136 : vector<32x128xf32>
    %138 = arith.maximumf %131, %137 : vector<32x128xf32>
    %139 = vector.broadcast %2 : vector<32x1xf32> to vector<32x128xf32>
    %140 = arith.addf %138, %139 : vector<32x128xf32>
    %141 = arith.truncf %140 : vector<32x128xf32> to vector<32x128xbf16>
    %c256 = arith.constant 256 : index
    %c0_68 = arith.constant 0 : index
    %142 = vector.load %arg19[%c256, %c0_68] : memref<320x128xbf16, #tpu.memory_space<vmem>>, vector<32x128xbf16>
    tpu.vector_store %arg19[%c256, %c0_68], %141 {strides = array<i32>} : memref<320x128xbf16, #tpu.memory_space<vmem>>, vector<32x128xbf16>,
    %c0_69 = arith.constant 0 : index
    %c0_70 = arith.constant 0 : index
    %143 = vector.load %arg5[%c0_69, %c0_70] : memref<64x96xbf16, #tpu.memory_space<vmem>>, vector<64x96xbf16>
    %c0_71 = arith.constant 0 : index
    %c0_72 = arith.constant 0 : index
    %144 = vector.load %arg6[%c0_71, %c0_72] : memref<64x1xf32, #tpu.memory_space<vmem>>, vector<64x1xf32>
    %c0_73 = arith.constant 0 : index
    %c0_74 = arith.constant 0 : index
    %145 = vector.load %arg7[%c0_73, %c0_74] : memref<64x1xf32, #tpu.memory_space<vmem>>, vector<64x1xf32>
    %cst_75 = arith.constant 0.000000e+00 : bf16
    %146 = vector.broadcast %cst_75 : bf16 to vector<64x128xbf16>
    %c0_76 = arith.constant 0 : index
    %c0_77 = arith.constant 0 : index
    %147 = vector.load %arg20[%c0_76, %c0_77] : memref<384x128xbf16, #tpu.memory_space<vmem>>, vector<64x128xbf16>
    tpu.vector_store %arg20[%c0_76, %c0_77], %146 {strides = array<i32>} : memref<384x128xbf16, #tpu.memory_space<vmem>>, vector<64x128xbf16>,
    %cst_78 = arith.constant 0.000000e+00 : bf16
    %148 = vector.broadcast %cst_78 : bf16 to vector<64x128xbf16>
    %c320 = arith.constant 320 : index
    %c0_79 = arith.constant 0 : index
    %149 = vector.load %arg20[%c320, %c0_79] : memref<384x128xbf16, #tpu.memory_space<vmem>>, vector<64x128xbf16>
    tpu.vector_store %arg20[%c320, %c0_79], %148 {strides = array<i32>} : memref<384x128xbf16, #tpu.memory_space<vmem>>, vector<64x128xbf16>,
    %c0_80 = arith.constant 0 : index
    %c0_81 = arith.constant 0 : index
    %150 = vector.load %arg19[%c0_80, %c0_81] : memref<320x128xbf16, #tpu.memory_space<vmem>>, vector<96x128xbf16>
    %cst_82 = arith.constant dense<0.000000e+00> : vector<64x128xf32>
    %151 = tpu.matmul %143, %150, %cst_82 {dimension_numbers = #tpu.dot_dimension_numbers<[1], [0], [0], [1], [0, 0, 1, 1], [], []>} : vector<64x96xbf16>, vector<96x128xbf16>, vector<64x128xf32> -> vector<64x128xf32>
    %152 = vector.broadcast %144 : vector<64x1xf32> to vector<64x128xf32>
    %153 = arith.addf %151, %152 : vector<64x128xf32>
    %cst_83 = arith.constant 0.000000e+00 : f32
    %154 = vector.broadcast %cst_83 : f32 to vector<64x128xf32>
    %155 = arith.maximumf %153, %154 : vector<64x128xf32>
    %c32_84 = arith.constant 32 : index
    %c0_85 = arith.constant 0 : index
    %156 = vector.load %arg19[%c32_84, %c0_85] : memref<320x128xbf16, #tpu.memory_space<vmem>>, vector<96x128xbf16>
    %cst_86 = arith.constant dense<0.000000e+00> : vector<64x128xf32>
    %157 = tpu.matmul %143, %156, %cst_86 {dimension_numbers = #tpu.dot_dimension_numbers<[1], [0], [0], [1], [0, 0, 1, 1], [], []>} : vector<64x96xbf16>, vector<96x128xbf16>, vector<64x128xf32> -> vector<64x128xf32>
    %158 = vector.broadcast %144 : vector<64x1xf32> to vector<64x128xf32>
    %159 = arith.addf %157, %158 : vector<64x128xf32>
    %cst_87 = arith.constant 0.000000e+00 : f32
    %160 = vector.broadcast %cst_87 : f32 to vector<64x128xf32>
    %161 = arith.maximumf %159, %160 : vector<64x128xf32>
    %162 = arith.maximumf %155, %161 : vector<64x128xf32>
    %163 = vector.broadcast %145 : vector<64x1xf32> to vector<64x128xf32>
    %164 = arith.addf %162, %163 : vector<64x128xf32>
    %165 = arith.truncf %164 : vector<64x128xf32> to vector<64x128xbf16>
    %c64_88 = arith.constant 64 : index
    %c0_89 = arith.constant 0 : index
    %166 = vector.load %arg20[%c64_88, %c0_89] : memref<384x128xbf16, #tpu.memory_space<vmem>>, vector<64x128xbf16>
    tpu.vector_store %arg20[%c64_88, %c0_89], %165 {strides = array<i32>} : memref<384x128xbf16, #tpu.memory_space<vmem>>, vector<64x128xbf16>,
    %c64_90 = arith.constant 64 : index
    %c0_91 = arith.constant 0 : index
    %167 = vector.load %arg19[%c64_90, %c0_91] : memref<320x128xbf16, #tpu.memory_space<vmem>>, vector<96x128xbf16>
    %cst_92 = arith.constant dense<0.000000e+00> : vector<64x128xf32>
    %168 = tpu.matmul %143, %167, %cst_92 {dimension_numbers = #tpu.dot_dimension_numbers<[1], [0], [0], [1], [0, 0, 1, 1], [], []>} : vector<64x96xbf16>, vector<96x128xbf16>, vector<64x128xf32> -> vector<64x128xf32>
    %169 = vector.broadcast %144 : vector<64x1xf32> to vector<64x128xf32>
    %170 = arith.addf %168, %169 : vector<64x128xf32>
    %cst_93 = arith.constant 0.000000e+00 : f32
    %171 = vector.broadcast %cst_93 : f32 to vector<64x128xf32>
    %172 = arith.maximumf %170, %171 : vector<64x128xf32>
    %c96_94 = arith.constant 96 : index
    %c0_95 = arith.constant 0 : index
    %173 = vector.load %arg19[%c96_94, %c0_95] : memref<320x128xbf16, #tpu.memory_space<vmem>>, vector<96x128xbf16>
    %cst_96 = arith.constant dense<0.000000e+00> : vector<64x128xf32>
    %174 = tpu.matmul %143, %173, %cst_96 {dimension_numbers = #tpu.dot_dimension_numbers<[1], [0], [0], [1], [0, 0, 1, 1], [], []>} : vector<64x96xbf16>, vector<96x128xbf16>, vector<64x128xf32> -> vector<64x128xf32>
    %175 = vector.broadcast %144 : vector<64x1xf32> to vector<64x128xf32>
    %176 = arith.addf %174, %175 : vector<64x128xf32>
    %cst_97 = arith.constant 0.000000e+00 : f32
    %177 = vector.broadcast %cst_97 : f32 to vector<64x128xf32>
    %178 = arith.maximumf %176, %177 : vector<64x128xf32>
    %179 = arith.maximumf %172, %178 : vector<64x128xf32>
    %180 = vector.broadcast %145 : vector<64x1xf32> to vector<64x128xf32>
    %181 = arith.addf %179, %180 : vector<64x128xf32>
    %182 = arith.truncf %181 : vector<64x128xf32> to vector<64x128xbf16>
    %c128_98 = arith.constant 128 : index
    %c0_99 = arith.constant 0 : index
    %183 = vector.load %arg20[%c128_98, %c0_99] : memref<384x128xbf16, #tpu.memory_space<vmem>>, vector<64x128xbf16>
    tpu.vector_store %arg20[%c128_98, %c0_99], %182 {strides = array<i32>} : memref<384x128xbf16, #tpu.memory_space<vmem>>, vector<64x128xbf16>,
    %c128_100 = arith.constant 128 : index
    %c0_101 = arith.constant 0 : index
    %184 = vector.load %arg19[%c128_100, %c0_101] : memref<320x128xbf16, #tpu.memory_space<vmem>>, vector<96x128xbf16>
    %cst_102 = arith.constant dense<0.000000e+00> : vector<64x128xf32>
    %185 = tpu.matmul %143, %184, %cst_102 {dimension_numbers = #tpu.dot_dimension_numbers<[1], [0], [0], [1], [0, 0, 1, 1], [], []>} : vector<64x96xbf16>, vector<96x128xbf16>, vector<64x128xf32> -> vector<64x128xf32>
    %186 = vector.broadcast %144 : vector<64x1xf32> to vector<64x128xf32>
    %187 = arith.addf %185, %186 : vector<64x128xf32>
    %cst_103 = arith.constant 0.000000e+00 : f32
    %188 = vector.broadcast %cst_103 : f32 to vector<64x128xf32>
    %189 = arith.maximumf %187, %188 : vector<64x128xf32>
    %c160_104 = arith.constant 160 : index
    %c0_105 = arith.constant 0 : index
    %190 = vector.load %arg19[%c160_104, %c0_105] : memref<320x128xbf16, #tpu.memory_space<vmem>>, vector<96x128xbf16>
    %cst_106 = arith.constant dense<0.000000e+00> : vector<64x128xf32>
    %191 = tpu.matmul %143, %190, %cst_106 {dimension_numbers = #tpu.dot_dimension_numbers<[1], [0], [0], [1], [0, 0, 1, 1], [], []>} : vector<64x96xbf16>, vector<96x128xbf16>, vector<64x128xf32> -> vector<64x128xf32>
    %192 = vector.broadcast %144 : vector<64x1xf32> to vector<64x128xf32>
    %193 = arith.addf %191, %192 : vector<64x128xf32>
    %cst_107 = arith.constant 0.000000e+00 : f32
    %194 = vector.broadcast %cst_107 : f32 to vector<64x128xf32>
    %195 = arith.maximumf %193, %194 : vector<64x128xf32>
    %196 = arith.maximumf %189, %195 : vector<64x128xf32>
    %197 = vector.broadcast %145 : vector<64x1xf32> to vector<64x128xf32>
    %198 = arith.addf %196, %197 : vector<64x128xf32>
    %199 = arith.truncf %198 : vector<64x128xf32> to vector<64x128xbf16>
    %c192_108 = arith.constant 192 : index
    %c0_109 = arith.constant 0 : index
    %200 = vector.load %arg20[%c192_108, %c0_109] : memref<384x128xbf16, #tpu.memory_space<vmem>>, vector<64x128xbf16>
    tpu.vector_store %arg20[%c192_108, %c0_109], %199 {strides = array<i32>} : memref<384x128xbf16, #tpu.memory_space<vmem>>, vector<64x128xbf16>,
    %c192_110 = arith.constant 192 : index
    %c0_111 = arith.constant 0 : index
    %201 = vector.load %arg19[%c192_110, %c0_111] : memref<320x128xbf16, #tpu.memory_space<vmem>>, vector<96x128xbf16>
    %cst_112 = arith.constant dense<0.000000e+00> : vector<64x128xf32>
    %202 = tpu.matmul %143, %201, %cst_112 {dimension_numbers = #tpu.dot_dimension_numbers<[1], [0], [0], [1], [0, 0, 1, 1], [], []>} : vector<64x96xbf16>, vector<96x128xbf16>, vector<64x128xf32> -> vector<64x128xf32>
    %203 = vector.broadcast %144 : vector<64x1xf32> to vector<64x128xf32>
    %204 = arith.addf %202, %203 : vector<64x128xf32>
    %cst_113 = arith.constant 0.000000e+00 : f32
    %205 = vector.broadcast %cst_113 : f32 to vector<64x128xf32>
    %206 = arith.maximumf %204, %205 : vector<64x128xf32>
    %c224_114 = arith.constant 224 : index
    %c0_115 = arith.constant 0 : index
    %207 = vector.load %arg19[%c224_114, %c0_115] : memref<320x128xbf16, #tpu.memory_space<vmem>>, vector<96x128xbf16>
    %cst_116 = arith.constant dense<0.000000e+00> : vector<64x128xf32>
    %208 = tpu.matmul %143, %207, %cst_116 {dimension_numbers = #tpu.dot_dimension_numbers<[1], [0], [0], [1], [0, 0, 1, 1], [], []>} : vector<64x96xbf16>, vector<96x128xbf16>, vector<64x128xf32> -> vector<64x128xf32>
    %209 = vector.broadcast %144 : vector<64x1xf32> to vector<64x128xf32>
    %210 = arith.addf %208, %209 : vector<64x128xf32>
    %cst_117 = arith.constant 0.000000e+00 : f32
    %211 = vector.broadcast %cst_117 : f32 to vector<64x128xf32>
    %212 = arith.maximumf %210, %211 : vector<64x128xf32>
    %213 = arith.maximumf %206, %212 : vector<64x128xf32>
    %214 = vector.broadcast %145 : vector<64x1xf32> to vector<64x128xf32>
    %215 = arith.addf %213, %214 : vector<64x128xf32>
    %216 = arith.truncf %215 : vector<64x128xf32> to vector<64x128xbf16>
    %c256_118 = arith.constant 256 : index
    %c0_119 = arith.constant 0 : index
    %217 = vector.load %arg20[%c256_118, %c0_119] : memref<384x128xbf16, #tpu.memory_space<vmem>>, vector<64x128xbf16>
    tpu.vector_store %arg20[%c256_118, %c0_119], %216 {strides = array<i32>} : memref<384x128xbf16, #tpu.memory_space<vmem>>, vector<64x128xbf16>,
    %c0_120 = arith.constant 0 : index
    %c0_121 = arith.constant 0 : index
    %218 = vector.load %arg8[%c0_120, %c0_121] : memref<128x192xbf16, #tpu.memory_space<vmem>>, vector<128x192xbf16>
    %c0_122 = arith.constant 0 : index
    %c0_123 = arith.constant 0 : index
    %219 = vector.load %arg9[%c0_122, %c0_123] : memref<128x1xf32, #tpu.memory_space<vmem>>, vector<128x1xf32>
    %c0_124 = arith.constant 0 : index
    %c0_125 = arith.constant 0 : index
    %220 = vector.load %arg10[%c0_124, %c0_125] : memref<128x1xf32, #tpu.memory_space<vmem>>, vector<128x1xf32>
    %c0_126 = arith.constant 0 : index
    %c0_127 = arith.constant 0 : index
    %221 = vector.load %arg11[%c0_126, %c0_127] : memref<256x128xbf16, #tpu.memory_space<vmem>>, vector<256x128xbf16>
    %c0_128 = arith.constant 0 : index
    %c0_129 = arith.constant 0 : index
    %222 = vector.load %arg12[%c0_128, %c0_129] : memref<256x64xbf16, #tpu.memory_space<vmem>>, vector<256x64xbf16>
    %c0_130 = arith.constant 0 : index
    %c0_131 = arith.constant 0 : index
    %223 = vector.load %arg13[%c0_130, %c0_131] : memref<256x1xf32, #tpu.memory_space<vmem>>, vector<256x1xf32>
    %c0_132 = arith.constant 0 : index
    %c0_133 = arith.constant 0 : index
    %224 = vector.load %arg20[%c0_132, %c0_133] : memref<384x128xbf16, #tpu.memory_space<vmem>>, vector<192x128xbf16>
    %cst_134 = arith.constant dense<0.000000e+00> : vector<128x128xf32>
    %225 = tpu.matmul %218, %224, %cst_134 {dimension_numbers = #tpu.dot_dimension_numbers<[1], [0], [0], [1], [0, 0, 1, 1], [], []>} : vector<128x192xbf16>, vector<192x128xbf16>, vector<128x128xf32> -> vector<128x128xf32>
    %226 = vector.broadcast %219 : vector<128x1xf32> to vector<128x128xf32>
    %227 = arith.addf %225, %226 : vector<128x128xf32>
    %cst_135 = arith.constant 0.000000e+00 : f32
    %228 = vector.broadcast %cst_135 : f32 to vector<128x128xf32>
    %229 = arith.maximumf %227, %228 : vector<128x128xf32>
    %c64_136 = arith.constant 64 : index
    %c0_137 = arith.constant 0 : index
    %230 = vector.load %arg20[%c64_136, %c0_137] : memref<384x128xbf16, #tpu.memory_space<vmem>>, vector<192x128xbf16>
    %cst_138 = arith.constant dense<0.000000e+00> : vector<128x128xf32>
    %231 = tpu.matmul %218, %230, %cst_138 {dimension_numbers = #tpu.dot_dimension_numbers<[1], [0], [0], [1], [0, 0, 1, 1], [], []>} : vector<128x192xbf16>, vector<192x128xbf16>, vector<128x128xf32> -> vector<128x128xf32>
    %232 = vector.broadcast %219 : vector<128x1xf32> to vector<128x128xf32>
    %233 = arith.addf %231, %232 : vector<128x128xf32>
    %cst_139 = arith.constant 0.000000e+00 : f32
    %234 = vector.broadcast %cst_139 : f32 to vector<128x128xf32>
    %235 = arith.maximumf %233, %234 : vector<128x128xf32>
    %236 = arith.maximumf %229, %235 : vector<128x128xf32>
    %237 = vector.broadcast %220 : vector<128x1xf32> to vector<128x128xf32>
    %238 = arith.addf %236, %237 : vector<128x128xf32>
    %239 = arith.truncf %238 : vector<128x128xf32> to vector<128x128xbf16>
    %cst_140 = arith.constant dense<0.000000e+00> : vector<256x128xf32>
    %240 = tpu.matmul %221, %239, %cst_140 {dimension_numbers = #tpu.dot_dimension_numbers<[1], [0], [0], [1], [0, 0, 1, 1], [], []>} : vector<256x128xbf16>, vector<128x128xbf16>, vector<256x128xf32> -> vector<256x128xf32>
    %241 = vector.broadcast %223 : vector<256x1xf32> to vector<256x128xf32>
    %242 = arith.addf %240, %241 : vector<256x128xf32>
    %243 = vector.extract_strided_slice %242 {offsets = [0, 0], sizes = [128, 128], strides = [1, 1]} : vector<256x128xf32> to vector<128x128xf32>
    %244 = arith.negf %243 : vector<128x128xf32>
    %245 = math.exp %244 : vector<128x128xf32>
    %cst_141 = arith.constant 1.000000e+00 : f32
    %246 = vector.broadcast %cst_141 : f32 to vector<128x128xf32>
    %247 = arith.addf %246, %245 : vector<128x128xf32>
    %248 = arith.divf %246, %247 : vector<128x128xf32>
    %249 = vector.extract_strided_slice %248 {offsets = [0, 0], sizes = [64, 128], strides = [1, 1]} : vector<128x128xf32> to vector<64x128xf32>
    %250 = vector.extract_strided_slice %242 {offsets = [192, 0], sizes = [64, 128], strides = [1, 1]} : vector<256x128xf32> to vector<64x128xf32>
    %251 = math.tanh %250 : vector<64x128xf32>
    %252 = arith.mulf %249, %251 : vector<64x128xf32>
    %253 = vector.extract_strided_slice %248 {offsets = [64, 0], sizes = [64, 128], strides = [1, 1]} : vector<128x128xf32> to vector<64x128xf32>
    %254 = math.tanh %252 : vector<64x128xf32>
    %255 = arith.mulf %253, %254 : vector<64x128xf32>
    %c128_142 = arith.constant 128 : index
    %c0_143 = arith.constant 0 : index
    %256 = vector.load %arg20[%c128_142, %c0_143] : memref<384x128xbf16, #tpu.memory_space<vmem>>, vector<192x128xbf16>
    %cst_144 = arith.constant dense<0.000000e+00> : vector<128x128xf32>
    %257 = tpu.matmul %218, %256, %cst_144 {dimension_numbers = #tpu.dot_dimension_numbers<[1], [0], [0], [1], [0, 0, 1, 1], [], []>} : vector<128x192xbf16>, vector<192x128xbf16>, vector<128x128xf32> -> vector<128x128xf32>
    %258 = vector.broadcast %219 : vector<128x1xf32> to vector<128x128xf32>
    %259 = arith.addf %257, %258 : vector<128x128xf32>
    %cst_145 = arith.constant 0.000000e+00 : f32
    %260 = vector.broadcast %cst_145 : f32 to vector<128x128xf32>
    %261 = arith.maximumf %259, %260 : vector<128x128xf32>
    %c192_146 = arith.constant 192 : index
    %c0_147 = arith.constant 0 : index
    %262 = vector.load %arg20[%c192_146, %c0_147] : memref<384x128xbf16, #tpu.memory_space<vmem>>, vector<192x128xbf16>
    %cst_148 = arith.constant dense<0.000000e+00> : vector<128x128xf32>
    %263 = tpu.matmul %218, %262, %cst_148 {dimension_numbers = #tpu.dot_dimension_numbers<[1], [0], [0], [1], [0, 0, 1, 1], [], []>} : vector<128x192xbf16>, vector<192x128xbf16>, vector<128x128xf32> -> vector<128x128xf32>
    %264 = vector.broadcast %219 : vector<128x1xf32> to vector<128x128xf32>
    %265 = arith.addf %263, %264 : vector<128x128xf32>
    %cst_149 = arith.constant 0.000000e+00 : f32
    %266 = vector.broadcast %cst_149 : f32 to vector<128x128xf32>
    %267 = arith.maximumf %265, %266 : vector<128x128xf32>
    %268 = arith.maximumf %261, %267 : vector<128x128xf32>
    %269 = vector.broadcast %220 : vector<128x1xf32> to vector<128x128xf32>
    %270 = arith.addf %268, %269 : vector<128x128xf32>
    %271 = arith.truncf %270 : vector<128x128xf32> to vector<128x128xbf16>
    %cst_150 = arith.constant dense<0.000000e+00> : vector<256x128xf32>
    %272 = tpu.matmul %221, %271, %cst_150 {dimension_numbers = #tpu.dot_dimension_numbers<[1], [0], [0], [1], [0, 0, 1, 1], [], []>} : vector<256x128xbf16>, vector<128x128xbf16>, vector<256x128xf32> -> vector<256x128xf32>
    %273 = arith.truncf %255 : vector<64x128xf32> to vector<64x128xbf16>
    %cst_151 = arith.constant dense<0.000000e+00> : vector<256x128xf32>
    %274 = tpu.matmul %222, %273, %cst_151 {dimension_numbers = #tpu.dot_dimension_numbers<[1], [0], [0], [1], [0, 0, 1, 1], [], []>} : vector<256x64xbf16>, vector<64x128xbf16>, vector<256x128xf32> -> vector<256x128xf32>
    %275 = arith.addf %272, %274 : vector<256x128xf32>
    %276 = vector.broadcast %223 : vector<256x1xf32> to vector<256x128xf32>
    %277 = arith.addf %275, %276 : vector<256x128xf32>
    %278 = vector.extract_strided_slice %277 {offsets = [0, 0], sizes = [192, 128], strides = [1, 1]} : vector<256x128xf32> to vector<192x128xf32>
    %279 = arith.negf %278 : vector<192x128xf32>
    %280 = math.exp %279 : vector<192x128xf32>
    %cst_152 = arith.constant 1.000000e+00 : f32
    %281 = vector.broadcast %cst_152 : f32 to vector<192x128xf32>
    %282 = arith.addf %281, %280 : vector<192x128xf32>
    %283 = arith.divf %281, %282 : vector<192x128xf32>
    %284 = vector.extract_strided_slice %283 {offsets = [128, 0], sizes = [64, 128], strides = [1, 1]} : vector<192x128xf32> to vector<64x128xf32>
    %285 = arith.mulf %284, %252 : vector<64x128xf32>
    %286 = vector.extract_strided_slice %283 {offsets = [0, 0], sizes = [64, 128], strides = [1, 1]} : vector<192x128xf32> to vector<64x128xf32>
    %287 = vector.extract_strided_slice %277 {offsets = [192, 0], sizes = [64, 128], strides = [1, 1]} : vector<256x128xf32> to vector<64x128xf32>
    %288 = math.tanh %287 : vector<64x128xf32>
    %289 = arith.mulf %286, %288 : vector<64x128xf32>
    %290 = arith.addf %285, %289 : vector<64x128xf32>
    %291 = vector.extract_strided_slice %283 {offsets = [64, 0], sizes = [64, 128], strides = [1, 1]} : vector<192x128xf32> to vector<64x128xf32>
    %292 = math.tanh %290 : vector<64x128xf32>
    %293 = arith.mulf %291, %292 : vector<64x128xf32>
    %c0_153 = arith.constant 0 : index
    %c0_154 = arith.constant 0 : index
    %294 = vector.load %arg14[%c0_153, %c0_154] : memref<64x64xbf16, #tpu.memory_space<vmem>>, vector<64x64xbf16>
    %295 = arith.truncf %293 : vector<64x128xf32> to vector<64x128xbf16>
    %cst_155 = arith.constant dense<0.000000e+00> : vector<64x128xf32>
    %296 = tpu.matmul %294, %295, %cst_155 {dimension_numbers = #tpu.dot_dimension_numbers<[1], [0], [0], [1], [0, 0, 1, 1], [], []>} : vector<64x64xbf16>, vector<64x128xbf16>, vector<64x128xf32> -> vector<64x128xf32>
    %c0_156 = arith.constant 0 : index
    %c0_157 = arith.constant 0 : index
    %297 = vector.load %arg15[%c0_156, %c0_157] : memref<64x1xf32, #tpu.memory_space<vmem>>, vector<64x1xf32>
    %298 = vector.broadcast %297 : vector<64x1xf32> to vector<64x128xf32>
    %299 = arith.addf %296, %298 : vector<64x128xf32>
    %cst_158 = arith.constant 0.000000e+00 : f32
    %300 = vector.broadcast %cst_158 : f32 to vector<64x128xf32>
    %301 = arith.maximumf %299, %300 : vector<64x128xf32>
    %c0_159 = arith.constant 0 : index
    %c0_160 = arith.constant 0 : index
    %302 = vector.load %arg16[%c0_159, %c0_160] : memref<3x64xbf16, #tpu.memory_space<vmem>>, vector<3x64xbf16>
    %303 = arith.truncf %301 : vector<64x128xf32> to vector<64x128xbf16>
    %cst_161 = arith.constant dense<0.000000e+00> : vector<3x128xf32>
    %304 = tpu.matmul %302, %303, %cst_161 {dimension_numbers = #tpu.dot_dimension_numbers<[1], [0], [0], [1], [0, 0, 1, 1], [], []>} : vector<3x64xbf16>, vector<64x128xbf16>, vector<3x128xf32> -> vector<3x128xf32>
    %c0_162 = arith.constant 0 : index
    %c0_163 = arith.constant 0 : index
    %305 = vector.load %arg17[%c0_162, %c0_163] : memref<3x1xf32, #tpu.memory_space<vmem>>, vector<3x1xf32>
    %306 = vector.broadcast %305 : vector<3x1xf32> to vector<3x128xf32>
    %307 = arith.addf %304, %306 : vector<3x128xf32>
    %c0_164 = arith.constant 0 : index
    %c0_165 = arith.constant 0 : index
    %308 = vector.load %arg18[%c0_164, %c0_165] : memref<3x128xf32, #tpu.memory_space<vmem>>, vector<3x128xf32>
    tpu.vector_store %arg18[%c0_164, %c0_165], %307 {strides = array<i32>} : memref<3x128xf32, #tpu.memory_space<vmem>>, vector<3x128xf32>,
    return
  }
  func.func @transform_0(%arg0: i32) -> (i32, i32) {
    %c0_i32 = arith.constant 0 : i32
    %c0_i32_0 = arith.constant 0 : i32
    return %c0_i32, %arg0 : i32, i32
  }
  func.func @transform_1(%arg0: i32) -> (i32, i32) {
    %c0_i32 = arith.constant 0 : i32
    %c0_i32_0 = arith.constant 0 : i32
    %c0_i32_1 = arith.constant 0 : i32
    return %c0_i32, %c0_i32_0 : i32, i32
  }
  func.func @transform_2(%arg0: i32) -> (i32, i32) {
    %c0_i32 = arith.constant 0 : i32
    %c0_i32_0 = arith.constant 0 : i32
    %c0_i32_1 = arith.constant 0 : i32
    return %c0_i32, %c0_i32_0 : i32, i32
  }
  func.func @transform_3(%arg0: i32) -> (i32, i32) {
    %c0_i32 = arith.constant 0 : i32
    %c0_i32_0 = arith.constant 0 : i32
    %c0_i32_1 = arith.constant 0 : i32
    return %c0_i32, %c0_i32_0 : i32, i32
  }
  func.func @transform_4(%arg0: i32) -> (i32, i32) {
    %c0_i32 = arith.constant 0 : i32
    %c0_i32_0 = arith.constant 0 : i32
    %c0_i32_1 = arith.constant 0 : i32
    return %c0_i32, %c0_i32_0 : i32, i32
  }
  func.func @transform_5(%arg0: i32) -> (i32, i32) {
    %c0_i32 = arith.constant 0 : i32
    %c0_i32_0 = arith.constant 0 : i32
    %c0_i32_1 = arith.constant 0 : i32
    return %c0_i32, %c0_i32_0 : i32, i32
  }
  func.func @transform_6(%arg0: i32) -> (i32, i32) {
    %c0_i32 = arith.constant 0 : i32
    %c0_i32_0 = arith.constant 0 : i32
    %c0_i32_1 = arith.constant 0 : i32
    return %c0_i32, %c0_i32_0 : i32, i32
  }
  func.func @transform_7(%arg0: i32) -> (i32, i32) {
    %c0_i32 = arith.constant 0 : i32
    %c0_i32_0 = arith.constant 0 : i32
    %c0_i32_1 = arith.constant 0 : i32
    return %c0_i32, %c0_i32_0 : i32, i32
  }
  func.func @transform_8(%arg0: i32) -> (i32, i32) {
    %c0_i32 = arith.constant 0 : i32
    %c0_i32_0 = arith.constant 0 : i32
    %c0_i32_1 = arith.constant 0 : i32
    return %c0_i32, %c0_i32_0 : i32, i32
  }
  func.func @transform_9(%arg0: i32) -> (i32, i32) {
    %c0_i32 = arith.constant 0 : i32
    %c0_i32_0 = arith.constant 0 : i32
    %c0_i32_1 = arith.constant 0 : i32
    return %c0_i32, %c0_i32_0 : i32, i32
  }
  func.func @transform_10(%arg0: i32) -> (i32, i32) {
    %c0_i32 = arith.constant 0 : i32
    %c0_i32_0 = arith.constant 0 : i32
    %c0_i32_1 = arith.constant 0 : i32
    return %c0_i32, %c0_i32_0 : i32, i32
  }
  func.func @transform_11(%arg0: i32) -> (i32, i32) {
    %c0_i32 = arith.constant 0 : i32
    %c0_i32_0 = arith.constant 0 : i32
    %c0_i32_1 = arith.constant 0 : i32
    return %c0_i32, %c0_i32_0 : i32, i32
  }
  func.func @transform_12(%arg0: i32) -> (i32, i32) {
    %c0_i32 = arith.constant 0 : i32
    %c0_i32_0 = arith.constant 0 : i32
    %c0_i32_1 = arith.constant 0 : i32
    return %c0_i32, %c0_i32_0 : i32, i32
  }
  func.func @transform_13(%arg0: i32) -> (i32, i32) {
    %c0_i32 = arith.constant 0 : i32
    %c0_i32_0 = arith.constant 0 : i32
    %c0_i32_1 = arith.constant 0 : i32
    return %c0_i32, %c0_i32_0 : i32, i32
  }
  func.func @transform_14(%arg0: i32) -> (i32, i32) {
    %c0_i32 = arith.constant 0 : i32
    %c0_i32_0 = arith.constant 0 : i32
    %c0_i32_1 = arith.constant 0 : i32
    return %c0_i32, %c0_i32_0 : i32, i32
  }
  func.func @transform_15(%arg0: i32) -> (i32, i32) {
    %c0_i32 = arith.constant 0 : i32
    %c0_i32_0 = arith.constant 0 : i32
    %c0_i32_1 = arith.constant 0 : i32
    return %c0_i32, %c0_i32_0 : i32, i32
  }
  func.func @transform_16(%arg0: i32) -> (i32, i32) {
    %c0_i32 = arith.constant 0 : i32
    %c0_i32_0 = arith.constant 0 : i32
    %c0_i32_1 = arith.constant 0 : i32
    return %c0_i32, %c0_i32_0 : i32, i32
  }
  func.func @transform_17(%arg0: i32) -> (i32, i32) {
    %c0_i32 = arith.constant 0 : i32
    %c0_i32_0 = arith.constant 0 : i32
    return %c0_i32, %arg0 : i32, i32
  }
}

</mosaic_0001>

<bundles_post_ra>
// kernel: tpu_custom_call.1
= control target key start
LH: loop header
LB: loop body
LE: loop exit
PB: predicated region body
PF: predicated region fallthrough
CT: control target
= control target key end

     0   :  { %s9585_s0 = inlined_call_operand.vmem [shape: f32[128,128], index: 0, kind: input, shape index: {}]   ;;  %s9586_s1 = inlined_call_operand.vmem [shape: f32[32,8], index: 1, kind: input, shape index: {}]   ;;  %s9587_s2 = inlined_call_operand.vmem [shape: f32[32,1], index: 2, kind: input, shape index: {}]   ;;  %s9588_s3 = inlined_call_operand.vmem [shape: f32[32,1], index: 3, kind: input, shape index: {}]   ;;  %s9589_s4 = inlined_call_operand.vmem [shape: bf16[64,96], index: 4, kind: input, shape index: {}]   ;;  %s9590_s5 = inlined_call_operand.vmem [shape: f32[64,1], index: 5, kind: input, shape index: {}]   ;;  %s9591_s6 = inlined_call_operand.vmem [shape: f32[64,1], index: 6, kind: input, shape index: {}]   ;;  %s9592_s7 = inlined_call_operand.vmem [shape: bf16[128,192], index: 7, kind: input, shape index: {}]   ;;  %s9593_s8 = inlined_call_operand.vmem [shape: f32[128,1], index: 8, kind: input, shape index: {}]   ;;  %s9594_s9 = inlined_call_operand.vmem [shape: f32[128,1], index: 9, kind: input, shape index: {}]   ;;  %s9595_s10 = inlined_call_operand.vmem [shape: bf16[256,128], index: 10, kind: input, shape index: {}]   ;;  %s9596_s11 = inlined_call_operand.vmem [shape: bf16[256,64], index: 11, kind: input, shape index: {}]   ;;  %s9597_s12 = inlined_call_operand.vmem [shape: f32[256,1], index: 12, kind: input, shape index: {}]   ;;  %s9598_s13 = inlined_call_operand.vmem [shape: bf16[64,64], index: 13, kind: input, shape index: {}]   ;;  %s9599_s14 = inlined_call_operand.vmem [shape: f32[64,1], index: 14, kind: input, shape index: {}]   ;;  %s9600_s15 = inlined_call_operand.vmem [shape: bf16[3,64], index: 15, kind: input, shape index: {}]   ;;  %s9601_s16 = inlined_call_operand.vmem [shape: f32[3,1], index: 16, kind: input, shape index: {}]   ;;  %s9602_s17 = inlined_call_operand.hbm [shape: f32[3,128], index: 17, kind: output, shape index: {}]  }
   0x1   :  { %9669 = sst [smem:[#allocation58_spill]] %s9585_s0 }
   0x2   :  { %9670 = sst [smem:[#allocation59_spill]] %s9586_s1 }
   0x3   :  { %s9671_s26 = sld [smem:[#allocation58_spill]]  ;;  %v9605_v2 = vmov 0   ;;  %v64_v3 = vld [vmem:[%s9587_s2 + $0x10] sm:$0xff]  ;;  %v62_v4 = vld [vmem:[%s9587_s2] sm:$0xff]  ;;  %vm99_vm0 = vcmask 64512   ;;  %v65_v10 = vld [vmem:[%s9587_s2 + $0x18] sm:$0xff] }
   0x4   :  { %70 = vst [vmem:[#allocation2] sm:$0xf] %v9605_v2  ;;  %71 = vst [vmem:[#allocation2 + $0x4] sm:$0xf] %v9605_v2  ;;  %7267 = vset.pattern.permute.xlu1 %v9605_v2  ;;  %7266 = vset.pattern.permute.xlu0 %v9605_v2  ;;  %s9672_s20 = sld [smem:[#allocation59_spill]]  ;;  %v63_v11 = vld [vmem:[%s9587_s2 + $0x8] sm:$0xff] }
   0x5   :  { %72 = vst [vmem:[#allocation2 + $0x8] sm:$0xf] %v9605_v2  ;;  %73 = vst [vmem:[#allocation2 + $0xc] sm:$0xf] %v9605_v2  ;;  %91 = vperm.xlu0 %7266, %v64_v3   ;;  %81 = vperm.xlu1 %7267, %v62_v4   ;;  %v68_v12 = vld [vmem:[%s9588_s3 + $0x10] sm:$0xff]  ;;  %v69_v13 = vld [vmem:[%s9588_s3 + $0x18] sm:$0xff] }
   0x6   :  { %74 = vst [vmem:[#allocation2 + $0x90] sm:$0xf] %v9605_v2  ;;  %75 = vst [vmem:[#allocation2 + $0x94] sm:$0xf] %v9605_v2  ;;  %v66_v16 = vld [vmem:[%s9588_s3] sm:$0xff]  ;;  %v67_v17 = vld [vmem:[%s9588_s3 + $0x8] sm:$0xff] }
   0x7   :  { %76 = vst [vmem:[#allocation2 + $0x98] sm:$0xf] %v9605_v2  ;;  %77 = vst [vmem:[#allocation2 + $0x9c] sm:$0xf] %v9605_v2  ;;  %v1809_v18 = vld [vmem:[%s9590_s5 + $0x30] sm:$0xff]  ;;  %v1810_v19 = vld [vmem:[%s9590_s5 + $0x38] sm:$0xff] }
   0x8   :  { %1819 = vst [vmem:[#allocation3] sm:$0xf] %v9605_v2  ;;  %1820 = vst [vmem:[#allocation3 + $0x4] sm:$0xf] %v9605_v2  ;;  %v1807_v22 = vld [vmem:[%s9590_s5 + $0x20] sm:$0xff]  ;;  %v1808_v23 = vld [vmem:[%s9590_s5 + $0x28] sm:$0xff] }
   0x9   :  { %v78_v0 = vld [vmem:[%s9671_s26] sm:$0xff]  ;;  %v7780_v1 = vld [vmem:[%s9671_s26 + $0x8] sm:$0xff]  ;;  %1821 = vst [vmem:[#allocation3 + $0x8] sm:$0xf] %v9605_v2  ;;  %1822 = vst [vmem:[#allocation3 + $0xc] sm:$0xf] %v9605_v2  ;;  %96 = vperm.xlu0 %7266, %v65_v10   ;;  %86 = vperm.xlu1 %7267, %v63_v11  }
   0xa   :  { %6808 = vmatprep.subr.mxu0 %v78_v0  ;;  %7260 = vmatprep.subr.mxu1 %v7780_v1  ;;  %1823 = vst [vmem:[#allocation3 + $0x10] sm:$0xf] %v9605_v2  ;;  %1824 = vst [vmem:[#allocation3 + $0x14] sm:$0xf] %v9605_v2  ;;  %v7818_v5 = vld [vmem:[%s9672_s20] sm:$0xff]  ;;  %v7823_v6 = vld [vmem:[%s9672_s20 + $0x10] sm:$0xff] }
   0xb   :  { %1825 = vst [vmem:[#allocation3 + $0x18] sm:$0xf] %v9605_v2  ;;  %1826 = vst [vmem:[#allocation3 + $0x1c] sm:$0xf] %v9605_v2  ;;  %6809 = vmatpush3.msra.mxu0 %v78_v0  ;;  %7261 = vmatpush3.msra.mxu1 %v7780_v1  ;;  %v7829_v7 = vld [vmem:[%s9672_s20 + $0x8] sm:$0xff]  ;;  %v7834_v8 = vld [vmem:[%s9672_s20 + $0x18] sm:$0xff] }
   0xc   :  { %1827 = vst [vmem:[#allocation3 + $0xa0] sm:$0xf] %v9605_v2  ;;  %1828 = vst [vmem:[#allocation3 + $0xa4] sm:$0xf] %v9605_v2  ;;  %v429_v9 = vld [vmem:[%s9671_s26 + $0x18] sm:$0xff]  ;;  %6810 = vmatprep.mubr.msk.f32.mxu0 %vm99_vm0, %v7818_v5  ;;  %6821 = vmatprep.mubr.msk.f32.mxu1 %vm99_vm0, %v7823_v6  ;;  %v339_v14 = vld [vmem:[%s9671_s26 + $0x10] sm:$0xff] }
   0xd   :  { %1829 = vst [vmem:[#allocation3 + $0xa8] sm:$0xf] %v9605_v2  ;;  %1830 = vst [vmem:[#allocation3 + $0xac] sm:$0xf] %v9605_v2  ;;  %6811 = vmatmul.mubr.msk.f32.vlgmr.msra.gmra.mxu0 %vm99_vm0, %v7829_v7  ;;  %6822 = vmatmul.mubr.msk.f32.vlgmr.msra.gmra.mxu1 %vm99_vm0, %v7834_v8  ;;  %v637_v15 = vld [vmem:[%s9671_s26 + $0x28] sm:$0xff]  ;;  %v547_v20 = vld [vmem:[%s9671_s26 + $0x20] sm:$0xff] }
   0xe   :  { %1831 = vst [vmem:[#allocation3 + $0xb0] sm:$0xf] %v9605_v2  ;;  %1832 = vst [vmem:[#allocation3 + $0xb4] sm:$0xf] %v9605_v2  ;;  %6832 = vmatprep.subr.mxu1 %v429_v9  ;;  %6813 = vmatprep.mubr.msk.f32.mxu0 %vm99_vm0, %v7823_v6  ;;  %v845_v21 = vld [vmem:[%s9671_s26 + $0x38] sm:$0xff]  ;;  %v1817_v24 = vld [vmem:[%s9591_s6 + $0x30] sm:$0xff] }
   0xf   :  { %1833 = vst [vmem:[#allocation3 + $0xb8] sm:$0xf] %v9605_v2  ;;  %1834 = vst [vmem:[#allocation3 + $0xbc] sm:$0xf] %v9605_v2  ;;  %6833 = vmatpush3.msra.mxu1 %v429_v9  ;;  %6834 = vmatprep.mubr.msk.f32.mxu1 %vm99_vm0, %v7818_v5  ;;  %v1818_v25 = vld [vmem:[%s9591_s6 + $0x38] sm:$0xff]  ;;  %v755_v26 = vld [vmem:[%s9671_s26 + $0x30] sm:$0xff] }
  0x10   :  { %6816 = vmatprep.subr.mxu0 %v7780_v1  ;;  %307 = vperm.xlu0 %7266, %v68_v12   ;;  %v1053_v27 = vld [vmem:[%s9671_s26 + $0x48] sm:$0xff]  ;;  %v1805_v28 = vld [vmem:[%s9590_s5 + $0x10] sm:$0xff]  ;;  %v1806_v29 = vld [vmem:[%s9590_s5 + $0x18] sm:$0xff] }
  0x11   :  { %6814 = vmatmul.mubr.msk.f32.gmra.mxu0 %vm99_vm0, %v7834_v8  ;;  %6835 = vmatmul.mubr.msk.f32.vlgmr.msra.gmra.mxu1 %vm99_vm0, %v7829_v7  ;;  %v1815_v30 = vld [vmem:[%s9591_s6 + $0x20] sm:$0xff]  ;;  %v1816_v31 = vld [vmem:[%s9591_s6 + $0x28] sm:$0xff]  ;;  %v1261_v33 = vld [vmem:[%s9671_s26 + $0x58] sm:$0xff] }
  0x12   :  { %6818 = vmatprep.mubr.msk.f32.mxu0 %vm99_vm0, %v7818_v5  ;;  %312 = vperm.xlu1 %7267, %v69_v13   ;;  %v963_v32 = vld [vmem:[%s9671_s26 + $0x40] sm:$0xff]  ;;  %v1804_v35 = vld [vmem:[%s9590_s5 + $0x8] sm:$0xff]  ;;  %v1813_v36 = vld [vmem:[%s9591_s6 + $0x10] sm:$0xff] }
  0x13   :  { %6817 = vmatpush3.msra.mxu0 %v7780_v1  ;;  %6837 = vmatprep.mubr.msk.f32.mxu1 %vm99_vm0, %v7823_v6  ;;  %v1803_v34 = vld [vmem:[%s9590_s5] sm:$0xff]  ;;  %v1814_v37 = vld [vmem:[%s9591_s6 + $0x18] sm:$0xff]  ;;  %v1171_v38 = vld [vmem:[%s9671_s26 + $0x50] sm:$0xff] }
  0x14   :  { %6824 = vmatprep.subr.mxu0 %v339_v14  ;;  %6848 = vmatprep.subr.mxu1 %v637_v15  ;;  %v1469_v39 = vld [vmem:[%s9671_s26 + $0x68] sm:$0xff]  ;;  %v1811_v40 = vld [vmem:[%s9591_s6] sm:$0xff]  ;;  %v3170_v42 = vld [vmem:[%s9593_s8 + $0x70] sm:$0xff] }
  0x15   :  { %6819 = vmatmul.mubr.msk.f32.vlgmr.msra.gmra.mxu0 %vm99_vm0, %v7829_v7  ;;  %6838 = vmatmul.mubr.msk.f32.gmra.mxu1 %vm99_vm0, %v7834_v8  ;;  %v1812_v41 = vld [vmem:[%s9591_s6 + $0x8] sm:$0xff]  ;;  %v3171_v43 = vld [vmem:[%s9593_s8 + $0x78] sm:$0xff]  ;;  %v1379_v44 = vld [vmem:[%s9671_s26 + $0x60] sm:$0xff] }
  0x16   :  { %297 = vperm.xlu0 %7266, %v66_v16   ;;  %302 = vperm.xlu1 %7267, %v67_v17   ;;  %v1677_v45 = vld [vmem:[%s9671_s26 + $0x78] sm:$0xff]  ;;  %v3168_v46 = vld [vmem:[%s9593_s8 + $0x60] sm:$0xff]  ;;  %v3169_v47 = vld [vmem:[%s9593_s8 + $0x68] sm:$0xff] }
  0x17   :  { %6825 = vmatpush3.msra.mxu0 %v339_v14  ;;  %6826 = vmatprep.mubr.msk.f32.mxu0 %vm99_vm0, %v7818_v5  ;;  %v3186_v48 = vld [vmem:[%s9594_s9 + $0x70] sm:$0xff]  ;;  %v3187_v49 = vld [vmem:[%s9594_s9 + $0x78] sm:$0xff]  ;;  %v3184_v53 = vld [vmem:[%s9594_s9 + $0x60] sm:$0xff] }
  0x18   :  { %6849 = vmatpush3.msra.mxu1 %v637_v15  ;;  %6850 = vmatprep.mubr.msk.f32.mxu1 %vm99_vm0, %v7818_v5  ;;  %v1587_v50 = vld [vmem:[%s9671_s26 + $0x70] sm:$0xff]  ;;  %v3167_v52 = vld [vmem:[%s9593_s8 + $0x58] sm:$0xff]  ;;  %v3185_v54 = vld [vmem:[%s9594_s9 + $0x68] sm:$0xff] }
  0x19   :  { %6827 = vmatmul.mubr.msk.f32.vlgmr.msra.gmra.mxu0 %vm99_vm0, %v7829_v7  ;;  %6851 = vmatmul.mubr.msk.f32.vlgmr.msra.gmra.mxu1 %vm99_vm0, %v7829_v7  ;;  %v3166_v51 = vld [vmem:[%s9593_s8 + $0x50] sm:$0xff]  ;;  %v3164_v55 = vld [vmem:[%s9593_s8 + $0x40] sm:$0xff]  ;;  %v3165_v56 = vld [vmem:[%s9593_s8 + $0x48] sm:$0xff] }
  0x1a   :  { %1879 = vperm.xlu0 %7266, %v1809_v18   ;;  %1884 = vperm.xlu1 %7267, %v1810_v19   ;;  %v3182_v57 = vld [vmem:[%s9594_s9 + $0x50] sm:$0xff]  ;;  %v3183_v58 = vld [vmem:[%s9594_s9 + $0x58] sm:$0xff] }
  0x1b   :  { %6829 = vmatprep.mubr.msk.f32.mxu0 %vm99_vm0, %v7823_v6  ;;  %6853 = vmatprep.mubr.msk.f32.mxu1 %vm99_vm0, %v7823_v6  ;;  %v3162_v59 = vld [vmem:[%s9593_s8 + $0x30] sm:$0xff]  ;;  %v3163_v60 = vld [vmem:[%s9593_s8 + $0x38] sm:$0xff] }
  0x1c   :  { %6840 = vmatprep.subr.mxu0 %v547_v20  ;;  %6864 = vmatprep.subr.mxu1 %v845_v21 }
  0x1d   :  { %6830 = vmatmul.mubr.msk.f32.gmra.mxu0 %vm99_vm0, %v7834_v8  ;;  %6854 = vmatmul.mubr.msk.f32.gmra.mxu1 %vm99_vm0, %v7834_v8 }
  0x1e   :  { %1869 = vperm.xlu0 %7266, %v1807_v22   ;;  %1874 = vperm.xlu1 %7267, %v1808_v23  }
  0x1f   :  { %6841 = vmatpush3.msra.mxu0 %v547_v20  ;;  %6842 = vmatprep.mubr.msk.f32.mxu0 %vm99_vm0, %v7818_v5 }
  0x20   :  { %6865 = vmatpush3.msra.mxu1 %v845_v21  ;;  %6866 = vmatprep.mubr.msk.f32.mxu1 %vm99_vm0, %v7818_v5 }
  0x21   :  { %6843 = vmatmul.mubr.msk.f32.vlgmr.msra.gmra.mxu0 %vm99_vm0, %v7829_v7  ;;  %6867 = vmatmul.mubr.msk.f32.vlgmr.msra.gmra.mxu1 %vm99_vm0, %v7829_v7 }
  0x22   :  { %2190 = vperm.xlu0 %7266, %v1817_v24   ;;  %2195 = vperm.xlu1 %7267, %v1818_v25  }
  0x23   :  { %6845 = vmatprep.mubr.msk.f32.mxu0 %vm99_vm0, %v7823_v6  ;;  %6869 = vmatprep.mubr.msk.f32.mxu1 %vm99_vm0, %v7823_v6 }
  0x24   :  { %6856 = vmatprep.subr.mxu0 %v755_v26  ;;  %6880 = vmatprep.subr.mxu1 %v1053_v27 }
  0x25   :  { %6846 = vmatmul.mubr.msk.f32.gmra.mxu0 %vm99_vm0, %v7834_v8  ;;  %6870 = vmatmul.mubr.msk.f32.gmra.mxu1 %vm99_vm0, %v7834_v8 }
  0x26   :  { %1859 = vperm.xlu0 %7266, %v1805_v28   ;;  %1864 = vperm.xlu1 %7267, %v1806_v29  }
  0x27   :  { %6857 = vmatpush3.msra.mxu0 %v755_v26  ;;  %6858 = vmatprep.mubr.msk.f32.mxu0 %vm99_vm0, %v7818_v5 }
  0x28   :  { %6881 = vmatpush3.msra.mxu1 %v1053_v27  ;;  %6882 = vmatprep.mubr.msk.f32.mxu1 %vm99_vm0, %v7818_v5 }
  0x29   :  { %6859 = vmatmul.mubr.msk.f32.vlgmr.msra.gmra.mxu0 %vm99_vm0, %v7829_v7  ;;  %6883 = vmatmul.mubr.msk.f32.vlgmr.msra.gmra.mxu1 %vm99_vm0, %v7829_v7 }
  0x2a   :  { %2180 = vperm.xlu0 %7266, %v1815_v30   ;;  %2185 = vperm.xlu1 %7267, %v1816_v31  }
  0x2b   :  { %6861 = vmatprep.mubr.msk.f32.mxu0 %vm99_vm0, %v7823_v6  ;;  %6885 = vmatprep.mubr.msk.f32.mxu1 %vm99_vm0, %v7823_v6 }
  0x2c   :  { %6872 = vmatprep.subr.mxu0 %v963_v32  ;;  %6896 = vmatprep.subr.mxu1 %v1261_v33 }
  0x2d   :  { %6862 = vmatmul.mubr.msk.f32.gmra.mxu0 %vm99_vm0, %v7834_v8  ;;  %6886 = vmatmul.mubr.msk.f32.gmra.mxu1 %vm99_vm0, %v7834_v8 }
  0x2e   :  { %1849 = vperm.xlu0 %7266, %v1803_v34   ;;  %1854 = vperm.xlu1 %7267, %v1804_v35  }
  0x2f   :  { %6873 = vmatpush3.msra.mxu0 %v963_v32  ;;  %6874 = vmatprep.mubr.msk.f32.mxu0 %vm99_vm0, %v7818_v5 }
  0x30   :  { %6897 = vmatpush3.msra.mxu1 %v1261_v33  ;;  %6898 = vmatprep.mubr.msk.f32.mxu1 %vm99_vm0, %v7818_v5 }
  0x31   :  { %6875 = vmatmul.mubr.msk.f32.vlgmr.msra.gmra.mxu0 %vm99_vm0, %v7829_v7  ;;  %6899 = vmatmul.mubr.msk.f32.vlgmr.msra.gmra.mxu1 %vm99_vm0, %v7829_v7 }
  0x32   :  { %2170 = vperm.xlu0 %7266, %v1813_v36   ;;  %2175 = vperm.xlu1 %7267, %v1814_v37  }
  0x33   :  { %6877 = vmatprep.mubr.msk.f32.mxu0 %vm99_vm0, %v7823_v6  ;;  %6901 = vmatprep.mubr.msk.f32.mxu1 %vm99_vm0, %v7823_v6 }
  0x34   :  { %6888 = vmatprep.subr.mxu0 %v1171_v38  ;;  %6912 = vmatprep.subr.mxu1 %v1469_v39 }
  0x35   :  { %6878 = vmatmul.mubr.msk.f32.gmra.mxu0 %vm99_vm0, %v7834_v8  ;;  %6902 = vmatmul.mubr.msk.f32.gmra.mxu1 %vm99_vm0, %v7834_v8 }
  0x36   :  { %2160 = vperm.xlu0 %7266, %v1811_v40   ;;  %2165 = vperm.xlu1 %7267, %v1812_v41  }
  0x37   :  { %6889 = vmatpush3.msra.mxu0 %v1171_v38  ;;  %6890 = vmatprep.mubr.msk.f32.mxu0 %vm99_vm0, %v7818_v5 }
  0x38   :  { %6913 = vmatpush3.msra.mxu1 %v1469_v39  ;;  %6914 = vmatprep.mubr.msk.f32.mxu1 %vm99_vm0, %v7818_v5 }
  0x39   :  { %6891 = vmatmul.mubr.msk.f32.vlgmr.msra.gmra.mxu0 %vm99_vm0, %v7829_v7  ;;  %6915 = vmatmul.mubr.msk.f32.vlgmr.msra.gmra.mxu1 %vm99_vm0, %v7829_v7 }
  0x3a   :  { %3380 = vperm.xlu0 %7266, %v3170_v42   ;;  %3385 = vperm.xlu1 %7267, %v3171_v43  }
  0x3b   :  { %6893 = vmatprep.mubr.msk.f32.mxu0 %vm99_vm0, %v7823_v6  ;;  %6917 = vmatprep.mubr.msk.f32.mxu1 %vm99_vm0, %v7823_v6 }
  0x3c   :  { %6904 = vmatprep.subr.mxu0 %v1379_v44  ;;  %6928 = vmatprep.subr.mxu1 %v1677_v45 }
  0x3d   :  { %6894 = vmatmul.mubr.msk.f32.gmra.mxu0 %vm99_vm0, %v7834_v8  ;;  %6918 = vmatmul.mubr.msk.f32.gmra.mxu1 %vm99_vm0, %v7834_v8 }
  0x3e   :  { %3370 = vperm.xlu0 %7266, %v3168_v46   ;;  %3375 = vperm.xlu1 %7267, %v3169_v47  }
  0x3f   :  { %6905 = vmatpush3.msra.mxu0 %v1379_v44  ;;  %6906 = vmatprep.mubr.msk.f32.mxu0 %vm99_vm0, %v7818_v5 }
  0x40   :  { %6929 = vmatpush3.msra.mxu1 %v1677_v45  ;;  %6930 = vmatprep.mubr.msk.f32.mxu1 %vm99_vm0, %v7818_v5 }
  0x41   :  { %6907 = vmatmul.mubr.msk.f32.vlgmr.msra.gmra.mxu0 %vm99_vm0, %v7829_v7  ;;  %6931 = vmatmul.mubr.msk.f32.vlgmr.msra.gmra.mxu1 %vm99_vm0, %v7829_v7 }
  0x42   :  { %3967 = vperm.xlu0 %7266, %v3186_v48   ;;  %3972 = vperm.xlu1 %7267, %v3187_v49  }
  0x43   :  { %6909 = vmatprep.mubr.msk.f32.mxu0 %vm99_vm0, %v7823_v6  ;;  %6933 = vmatprep.mubr.msk.f32.mxu1 %vm99_vm0, %v7823_v6 }
  0x44   :  { %6920 = vmatprep.subr.mxu0 %v1587_v50 }
  0x45   :  { %6910 = vmatmul.mubr.msk.f32.gmra.mxu0 %vm99_vm0, %v7834_v8  ;;  %6934 = vmatmul.mubr.msk.f32.gmra.mxu1 %vm99_vm0, %v7834_v8 }
  0x46   :  { %3360 = vperm.xlu0 %7266, %v3166_v51   ;;  %3365 = vperm.xlu1 %7267, %v3167_v52  }
  0x47   :  { %6921 = vmatpush3.msra.mxu0 %v1587_v50  ;;  %6922 = vmatprep.mubr.msk.f32.mxu0 %vm99_vm0, %v7818_v5 }
  0x49   :  { %6923 = vmatmul.mubr.msk.f32.vlgmr.msra.gmra.mxu0 %vm99_vm0, %v7829_v7 }
  0x4a   :  { %3957 = vperm.xlu0 %7266, %v3184_v53   ;;  %3962 = vperm.xlu1 %7267, %v3185_v54  }
  0x4b   :  { %6925 = vmatprep.mubr.msk.f32.mxu0 %vm99_vm0, %v7823_v6 }
  0x4d   :  { %6926 = vmatmul.mubr.msk.f32.gmra.mxu0 %vm99_vm0, %v7834_v8 }
  0x4e   :  { %3350 = vperm.xlu0 %7266, %v3164_v55   ;;  %3355 = vperm.xlu1 %7267, %v3165_v56  }
  0x52   :  { %3947 = vperm.xlu0 %7266, %v3182_v57   ;;  %3952 = vperm.xlu1 %7267, %v3183_v58  }
  0x53   :  { %22 = vsyncpa [#allocation5], 0  ;;  %v3180_v61 = vld [vmem:[%s9594_s9 + $0x40] sm:$0xff]  ;;  %v3181_v62 = vld [vmem:[%s9594_s9 + $0x48] sm:$0xff]  ;;  %vm1943_vm1 = vcmask 785408   ;;  %vm3532_vm2 = vcmask 523264  }
  0x54   :  { %v3160_v63 = vld [vmem:[%s9593_s8 + $0x20] sm:$0xff]  ;;  %v3161_v0 = vld [vmem:[%s9593_s8 + $0x28] sm:$0xff]  ;;  %v3178_v1 = vld [vmem:[%s9594_s9 + $0x30] sm:$0xff]  ;;  %vm7682_vm3 = vmmov 0   ;;  %s7683_s1 = smov [#allocation4]  }
  0x55   :  { %v3179_v3 = vld [vmem:[%s9594_s9 + $0x38] sm:$0xff]  ;;  %v3158_v4 = vld [vmem:[%s9593_s8 + $0x10] sm:$0xff]  ;;  %v3176_v6 = vld [vmem:[%s9594_s9 + $0x20] sm:$0xff]  ;;  %s5898_s20 = sshll.u32 %s7683_s1, 4  ;;  %s5899_s20 = int_to_ptr.vmem [resolvable:$true] %s5898_s20 }
  0x56   :  { %3340 = vperm.xlu0 %7266, %v3162_v59   ;;  %3345 = vperm.xlu1 %7267, %v3163_v60   ;;  %v3159_v5 = vld [vmem:[%s9593_s8 + $0x18] sm:$0xff]  ;;  %v3177_v7 = vld [vmem:[%s9594_s9 + $0x28] sm:$0xff]  ;;  %v3156_v8 = vld [vmem:[%s9593_s8] sm:$0xff]  ;;  %s7658_s5 = scalar_lea.vmem %s5899_s20, 64  ;;  %p7663_p1 = scmp.lt.s32.totalorder %s5899_s20, %s5899_s20 }
  0x57   :  { %v3157_v9 = vld [vmem:[%s9593_s8 + $0x8] sm:$0xff]  ;;  %v3174_v10 = vld [vmem:[%s9594_s9 + $0x10] sm:$0xff]  ;;  %v3175_v11 = vld [vmem:[%s9594_s9 + $0x18] sm:$0xff]  ;;  %p7659_p0 = scmp.ne.s32.totalorder %s5899_s20, %s7658_s5  ;;  %p7664_p2 = scmp.lt.s32.totalorder %s7658_s5, %s7658_s5 }
  0x58   :  { %v3172_v12 = vld [vmem:[%s9594_s9] sm:$0xff]  ;;  %v3173_v13 = vld [vmem:[%s9594_s9 + $0x8] sm:$0xff]  ;;  %v3258_v14 = vld [vmem:[%s9597_s12 + $0x30] sm:$0xff] }
  0x59   :  { %v3259_v15 = vld [vmem:[%s9597_s12 + $0x38] sm:$0xff]  ;;  %v3256_v16 = vld [vmem:[%s9597_s12 + $0x20] sm:$0xff]  ;;  %v3257_v17 = vld [vmem:[%s9597_s12 + $0x28] sm:$0xff]  ;;  %p7665_p3 = por %p7664_p2, %p7663_p1 }
  0x5a   :  { %3937 = vperm.xlu0 %7266, %v3180_v61   ;;  %3942 = vperm.xlu1 %7267, %v3181_v62   ;;  %v3254_v18 = vld [vmem:[%s9597_s12 + $0x10] sm:$0xff]  ;;  %v3255_v19 = vld [vmem:[%s9597_s12 + $0x18] sm:$0xff]  ;;  %v3252_v20 = vld [vmem:[%s9597_s12] sm:$0xff] }
  0x5b   :  { %v3253_v21 = vld [vmem:[%s9597_s12 + $0x8] sm:$0xff]  ;;  %v3266_v22 = vld [vmem:[%s9597_s12 + $0x70] sm:$0xff]  ;;  %v3267_v23 = vld [vmem:[%s9597_s12 + $0x78] sm:$0xff]  ;;  %p7666_p4 = pnand %p7665_p3, %p7659_p0 }
  0x5c   :  { %v8203_v24 = vld [vmem:[%s9589_s4] sm:$0xff]   ;;  %v3282_v25 = vld [vmem:[%s9597_s12 + $0xf0] sm:$0xff]  ;;  %v3283_v26 = vld [vmem:[%s9597_s12 + $0xf8] sm:$0xff] }
  0x5d   :  { %6948 = vmatprep.mubr.msk.bf16.mxu1 %vm1943_vm1, %v8203_v24  ;;  %6988 = vmatprep.mubr.msk.bf16.mxu0 %vm1943_vm1, %v8203_v24  ;;  %v3264_v27 = vld [vmem:[%s9597_s12 + $0x60] sm:$0xff]  ;;  %v3265_v28 = vld [vmem:[%s9597_s12 + $0x68] sm:$0xff]  ;;  %v3262_v31 = vld [vmem:[%s9597_s12 + $0x50] sm:$0xff] }
  0x5e   :  { %3330 = vperm.xlu0 %7266, %v3160_v63   ;;  %3335 = vperm.xlu1 %7267, %v3161_v0   ;;  %v3280_v29 = vld [vmem:[%s9597_s12 + $0xe0] sm:$0xff]  ;;  %v3281_v30 = vld [vmem:[%s9597_s12 + $0xe8] sm:$0xff]  ;;  %v3263_v32 = vld [vmem:[%s9597_s12 + $0x58] sm:$0xff] }
  0x5f   :  { %v3278_v33 = vld [vmem:[%s9597_s12 + $0xd0] sm:$0xff]  ;;  %v3279_v34 = vld [vmem:[%s9597_s12 + $0xd8] sm:$0xff]  ;;  %v3260_v35 = vld [vmem:[%s9597_s12 + $0x40] sm:$0xff] }
  0x60   :  { %v3261_v36 = vld [vmem:[%s9597_s12 + $0x48] sm:$0xff]  ;;  %v3276_v37 = vld [vmem:[%s9597_s12 + $0xc0] sm:$0xff]  ;;  %v3274_v39 = vld [vmem:[%s9597_s12 + $0xb0] sm:$0xff] }
  0x61   :  { %v3277_v38 = vld [vmem:[%s9597_s12 + $0xc8] sm:$0xff]  ;;  %v3275_v40 = vld [vmem:[%s9597_s12 + $0xb8] sm:$0xff]  ;;  %v3272_v41 = vld [vmem:[%s9597_s12 + $0xa0] sm:$0xff] }
  0x62   :  { %3927 = vperm.xlu0 %7266, %v3178_v1   ;;  %3932 = vperm.xlu1 %7267, %v3179_v3   ;;  %v3273_v42 = vld [vmem:[%s9597_s12 + $0xa8] sm:$0xff]  ;;  %v3270_v43 = vld [vmem:[%s9597_s12 + $0x90] sm:$0xff]  ;;  %v3271_v44 = vld [vmem:[%s9597_s12 + $0x98] sm:$0xff] }
  0x63   :  { %v3268_v45 = vld [vmem:[%s9597_s12 + $0x80] sm:$0xff]  ;;  %v3269_v46 = vld [vmem:[%s9597_s12 + $0x88] sm:$0xff]  ;;  %v5690_v47 = vld [vmem:[%s9599_s14 + $0x30] sm:$0xff] }
  0x64   :  { %v5691_v48 = vld [vmem:[%s9599_s14 + $0x38] sm:$0xff]  ;;  %v5688_v49 = vld [vmem:[%s9599_s14 + $0x20] sm:$0xff]  ;;  %v5689_v50 = vld [vmem:[%s9599_s14 + $0x28] sm:$0xff] }
  0x65   :  { %v5686_v51 = vld [vmem:[%s9599_s14 + $0x10] sm:$0xff]  ;;  %v5687_v52 = vld [vmem:[%s9599_s14 + $0x18] sm:$0xff]  ;;  %v5684_v53 = vld [vmem:[%s9599_s14] sm:$0xff] }
  0x66   :  { %3320 = vperm.xlu0 %7266, %v3158_v4   ;;  %3325 = vperm.xlu1 %7267, %v3159_v5   ;;  %v5685_v54 = vld [vmem:[%s9599_s14 + $0x8] sm:$0xff]  ;;  %v5842_v56 = vld [vmem:[%s9601_s16] sm:$0x7] }
  0x6a   :  { %3917 = vperm.xlu0 %7266, %v3176_v6   ;;  %3922 = vperm.xlu1 %7267, %v3177_v7  }
  0x6e   :  { %3310 = vperm.xlu0 %7266, %v3156_v8   ;;  %3315 = vperm.xlu1 %7267, %v3157_v9  }
  0x72   :  { %3907 = vperm.xlu0 %7266, %v3174_v10   ;;  %3912 = vperm.xlu1 %7267, %v3175_v11  }
  0x76   :  { %3897 = vperm.xlu0 %7266, %v3172_v12   ;;  %3902 = vperm.xlu1 %7267, %v3173_v13  }
  0x7a   :  { %4031 = vperm.xlu0 %7266, %v3258_v14   ;;  %4036 = vperm.xlu1 %7267, %v3259_v15  }
  0x7e   :  { %4021 = vperm.xlu0 %7266, %v3256_v16   ;;  %4026 = vperm.xlu1 %7267, %v3257_v17  }
  0x80   :  { %v8299_v55 = vpop.permute.xlu0 %91  ;;  %v8304_v57 = vpop.permute.xlu1 %81 }
  0x82   :  { %4011 = vperm.xlu0 %7266, %v3254_v18   ;;  %4016 = vperm.xlu1 %7267, %v3255_v19  }
  0x84   :  { %v8306_v58 = vpop.permute.xlu0 %96  ;;  %v8309_v0 = vpop.permute.xlu1 %86 }
  0x86   :  { %4001 = vperm.xlu0 %7266, %v3252_v20   ;;  %4006 = vperm.xlu1 %7267, %v3253_v21  }
  0x8a   :  { %4071 = vperm.xlu0 %7266, %v3266_v22   ;;  %4076 = vperm.xlu1 %7267, %v3267_v23  }
  0x8b   :  { %v8316_v16 = vpop.permute.xlu0 %307 }
  0x8d   :  { %v8318_v17 = vpop.permute.xlu1 %312 }
  0x8e   :  { %4151 = vperm.xlu0 %7266, %v3282_v25   ;;  %4156 = vperm.xlu1 %7267, %v3283_v26  }
  0x92   :  { %4061 = vperm.xlu0 %7266, %v3264_v27   ;;  %4066 = vperm.xlu1 %7267, %v3265_v28  }
  0x96   :  { %4141 = vperm.xlu0 %7266, %v3280_v29   ;;  %4146 = vperm.xlu1 %7267, %v3281_v30  }
  0x9a   :  { %4051 = vperm.xlu0 %7266, %v3262_v31   ;;  %4056 = vperm.xlu1 %7267, %v3263_v32  }
  0x9e   :  { %4131 = vperm.xlu0 %7266, %v3278_v33   ;;  %4136 = vperm.xlu1 %7267, %v3279_v34  }
  0xa2   :  { %4041 = vperm.xlu0 %7266, %v3260_v35   ;;  %4046 = vperm.xlu1 %7267, %v3261_v36  }
  0xa6   :  { %4121 = vperm.xlu0 %7266, %v3276_v37   ;;  %4126 = vperm.xlu1 %7267, %v3277_v38  }
  0xaa   :  { %4111 = vperm.xlu0 %7266, %v3274_v39   ;;  %4116 = vperm.xlu1 %7267, %v3275_v40  }
  0xae   :  { %4101 = vperm.xlu0 %7266, %v3272_v41   ;;  %4106 = vperm.xlu1 %7267, %v3273_v42  }
  0xb2   :  { %4091 = vperm.xlu0 %7266, %v3270_v43   ;;  %4096 = vperm.xlu1 %7267, %v3271_v44   ;;  %v8327_v43 = vpop.permute.xlu0 %297  ;;  %v8329_v44 = vpop.permute.xlu1 %302 }
  0xb6   :  { %4081 = vperm.xlu0 %7266, %v3268_v45   ;;  %4086 = vperm.xlu1 %7267, %v3269_v46  }
  0xba   :  { %5724 = vperm.xlu0 %7266, %v5690_v47   ;;  %5729 = vperm.xlu1 %7267, %v5691_v48  }
  0xbe   :  { %5714 = vperm.xlu0 %7266, %v5688_v49   ;;  %5719 = vperm.xlu1 %7267, %v5689_v50  }
  0xc2   :  { %5704 = vperm.xlu0 %7266, %v5686_v51   ;;  %5709 = vperm.xlu1 %7267, %v5687_v52  }
  0xc6   :  { %5694 = vperm.xlu0 %7266, %v5684_v53   ;;  %5699 = vperm.xlu1 %7267, %v5685_v54  }
  0xca   :  { %5845 = vperm.xlu0 %7266, %v5842_v56  }
  0xcd   :  { %v6812_v59 = vpop.f32.mrf.mxu0  ;;  %v6823_v60 = vpop.f32.mrf.mxu1 }
  0xce   :  { %v284_v61 = vadd.f32 %v6823_v60, %v8306_v58  ;;  %v184_v9 = vadd.f32 %v6812_v59, %v8309_v0 }
  0xcf   :  { %v178_v62 = vpop.f32.mrf.mxu0  ;;  %v278_v63 = vpop.f32.mrf.mxu1 }
  0xd0   :  { %v279_v1 = vadd.f32 %v278_v63, %v8299_v55  ;;  %v290_v5 = vmax.f32 %v284_v61, 0.0  ;;  %v179_v13 = vadd.f32 %v178_v62, %v8304_v57  ;;  %v198_v25 = vmax.f32 %v184_v9, 0.0 }
  0xd1   :  { %v6815_v3 = vpop.f32.mrf.mxu0  ;;  %v6836_v4 = vpop.f32.mrf.mxu1 }
  0xd2   :  { %v194_v6 = vadd.f32 %v6815_v3, %v8306_v58  ;;  %v289_v10 = vmax.f32 %v279_v1, 0.0  ;;  %v502_v21 = vadd.f32 %v6836_v4, %v8309_v0  ;;  %v197_v29 = vmax.f32 %v179_v13, 0.0 }
  0xd3   :  { %v188_v7 = vpop.f32.mrf.mxu0  ;;  %v496_v8 = vpop.f32.mrf.mxu1 }
  0xd4   :  { %v200_v11 = vmax.f32 %v194_v6, 0.0  ;;  %v189_v12 = vadd.f32 %v188_v7, %v8299_v55  ;;  %v516_v36 = vmax.f32 %v502_v21, 0.0  ;;  %v497_v37 = vadd.f32 %v496_v8, %v8304_v57 }
  0xd5   :  { %v6820_v14 = vpop.f32.mrf.mxu0  ;;  %v6839_v15 = vpop.f32.mrf.mxu1 }
  0xd6   :  { %v294_v18 = vmax.f32 %v200_v11, %v290_v5  ;;  %v199_v19 = vmax.f32 %v189_v12, 0.0  ;;  %v274_v20 = vadd.f32 %v6820_v14, %v8309_v0  ;;  %v512_v45 = vadd.f32 %v6839_v15, %v8306_v58 }
  0xd7   :  { %v268_v22 = vpop.f32.mrf.mxu0  ;;  %v506_v23 = vpop.f32.mrf.mxu1  ;;  %v515_v53 = vmax.f32 %v497_v37, 0.0 }
  0xd8   :  { %v293_v26 = vmax.f32 %v199_v19, %v289_v10  ;;  %v288_v27 = vmax.f32 %v274_v20, 0.0  ;;  %v269_v28 = vadd.f32 %v268_v22, %v8304_v57  ;;  %v318_v30 = vadd.f32 %v8318_v17, %v294_v18 }
  0xd9   :  { %v6828_v34 = vpop.f32.mrf.mxu0  ;;  %v6852_v35 = vpop.f32.mrf.mxu1  ;;  %v507_v50 = vadd.f32 %v506_v23, %v8299_v55  ;;  %v518_v63 = vmax.f32 %v512_v45, 0.0 }
  0xda   :  { %v317_v31 = vadd.f32 %v8316_v16, %v293_v26  ;;  %v292_v32 = vmax.f32 %v198_v25, %v288_v27  ;;  %v287_v33 = vmax.f32 %v269_v28, 0.0  ;;  %v412_v38 = vadd.f32 %v6828_v34, %v8309_v0 }
  0xdb   :  { %v406_v41 = vpop.f32.mrf.mxu0  ;;  %v704_v42 = vpop.f32.mrf.mxu1  ;;  %v517_v5 = vmax.f32 %v507_v50, 0.0  ;;  %v710_v7 = vadd.f32 %v6852_v35, %v8309_v0 }
  0xdc   :  { %v6383_v39 = vpack.c.bf16 %v318_v30, %v317_v31  ;;  %v291_v40 = vmax.f32 %v197_v29, %v287_v33  ;;  %v426_v46 = vmax.f32 %v412_v38, 0.0  ;;  %v407_v47 = vadd.f32 %v406_v41, %v8304_v57 }
  0xdd   :  { %v316_v48 = vadd.f32 %v8329_v44, %v292_v32  ;;  %v6831_v51 = vpop.f32.mrf.mxu0  ;;  %v6855_v52 = vpop.f32.mrf.mxu1  ;;  %v705_v14 = vadd.f32 %v704_v42, %v8304_v57  ;;  %v724_v22 = vmax.f32 %v710_v7, 0.0 }
  0xde   :  { %6536 = vst [vmem:[#allocation2 + $0x18] sm:$0xff] %v6383_v39   ;;  %v315_v49 = vadd.f32 %v8327_v43, %v291_v40  ;;  %v520_v54 = vmax.f32 %v426_v46, %v516_v36  ;;  %v425_v56 = vmax.f32 %v407_v47, 0.0  ;;  %v422_v59 = vadd.f32 %v6831_v51, %v8306_v58 }
  0xdf   :  { %v416_v61 = vpop.f32.mrf.mxu0  ;;  %v714_v62 = vpop.f32.mrf.mxu1  ;;  %v720_v23 = vadd.f32 %v6855_v52, %v8306_v58  ;;  %v723_v32 = vmax.f32 %v705_v14, 0.0 }
  0xe0   :  { %v6378_v60 = vpack.c.bf16 %v316_v48, %v315_v49  ;;  %v519_v1 = vmax.f32 %v425_v56, %v515_v53  ;;  %v428_v3 = vmax.f32 %v422_v59, 0.0  ;;  %v417_v4 = vadd.f32 %v416_v61, %v8299_v55 }
  0xe1   :  { %v524_v6 = vadd.f32 %v520_v54, %v8329_v44  ;;  %v6844_v8 = vpop.f32.mrf.mxu0  ;;  %v6868_v9 = vpop.f32.mrf.mxu1  ;;  %v715_v30 = vadd.f32 %v714_v62, %v8299_v55  ;;  %v726_v40 = vmax.f32 %v720_v23, 0.0 }
  0xe2   :  { %6535 = vst [vmem:[#allocation2 + $0x10] sm:$0xff] %v6378_v60   ;;  %v523_v10 = vadd.f32 %v519_v1, %v8327_v43  ;;  %v522_v11 = vmax.f32 %v428_v3, %v518_v63  ;;  %v427_v12 = vmax.f32 %v417_v4, 0.0  ;;  %v620_v13 = vadd.f32 %v6844_v8, %v8309_v0 }
  0xe3   :  { %v614_v15 = vpop.f32.mrf.mxu0  ;;  %v912_v18 = vpop.f32.mrf.mxu1  ;;  %v918_v38 = vadd.f32 %v6868_v9, %v8309_v0  ;;  %v725_v47 = vmax.f32 %v715_v30, 0.0 }
  0xe4   :  { %v6388_v19 = vpack.c.bf16 %v524_v6, %v523_v10  ;;  %v521_v20 = vmax.f32 %v427_v12, %v517_v5  ;;  %v634_v21 = vmax.f32 %v620_v13, 0.0  ;;  %v615_v25 = vadd.f32 %v614_v15, %v8304_v57 }
  0xe5   :  { %v6847_v26 = vpop.f32.mrf.mxu0  ;;  %v6871_v27 = vpop.f32.mrf.mxu1  ;;  %v526_v28 = vadd.f32 %v522_v11, %v8318_v17  ;;  %v913_v48 = vadd.f32 %v912_v18, %v8304_v57  ;;  %v932_v59 = vmax.f32 %v918_v38, 0.0 }
  0xe6   :  { %6537 = vst [vmem:[#allocation2 + $0x20] sm:$0xff] %v6388_v19   ;;  %v525_v29 = vadd.f32 %v521_v20, %v8316_v16  ;;  %v630_v31 = vadd.f32 %v6847_v26, %v8306_v58  ;;  %v728_v33 = vmax.f32 %v634_v21, %v724_v22  ;;  %v633_v34 = vmax.f32 %v615_v25, 0.0 }
  0xe7   :  { %v624_v35 = vpop.f32.mrf.mxu0  ;;  %v922_v36 = vpop.f32.mrf.mxu1  ;;  %v928_v60 = vadd.f32 %v6871_v27, %v8306_v58  ;;  %v931_v6 = vmax.f32 %v913_v48, 0.0 }
  0xe8   :  { %v6393_v37 = vpack.c.bf16 %v526_v28, %v525_v29  ;;  %v636_v39 = vmax.f32 %v630_v31, 0.0  ;;  %v727_v41 = vmax.f32 %v633_v34, %v723_v32  ;;  %v625_v42 = vadd.f32 %v624_v35, %v8299_v55 }
  0xe9   :  { %v6860_v45 = vpop.f32.mrf.mxu0  ;;  %v6884_v46 = vpop.f32.mrf.mxu1  ;;  %v732_v50 = vadd.f32 %v728_v33, %v8329_v44  ;;  %v923_v3 = vadd.f32 %v922_v36, %v8299_v55  ;;  %v934_v14 = vmax.f32 %v928_v60, 0.0 }
  0xea   :  { %6538 = vst [vmem:[#allocation2 + $0x28] sm:$0xff] %v6393_v37   ;;  %v828_v49 = vadd.f32 %v6860_v45, %v8309_v0  ;;  %v731_v51 = vadd.f32 %v727_v41, %v8327_v43  ;;  %v730_v52 = vmax.f32 %v636_v39, %v726_v40  ;;  %v635_v53 = vmax.f32 %v625_v42, 0.0 }
  0xeb   :  { %v822_v54 = vpop.f32.mrf.mxu0  ;;  %v1120_v56 = vpop.f32.mrf.mxu1  ;;  %v933_v20 = vmax.f32 %v923_v3, 0.0  ;;  %v1126_v21 = vadd.f32 %v6884_v46, %v8309_v0 }
  0xec   :  { %v842_v61 = vmax.f32 %v828_v49, 0.0  ;;  %v823_v62 = vadd.f32 %v822_v54, %v8304_v57  ;;  %v6398_v63 = vpack.c.bf16 %v732_v50, %v731_v51  ;;  %v729_v1 = vmax.f32 %v635_v53, %v725_v47 }
  0xed   :  { %v6863_v4 = vpop.f32.mrf.mxu0  ;;  %v6887_v5 = vpop.f32.mrf.mxu1  ;;  %v734_v10 = vadd.f32 %v730_v52, %v8318_v17  ;;  %v1121_v29 = vadd.f32 %v1120_v56, %v8304_v57  ;;  %v7269_v35 = vld [vmem:[#allocation2 + $0x20] sm:$0xff]   ;;  %v1140_v39 = vmax.f32 %v1126_v21, 0.0  ;;  %v7270_v56 = vld [vmem:[#allocation2 + $0x18] sm:$0xff]  }
  0xee   :  { %v936_v7 = vmax.f32 %v842_v61, %v932_v59  ;;  %v841_v8 = vmax.f32 %v823_v62, 0.0  ;;  %v838_v9 = vadd.f32 %v6863_v4, %v8306_v58  ;;  %6539 = vst [vmem:[#allocation2 + $0x30] sm:$0xff] %v6398_v63   ;;  %v733_v11 = vadd.f32 %v729_v1, %v8316_v16 }
  0xef   :  { %v832_v12 = vpop.f32.mrf.mxu0  ;;  %v1130_v13 = vpop.f32.mrf.mxu1  ;;  %v1136_v37 = vadd.f32 %v6887_v5, %v8306_v58  ;;  %v1139_v46 = vmax.f32 %v1121_v29, 0.0 }
  0xf0   :  { %v935_v15 = vmax.f32 %v841_v8, %v931_v6  ;;  %v844_v18 = vmax.f32 %v838_v9, 0.0  ;;  %v6403_v19 = vpack.c.bf16 %v734_v10, %v733_v11  ;;  %v833_v22 = vadd.f32 %v832_v12, %v8299_v55 }
  0xf1   :  { %v6876_v23 = vpop.f32.mrf.mxu0  ;;  %v6900_v25 = vpop.f32.mrf.mxu1  ;;  %v7268_v26 = vld [vmem:[#allocation2 + $0x28] sm:$0xff]   ;;  %v940_v27 = vadd.f32 %v936_v7, %v8329_v44  ;;  %v1131_v47 = vadd.f32 %v1130_v13, %v8299_v55  ;;  %v1142_v59 = vmax.f32 %v1136_v37, 0.0 }
  0xf2   :  { %v939_v28 = vadd.f32 %v935_v15, %v8327_v43  ;;  %v1036_v30 = vadd.f32 %v6876_v23, %v8309_v0  ;;  %6540 = vst [vmem:[#allocation2 + $0x38] sm:$0xff] %v6403_v19   ;;  %v938_v31 = vmax.f32 %v844_v18, %v934_v14  ;;  %v843_v32 = vmax.f32 %v833_v22, 0.0  ;;  %6936 = vmatprep.subr.bf16.mxu1 %v7268_v26  ;;  %v7271_v14 = vld [vmem:[#allocation2 + $0x10] sm:$0xff]  }
  0xf3   :  { %v1030_v33 = vpop.f32.mrf.mxu0  ;;  %v1328_v34 = vpop.f32.mrf.mxu1  ;;  %6937 = vmatpush3.bf16.msra.mxu1 %v7268_v26  ;;  %v1334_v63 = vadd.f32 %v6900_v25, %v8309_v0  ;;  %v1141_v5 = vmax.f32 %v1131_v47, 0.0  ;;  %v7272_v26 = vld [vmem:[#allocation2 + $0x8] sm:$0xff]  }
  0xf4   :  { %v6408_v36 = vpack.c.bf16 %v940_v27, %v939_v28  ;;  %v1050_v38 = vmax.f32 %v1036_v30, 0.0  ;;  %v937_v40 = vmax.f32 %v843_v32, %v933_v20  ;;  %v1031_v41 = vadd.f32 %v1030_v33, %v8304_v57  ;;  %6938 = vmatprep.subr.bf16.mxu1 %v7269_v35 }
  0xf5   :  { %v6879_v42 = vpop.f32.mrf.mxu0  ;;  %v6903_v45 = vpop.f32.mrf.mxu1  ;;  %v942_v49 = vadd.f32 %v938_v31, %v8318_v17  ;;  %v1329_v11 = vadd.f32 %v1328_v34, %v8304_v57  ;;  %v1348_v19 = vmax.f32 %v1334_v63, 0.0 }
  0xf6   :  { %6541 = vst [vmem:[#allocation2 + $0x40] sm:$0xff] %v6408_v36   ;;  %v1046_v48 = vadd.f32 %v6879_v42, %v8306_v58  ;;  %v941_v50 = vadd.f32 %v937_v40, %v8316_v16  ;;  %v1144_v51 = vmax.f32 %v1050_v38, %v1140_v39  ;;  %v1049_v52 = vmax.f32 %v1031_v41, 0.0 }
  0xf7   :  { %v1040_v53 = vpop.f32.mrf.mxu0  ;;  %v1338_v54 = vpop.f32.mrf.mxu1  ;;  %6939 = vmatpush3.bf16.msra.mxu1 %v7269_v35  ;;  %v1344_v21 = vadd.f32 %v6903_v45, %v8306_v58  ;;  %v1347_v31 = vmax.f32 %v1329_v11, 0.0 }
  0xf8   :  { %v1052_v60 = vmax.f32 %v1046_v48, 0.0  ;;  %v1041_v61 = vadd.f32 %v1040_v53, %v8299_v55  ;;  %v6413_v62 = vpack.c.bf16 %v942_v49, %v941_v50  ;;  %v1143_v1 = vmax.f32 %v1049_v52, %v1139_v46  ;;  %6940 = vmatprep.subr.bf16.mxu1 %v7270_v56  ;;  %v7275_v46 = vld [vmem:[#allocation2] sm:$0xff]  }
  0xf9   :  { %v6892_v3 = vpop.f32.mrf.mxu0  ;;  %v6916_v4 = vpop.f32.mrf.mxu1  ;;  %v1148_v9 = vadd.f32 %v1144_v51, %v8329_v44  ;;  %v1339_v29 = vadd.f32 %v1338_v54, %v8299_v55  ;;  %v1350_v39 = vmax.f32 %v1344_v21, 0.0 }
  0xfa   :  { %v1146_v6 = vmax.f32 %v1052_v60, %v1142_v59  ;;  %v1051_v7 = vmax.f32 %v1041_v61, 0.0  ;;  %v1244_v8 = vadd.f32 %v6892_v3, %v8309_v0  ;;  %6542 = vst [vmem:[#allocation2 + $0x48] sm:$0xff] %v6413_v62   ;;  %v1147_v10 = vadd.f32 %v1143_v1, %v8327_v43 }
  0xfb   :  { %v1238_v12 = vpop.f32.mrf.mxu0  ;;  %v1536_v13 = vpop.f32.mrf.mxu1  ;;  %6941 = vmatpush3.bf16.msra.mxu1 %v7270_v56  ;;  %v1542_v37 = vadd.f32 %v6916_v4, %v8309_v0  ;;  %v1349_v47 = vmax.f32 %v1339_v29, 0.0 }
  0xfc   :  { %v1145_v15 = vmax.f32 %v1051_v7, %v1141_v5  ;;  %v1258_v18 = vmax.f32 %v1244_v8, 0.0  ;;  %v6418_v20 = vpack.c.bf16 %v1148_v9, %v1147_v10  ;;  %v1239_v22 = vadd.f32 %v1238_v12, %v8304_v57  ;;  %6942 = vmatprep.subr.bf16.mxu1 %v7271_v14  ;;  %v8397_v7 = vld [vmem:[%s9589_s4 + $0x8] sm:$0xff]  }
  0xfd   :  { %v6895_v23 = vpop.f32.mrf.mxu0  ;;  %v6919_v25 = vpop.f32.mrf.mxu1  ;;  %v1150_v27 = vadd.f32 %v1146_v6, %v8318_v17  ;;  %v1537_v48 = vadd.f32 %v1536_v13, %v8304_v57  ;;  %v1556_v60 = vmax.f32 %v1542_v37, 0.0  ;;  %v7274_v1 = vld [vmem:[#allocation2 + $0x40] sm:$0xff]   ;;  %v8403_v13 = vld [vmem:[%s9589_s4 + $0x10] sm:$0xff]  }
  0xfe   :  { %v1149_v28 = vadd.f32 %v1145_v15, %v8316_v16  ;;  %v1254_v30 = vadd.f32 %v6895_v23, %v8306_v58  ;;  %6543 = vst [vmem:[#allocation2 + $0x50] sm:$0xff] %v6418_v20   ;;  %v1352_v32 = vmax.f32 %v1258_v18, %v1348_v19  ;;  %v1257_v33 = vmax.f32 %v1239_v22, 0.0  ;;  %v7276_v20 = vld [vmem:[#allocation2 + $0x38] sm:$0xff]  }
  0xff   :  { %v1248_v34 = vpop.f32.mrf.mxu0  ;;  %v1546_v35 = vpop.f32.mrf.mxu1  ;;  %6943 = vmatpush3.bf16.msra.mxu1 %v7271_v14  ;;  %v1552_v61 = vadd.f32 %v6919_v25, %v8306_v58  ;;  %v1555_v8 = vmax.f32 %v1537_v48, 0.0  ;;  %v7277_v23 = vld [vmem:[#allocation2 + $0x38] sm:$0xff]  }
 0x100   :  { %v6423_v36 = vpack.c.bf16 %v1150_v27, %v1149_v28  ;;  %v1260_v38 = vmax.f32 %v1254_v30, 0.0  ;;  %v1351_v40 = vmax.f32 %v1257_v33, %v1347_v31  ;;  %v1249_v41 = vadd.f32 %v1248_v34, %v8299_v55  ;;  %6944 = vmatprep.subr.bf16.mxu1 %v7272_v26 }
 0x101   :  { %v6908_v42 = vpop.f32.mrf.mxu0  ;;  %v6932_v45 = vpop.f32.mrf.mxu1  ;;  %v7273_v50 = vld [vmem:[#allocation2 + $0x48] sm:$0xff]   ;;  %v1356_v51 = vadd.f32 %v1352_v32, %v8329_v44  ;;  %v1547_v5 = vadd.f32 %v1546_v35, %v8299_v55  ;;  %v1558_v25 = vmax.f32 %v1552_v61, 0.0  ;;  %v7280_v35 = vld [vmem:[#allocation2 + $0x30] sm:$0xff]  }
 0x102   :  { %6544 = vst [vmem:[#allocation2 + $0x58] sm:$0xff] %v6423_v36   ;;  %v1452_v49 = vadd.f32 %v6908_v42, %v8309_v0  ;;  %v1355_v52 = vadd.f32 %v1351_v40, %v8327_v43  ;;  %v1354_v53 = vmax.f32 %v1260_v38, %v1350_v39  ;;  %v1259_v54 = vmax.f32 %v1249_v41, 0.0  ;;  %6976 = vmatprep.subr.bf16.mxu0 %v7273_v50 }
 0x103   :  { %v1446_v56 = vpop.f32.mrf.mxu0  ;;  %v1744_v59 = vpop.f32.mrf.mxu1  ;;  %6945 = vmatpush3.bf16.msra.mxu1 %v7272_v26  ;;  %6977 = vmatpush3.bf16.msra.mxu0 %v7273_v50  ;;  %v1750_v18 = vadd.f32 %v6932_v45, %v8309_v0  ;;  %v1557_v27 = vmax.f32 %v1547_v5, 0.0  ;;  %v8423_v50 = vld [vmem:[%s9589_s4 + $0x18] sm:$0xff]  }
 0x104   :  { %v1466_v62 = vmax.f32 %v1452_v49, 0.0  ;;  %v1447_v63 = vadd.f32 %v1446_v56, %v8304_v57  ;;  %v6428_v3 = vpack.c.bf16 %v1356_v51, %v1355_v52  ;;  %v1353_v4 = vmax.f32 %v1259_v54, %v1349_v47  ;;  %6946 = vmatprep.subr.bf16.mxu1 %v7275_v46  ;;  %6978 = vmatprep.subr.bf16.mxu0 %v7274_v1  ;;  %v7282_v49 = vld [vmem:[#allocation2 + $0x28] sm:$0xff]  }
 0x105   :  { %v6911_v6 = vpop.f32.mrf.mxu0  ;;  %v6935_v12 = vpop.f32.mrf.mxu1  ;;  %v1358_v14 = vadd.f32 %v1354_v53, %v8318_v17  ;;  %v1745_v32 = vadd.f32 %v1744_v59, %v8304_v57  ;;  %v1764_v36 = vmax.f32 %v1750_v18, 0.0  ;;  %v7290_v18 = vld [vmem:[#allocation2 + $0x10] sm:$0xff]  }
 0x106   :  { %v1560_v9 = vmax.f32 %v1466_v62, %v1556_v60  ;;  %v1465_v10 = vmax.f32 %v1447_v63, 0.0  ;;  %v1462_v11 = vadd.f32 %v6911_v6, %v8306_v58  ;;  %6545 = vst [vmem:[#allocation2 + $0x60] sm:$0xff] %v6428_v3   ;;  %v1357_v15 = vadd.f32 %v1353_v4, %v8316_v16  ;;  %v7283_v60 = vld [vmem:[#allocation2 + $0x28] sm:$0xff]  }
 0x107   :  { %v1456_v19 = vpop.f32.mrf.mxu0  ;;  %6947 = vmatpush3.bf16.msra.mxu1 %v7275_v46  ;;  %6979 = vmatpush3.bf16.msra.mxu0 %v7274_v1  ;;  %v1754_v33 = vpop.f32.mrf.mxu1  ;;  %v1760_v41 = vadd.f32 %v6935_v12, %v8306_v58  ;;  %v7281_v46 = vld [vmem:[#allocation2 + $0x30] sm:$0xff]   ;;  %v1763_v51 = vmax.f32 %v1745_v32, 0.0  ;;  %v7288_v12 = vld [vmem:[#allocation2 + $0x18] sm:$0xff]  }
 0x108   :  { %v1559_v21 = vmax.f32 %v1465_v10, %v1555_v8  ;;  %v1468_v22 = vmax.f32 %v1462_v11, 0.0  ;;  %v6433_v26 = vpack.c.bf16 %v1358_v14, %v1357_v15  ;;  %v1457_v28 = vadd.f32 %v1456_v19, %v8299_v55  ;;  %6956 = vmatprep.subr.bf16.mxu1 %v7276_v20  ;;  %6980 = vmatprep.subr.bf16.mxu0 %v7277_v23  ;;  %v7294_v19 = vld [vmem:[#allocation2 + $0x50] sm:$0xff]  }
 0x109   :  { %v6924_v29 = vpop.f32.mrf.mxu0  ;;  %v1564_v30 = vadd.f32 %v1560_v9, %v8329_v44  ;;  %v1755_v47 = vadd.f32 %v1754_v33, %v8299_v55  ;;  %v1766_v61 = vmax.f32 %v1760_v41, 0.0  ;;  %v7286_v9 = vld [vmem:[#allocation2 + $0x20] sm:$0xff]   ;;  %v7314_v41 = vld [vmem:[#allocation2 + $0x98] sm:$0xff]  }
 0x10a   :  { %v1563_v31 = vadd.f32 %v1559_v21, %v8327_v43  ;;  %v1660_v34 = vadd.f32 %v6924_v29, %v8309_v0  ;;  %6546 = vst [vmem:[#allocation2 + $0x68] sm:$0xff] %v6433_v26   ;;  %v1562_v37 = vmax.f32 %v1468_v22, %v1558_v25  ;;  %v1467_v38 = vmax.f32 %v1457_v28, 0.0  ;;  %6949 = vmatmul.mubr.msk.bf16.vlgmr.msra.gmra.mxu1 %vm1943_vm1, %v8397_v7  ;;  %v7296_v21 = vld [vmem:[#allocation2 + $0x48] sm:$0xff]   ;;  %v8450_v22 = vld [vmem:[%s9589_s4] sm:$0xff]   ;;  %v7302_v29 = vld [vmem:[#allocation2 + $0x30] sm:$0xff]  }
 0x10b   :  { %v1654_v39 = vpop.f32.mrf.mxu0  ;;  %6957 = vmatpush3.bf16.msra.mxu1 %v7276_v20  ;;  %6952 = vmatprep.mubr.msk.bf16.mxu1 %vm1943_vm1, %v8403_v13  ;;  %v1765_v4 = vmax.f32 %v1755_v47, 0.0  ;;  %v7295_v20 = vld [vmem:[#allocation2 + $0x50] sm:$0xff]   ;;  %v7298_v25 = vld [vmem:[#allocation2 + $0x40] sm:$0xff]  }
 0x10c   :  { %v6438_v40 = vpack.c.bf16 %v1564_v30, %v1563_v31  ;;  %v1674_v42 = vmax.f32 %v1660_v34, 0.0  ;;  %v1655_v45 = vadd.f32 %v1654_v39, %v8304_v57  ;;  %v1561_v0 = vmax.f32 %v1467_v38, %v1557_v27  ;;  %6981 = vmatpush3.bf16.msra.mxu0 %v7277_v23  ;;  %6958 = vmatprep.subr.bf16.mxu1 %v7280_v35  ;;  %v7297_v23 = vld [vmem:[#allocation2 + $0x48] sm:$0xff]   ;;  %v7299_v26 = vld [vmem:[#allocation2 + $0x40] sm:$0xff]   ;;  %v7300_v27 = vld [vmem:[#allocation2 + $0x38] sm:$0xff]  }
 0x10d   :  { %v6927_v48 = vpop.f32.mrf.mxu0  ;;  %6982 = vmatprep.subr.bf16.mxu0 %v7281_v46  ;;  %v1566_v54 = vadd.f32 %v1562_v37, %v8318_v17  ;;  %v7310_v37 = vld [vmem:[#allocation2 + $0x60] sm:$0xff]   ;;  %v7312_v39 = vld [vmem:[#allocation2 + $0x58] sm:$0xff]  }
 0x10e   :  { %6547 = vst [vmem:[#allocation2 + $0x70] sm:$0xff] %v6438_v40   ;;  %v1768_v57 = vmax.f32 %v1674_v42, %v1764_v36  ;;  %v1673_v52 = vmax.f32 %v1655_v45, 0.0  ;;  %v1670_v53 = vadd.f32 %v6927_v48, %v8306_v58  ;;  %v1565_v56 = vadd.f32 %v1561_v0, %v8316_v16  ;;  %v7311_v38 = vld [vmem:[#allocation2 + $0x60] sm:$0xff]   ;;  %v7313_v40 = vld [vmem:[#allocation2 + $0x50] sm:$0xff]  }
 0x10f   :  { %v1664_v59 = vpop.f32.mrf.mxu0  ;;  %6959 = vmatpush3.bf16.msra.mxu1 %v7280_v35  ;;  %v7315_v42 = vld [vmem:[#allocation2 + $0x90] sm:$0xff]   ;;  %v7340_v48 = vld [vmem:[%s9592_s7 + $0x4] ss:$8 sps:$4 sm:$0xff]  }
 0x110   :  { %v1767_v62 = vmax.f32 %v1673_v52, %v1763_v51  ;;  %v1676_v63 = vmax.f32 %v1670_v53, 0.0  ;;  %v1665_v1 = vadd.f32 %v1664_v59, %v8299_v55  ;;  %v6443_v3 = vpack.c.bf16 %v1566_v54, %v1565_v56  ;;  %6983 = vmatpush3.bf16.msra.mxu0 %v7281_v46  ;;  %6960 = vmatprep.subr.bf16.mxu1 %v7282_v49  ;;  %v7287_v55 = vld [vmem:[#allocation2 + $0x20] sm:$0xff]   ;;  %v8503_v51 = vpop.permute.xlu1 %1884 }
 0x111   :  { %v1772_v5 = vadd.f32 %v1768_v57, %v8329_v44  ;;  %6984 = vmatprep.subr.bf16.mxu0 %v7283_v60  ;;  %v7289_v15 = vld [vmem:[#allocation2 + $0x68] sm:$0xff]  }
 0x112   :  { %v1771_v58 = vadd.f32 %v1767_v62, %v8327_v43  ;;  %v1770_v6 = vmax.f32 %v1676_v63, %v1766_v61  ;;  %v1675_v8 = vmax.f32 %v1665_v1, 0.0  ;;  %6548 = vst [vmem:[#allocation2 + $0x78] sm:$0xff] %v6443_v3   ;;  %6953 = vmatmul.mubr.msk.bf16.gmra.mxu1 %vm1943_vm1, %v8423_v50  ;;  %v7308_v35 = vld [vmem:[#allocation2 + $0x68] sm:$0xff]  }
 0x113   :  { %6961 = vmatpush3.bf16.msra.mxu1 %v7282_v49  ;;  %6968 = vmatprep.mubr.msk.bf16.mxu1 %vm1943_vm1, %v8203_v24  ;;  %v7291_v24 = vld [vmem:[#allocation2 + $0x60] sm:$0xff]   ;;  %v7309_v36 = vld [vmem:[#allocation2 + $0x68] sm:$0xff]   ;;  %v8501_v49 = vpop.permute.xlu0 %1879 }
 0x114   :  { %v6448_v10 = vpack.c.bf16 %v1772_v5, %v1771_v58  ;;  %v1769_v11 = vmax.f32 %v1675_v8, %v1765_v4  ;;  %6985 = vmatpush3.bf16.msra.mxu0 %v7283_v60  ;;  %6962 = vmatprep.subr.bf16.mxu1 %v7286_v9  ;;  %v1774_v43 = vadd.f32 %v1770_v6, %v8318_v17  ;;  %v7293_v17 = vld [vmem:[#allocation2 + $0x58] sm:$0xff]   ;;  %v8507_v57 = vpop.permute.xlu1 %1874 }
 0x115   :  { %6986 = vmatprep.subr.bf16.mxu0 %v7287_v55  ;;  %v7306_v33 = vld [vmem:[#allocation2 + $0x70] sm:$0xff]  }
 0x116   :  { %6549 = vst [vmem:[#allocation2 + $0x80] sm:$0xff] %v6448_v10   ;;  %v1773_v44 = vadd.f32 %v1769_v11, %v8316_v16  ;;  %v7292_v16 = vld [vmem:[#allocation2 + $0x58] sm:$0xff]   ;;  %v7307_v34 = vld [vmem:[#allocation2 + $0x70] sm:$0xff]  }
 0x117   :  { %6963 = vmatpush3.bf16.msra.mxu1 %v7286_v9  ;;  %v7319_v47 = vld [vmem:[#allocation2 + $0x70] sm:$0xff]  }
 0x118   :  { %v6453_v14 = vpack.c.bf16 %v1774_v43, %v1773_v44  ;;  %6987 = vmatpush3.bf16.msra.mxu0 %v7287_v55  ;;  %6964 = vmatprep.subr.bf16.mxu1 %v7288_v12  ;;  %v8511_v54 = vpop.permute.xlu1 %2195 }
 0x119   :  { %7016 = vmatprep.subr.bf16.mxu0 %v7289_v15  ;;  %v7304_v31 = vld [vmem:[#allocation2 + $0x78] sm:$0xff]  }
 0x11a   :  { %6550 = vst [vmem:[#allocation2 + $0x88] sm:$0xff] %v6453_v14   ;;  %v7305_v32 = vld [vmem:[#allocation2 + $0x78] sm:$0xff]  }
 0x11b   :  { %6989 = vmatmul.mubr.msk.bf16.vlgmr.msra.gmra.mxu0 %vm1943_vm1, %v8397_v7  ;;  %6965 = vmatpush3.bf16.msra.mxu1 %v7288_v12  ;;  %v7318_v0 = vld [vmem:[#allocation2 + $0x78] sm:$0xff]  }
 0x11c   :  { %7017 = vmatpush3.bf16.msra.mxu0 %v7289_v15  ;;  %6966 = vmatprep.subr.bf16.mxu1 %v7290_v18  ;;  %v8515_v61 = vpop.permute.xlu1 %1864 }
 0x11d   :  { %7018 = vmatprep.subr.bf16.mxu0 %v7291_v24  ;;  %6992 = vmatprep.mubr.msk.bf16.mxu0 %vm1943_vm1, %v8403_v13  ;;  %v7303_v30 = vld [vmem:[#allocation2 + $0x80] sm:$0xff]  }
 0x11e   :  { %v7317_v46 = vld [vmem:[#allocation2 + $0x80] sm:$0xff]  }
 0x11f   :  { %6967 = vmatpush3.bf16.msra.mxu1 %v7290_v18 }
 0x120   :  { %7019 = vmatpush3.bf16.msra.mxu0 %v7291_v24  ;;  %6996 = vmatprep.subr.bf16.mxu1 %v7292_v16  ;;  %v8521_v3 = vpop.permute.xlu1 %2185 }
 0x121   :  { %7020 = vmatprep.subr.bf16.mxu0 %v7293_v17  ;;  %v7301_v28 = vld [vmem:[#allocation2 + $0x88] sm:$0xff]  }
 0x122   :  { %6969 = vmatmul.mubr.msk.bf16.vlgmr.msra.gmra.mxu1 %vm1943_vm1, %v8397_v7  ;;  %v7316_v45 = vld [vmem:[#allocation2 + $0x88] sm:$0xff]  }
 0x123   :  { %6993 = vmatmul.mubr.msk.bf16.gmra.mxu0 %vm1943_vm1, %v8423_v50  ;;  %6997 = vmatpush3.bf16.msra.mxu1 %v7292_v16 }
 0x124   :  { %7021 = vmatpush3.bf16.msra.mxu0 %v7293_v17  ;;  %6998 = vmatprep.subr.bf16.mxu1 %v7294_v19  ;;  %v8527_v8 = vpop.permute.xlu1 %1854 }
 0x125   :  { %7022 = vmatprep.subr.bf16.mxu0 %v7295_v20  ;;  %6972 = vmatprep.mubr.msk.bf16.mxu1 %vm1943_vm1, %v8403_v13 }
 0x126   :  { %7028 = vmatprep.mubr.msk.bf16.mxu0 %vm1943_vm1, %v8450_v22 }
 0x127   :  { %6999 = vmatpush3.bf16.msra.mxu1 %v7294_v19 }
 0x128   :  { %7023 = vmatpush3.bf16.msra.mxu0 %v7295_v20  ;;  %7000 = vmatprep.subr.bf16.mxu1 %v7296_v21 }
 0x129   :  { %7024 = vmatprep.subr.bf16.mxu0 %v7297_v23 }
 0x12a   :  { %6973 = vmatmul.mubr.msk.bf16.gmra.mxu1 %vm1943_vm1, %v8423_v50 }
 0x12b   :  { %7001 = vmatpush3.bf16.msra.mxu1 %v7296_v21  ;;  %7008 = vmatprep.mubr.msk.bf16.mxu1 %vm1943_vm1, %v8450_v22 }
 0x12c   :  { %7025 = vmatpush3.bf16.msra.mxu0 %v7297_v23  ;;  %7002 = vmatprep.subr.bf16.mxu1 %v7298_v25 }
 0x12d   :  { %7026 = vmatprep.subr.bf16.mxu0 %v7299_v26 }
 0x12f   :  { %7003 = vmatpush3.bf16.msra.mxu1 %v7298_v25 }
 0x130   :  { %7027 = vmatpush3.bf16.msra.mxu0 %v7299_v26  ;;  %7004 = vmatprep.subr.bf16.mxu1 %v7300_v27 }
 0x131   :  { %7056 = vmatprep.subr.bf16.mxu0 %v7301_v28 }
 0x133   :  { %7029 = vmatmul.mubr.msk.bf16.vlgmr.msra.gmra.mxu0 %vm1943_vm1, %v8397_v7  ;;  %7005 = vmatpush3.bf16.msra.mxu1 %v7300_v27 }
 0x134   :  { %7057 = vmatpush3.bf16.msra.mxu0 %v7301_v28  ;;  %7006 = vmatprep.subr.bf16.mxu1 %v7302_v29 }
 0x135   :  { %7058 = vmatprep.subr.bf16.mxu0 %v7303_v30  ;;  %7032 = vmatprep.mubr.msk.bf16.mxu0 %vm1943_vm1, %v8403_v13 }
 0x137   :  { %7007 = vmatpush3.bf16.msra.mxu1 %v7302_v29 }
 0x138   :  { %7059 = vmatpush3.bf16.msra.mxu0 %v7303_v30  ;;  %7036 = vmatprep.subr.bf16.mxu1 %v7304_v31 }
 0x139   :  { %7060 = vmatprep.subr.bf16.mxu0 %v7305_v32 }
 0x13a   :  { %7009 = vmatmul.mubr.msk.bf16.vlgmr.msra.gmra.mxu1 %vm1943_vm1, %v8397_v7 }
 0x13b   :  { %7033 = vmatmul.mubr.msk.bf16.gmra.mxu0 %vm1943_vm1, %v8423_v50  ;;  %7037 = vmatpush3.bf16.msra.mxu1 %v7304_v31 }
 0x13c   :  { %7061 = vmatpush3.bf16.msra.mxu0 %v7305_v32  ;;  %7038 = vmatprep.subr.bf16.mxu1 %v7306_v33 }
 0x13d   :  { %7062 = vmatprep.subr.bf16.mxu0 %v7307_v34  ;;  %7012 = vmatprep.mubr.msk.bf16.mxu1 %vm1943_vm1, %v8403_v13 }
 0x13e   :  { %7068 = vmatprep.mubr.msk.bf16.mxu0 %vm1943_vm1, %v8450_v22 }
 0x13f   :  { %7039 = vmatpush3.bf16.msra.mxu1 %v7306_v33 }
 0x140   :  { %7063 = vmatpush3.bf16.msra.mxu0 %v7307_v34  ;;  %7040 = vmatprep.subr.bf16.mxu1 %v7308_v35 }
 0x141   :  { %7064 = vmatprep.subr.bf16.mxu0 %v7309_v36 }
 0x142   :  { %7013 = vmatmul.mubr.msk.bf16.gmra.mxu1 %vm1943_vm1, %v8423_v50 }
 0x143   :  { %7041 = vmatpush3.bf16.msra.mxu1 %v7308_v35  ;;  %7048 = vmatprep.mubr.msk.bf16.mxu1 %vm1943_vm1, %v8450_v22 }
 0x144   :  { %7065 = vmatpush3.bf16.msra.mxu0 %v7309_v36  ;;  %7042 = vmatprep.subr.bf16.mxu1 %v7310_v37 }
 0x145   :  { %7066 = vmatprep.subr.bf16.mxu0 %v7311_v38 }
 0x147   :  { %7043 = vmatpush3.bf16.msra.mxu1 %v7310_v37 }
 0x148   :  { %7067 = vmatpush3.bf16.msra.mxu0 %v7311_v38  ;;  %7044 = vmatprep.subr.bf16.mxu1 %v7312_v39 }
 0x149   :  { %3557 = vmatprep.subr.bf16.mxu0 %v9605_v2 }
 0x14b   :  { %7069 = vmatmul.mubr.msk.bf16.vlgmr.msra.gmra.mxu0 %vm1943_vm1, %v8397_v7  ;;  %7045 = vmatpush3.bf16.msra.mxu1 %v7312_v39 }
 0x14c   :  { %7046 = vmatprep.subr.bf16.mxu1 %v7313_v40  ;;  %7072 = vmatprep.mubr.msk.bf16.mxu0 %vm1943_vm1, %v8403_v13 }
 0x14f   :  { %7047 = vmatpush3.bf16.msra.mxu1 %v7313_v40 }
 0x150   :  { %7076 = vmatprep.subr.bf16.mxu1 %v7314_v41 }
 0x152   :  { %7049 = vmatmul.mubr.msk.bf16.vlgmr.msra.gmra.mxu1 %vm1943_vm1, %v8397_v7 }
 0x153   :  { %7073 = vmatmul.mubr.msk.bf16.gmra.mxu0 %vm1943_vm1, %v8423_v50  ;;  %7077 = vmatpush3.bf16.msra.mxu1 %v7314_v41 }
 0x154   :  { %7078 = vmatprep.subr.bf16.mxu1 %v7315_v42  ;;  %7052 = vmatprep.mubr.msk.bf16.mxu1 %vm1943_vm1, %v8403_v13 }
 0x155   :  { %6146 = vmatprep.mubr.msk.bf16.mxu0 %vm3532_vm2, %v7340_v48 }
 0x157   :  { %7079 = vmatpush3.bf16.msra.mxu1 %v7315_v42 }
 0x158   :  { %7080 = vmatprep.subr.bf16.mxu1 %v7316_v45 }
 0x15a   :  { %7053 = vmatmul.mubr.msk.bf16.gmra.mxu1 %vm1943_vm1, %v8423_v50 }
 0x15b   :  { %7081 = vmatpush3.bf16.msra.mxu1 %v7316_v45  ;;  %7088 = vmatprep.mubr.msk.bf16.mxu1 %vm1943_vm1, %v8450_v22  ;;  %v8542_v22 = vpop.permute.xlu1 %2175 }
 0x15c   :  { %7082 = vmatprep.subr.bf16.mxu1 %v7317_v46 }
 0x15f   :  { %7083 = vmatpush3.bf16.msra.mxu1 %v7317_v46 }
 0x160   :  { %7084 = vmatprep.subr.bf16.mxu1 %v7318_v0 }
 0x163   :  { %7085 = vmatpush3.bf16.msra.mxu1 %v7318_v0  ;;  %v8555_v0 = vpop.permute.xlu1 %2165 }
 0x164   :  { %7086 = vmatprep.subr.bf16.mxu1 %v7319_v47 }
 0x167   :  { %7087 = vmatpush3.bf16.msra.mxu1 %v7319_v47 }
 0x168   :  { %3766 = vmatprep.subr.bf16.mxu1 %v9605_v2 }
 0x16a   :  { %7089 = vmatmul.mubr.msk.bf16.vlgmr.msra.gmra.mxu1 %vm1943_vm1, %v8397_v7  ;;  %v8505_v7 = vpop.permute.xlu0 %1869 }
 0x16b   :  { %7092 = vmatprep.mubr.msk.bf16.mxu1 %vm1943_vm1, %v8403_v13 }
 0x16e   :  { %v8509_v53 = vpop.permute.xlu0 %2190 }
 0x172   :  { %7093 = vmatmul.mubr.msk.bf16.gmra.mxu1 %vm1943_vm1, %v8423_v50  ;;  %v8513_v60 = vpop.permute.xlu0 %1859 }
 0x173   :  { %6166 = vmatprep.mubr.msk.bf16.mxu1 %vm3532_vm2, %v7340_v48 }
 0x176   :  { %v8517_v63 = vpop.permute.xlu0 %2180 }
 0x17a   :  { %v8525_v6 = vpop.permute.xlu0 %1849 }
 0x17e   :  { %v8537_v16 = vpop.permute.xlu0 %2170 }
 0x182   :  { %v8550_v40 = vpop.permute.xlu0 %2160 }
 0x1ca   :  { %v6950_v13 = vpop.f32.mrf.mxu1 }
 0x1cb   :  { %v1999_v10 = vadd.f32 %v6950_v13, %v8513_v60 }
 0x1cc   :  { %v1990_v52 = vpop.f32.mrf.mxu1 }
 0x1cd   :  { %v1991_v43 = vadd.f32 %v1990_v52, %v8525_v6  ;;  %v2023_v17 = vmax.f32 %v1999_v10, 0.0 }
 0x1ce   :  { %v6951_v50 = vpop.f32.mrf.mxu1 }
 0x1cf   :  { %v2002_v12 = vadd.f32 %v6951_v50, %v8515_v61  ;;  %v2021_v23 = vmax.f32 %v1991_v43, 0.0 }
 0x1d0   :  { %v1993_v56 = vpop.f32.mrf.mxu1 }
 0x1d1   :  { %v1994_v18 = vadd.f32 %v1993_v56, %v8527_v8  ;;  %v2024_v26 = vmax.f32 %v2002_v12, 0.0 }
 0x1d2   :  { %v6954_v59 = vpop.f32.mrf.mxu1 }
 0x1d3   :  { %v2022_v30 = vmax.f32 %v1994_v18, 0.0  ;;  %v2015_v37 = vadd.f32 %v6954_v59, %v8501_v49 }
 0x1d4   :  { %v2006_v62 = vpop.f32.mrf.mxu1 }
 0x1d5   :  { %v2007_v38 = vadd.f32 %v2006_v62, %v8505_v7  ;;  %v2027_v10 = vmax.f32 %v2015_v37, 0.0 }
 0x1d6   :  { %v6955_v4 = vpop.f32.mrf.mxu1 }
 0x1d7   :  { %v2018_v47 = vadd.f32 %v6955_v4, %v8503_v51 }
 0x1d8   :  { %v2009_v58 = vpop.f32.mrf.mxu1 }
 0x1d9   :  { %v2010_v48 = vadd.f32 %v2009_v58, %v8507_v57 }
 0x1db   :  { %v8519_v1 = vpop.f32.mrf.mxu0  ;;  %v2026_v18 = vmax.f32 %v2010_v48, 0.0 }
 0x1dd   :  { %v8523_v5 = vpop.f32.mrf.mxu0 }
 0x1de   :  { %v2329_v37 = vadd.f32 %v8523_v5, %v8525_v6 }
 0x1df   :  { %v8530_v11 = vpop.f32.mrf.mxu0 }
 0x1e1   :  { %v8539_v19 = vpop.f32.mrf.mxu0 }
 0x1e2   :  { %v6970_v9 = vpop.f32.mrf.mxu1 }
 0x1e3   :  { %v2120_v55 = vadd.f32 %v6970_v9, %v8513_v60  ;;  %v8545_v32 = vpop.f32.mrf.mxu0 }
 0x1e4   :  { %v2111_v44 = vpop.f32.mrf.mxu1 }
 0x1e5   :  { %v2144_v14 = vmax.f32 %v2120_v55, 0.0  ;;  %v2112_v15 = vadd.f32 %v2111_v44, %v8525_v6  ;;  %v2344_v56 = vpop.f32.mrf.mxu0  ;;  %v2025_v44 = vmax.f32 %v2007_v38, 0.0  ;;  %v2340_v38 = vadd.f32 %v8530_v11, %v8515_v61 }
 0x1e6   :  { %v6971_v24 = vpop.f32.mrf.mxu1 }
 0x1e7   :  { %v2142_v20 = vmax.f32 %v2112_v15, 0.0  ;;  %v2123_v21 = vadd.f32 %v6971_v24, %v8515_v61  ;;  %v2152_v27 = vmax.f32 %v2023_v17, %v2144_v14  ;;  %v2028_v14 = vmax.f32 %v2018_v47, 0.0  ;;  %v6995_v24 = vpop.f32.mrf.mxu0 }
 0x1e8   :  { %v2114_v25 = vpop.f32.mrf.mxu1 }
 0x1e9   :  { %v2145_v28 = vmax.f32 %v2123_v21, 0.0  ;;  %v2115_v29 = vadd.f32 %v2114_v25, %v8527_v8  ;;  %v2150_v33 = vmax.f32 %v2021_v23, %v2142_v20  ;;  %v2200_v41 = vadd.f32 %v8537_v16, %v2152_v27  ;;  %v2347_v27 = vpop.f32.mrf.mxu0 }
 0x1ea   :  { %v6974_v31 = vpop.f32.mrf.mxu1 }
 0x1eb   :  { %v2153_v34 = vmax.f32 %v2024_v26, %v2145_v28  ;;  %v2143_v35 = vmax.f32 %v2115_v29, 0.0  ;;  %v2136_v36 = vadd.f32 %v6974_v31, %v8501_v49  ;;  %v2198_v50 = vadd.f32 %v8550_v40, %v2150_v33 }
 0x1ec   :  { %v2127_v39 = vpop.f32.mrf.mxu1 }
 0x1ed   :  { %v2201_v42 = vadd.f32 %v8542_v22, %v2153_v34  ;;  %v2151_v45 = vmax.f32 %v2022_v30, %v2143_v35  ;;  %v2128_v46 = vadd.f32 %v2127_v39, %v8505_v7  ;;  %v2148_v13 = vmax.f32 %v2136_v36, 0.0 }
 0x1ee   :  { %v6975_v52 = vpop.f32.mrf.mxu1  ;;  %v2337_v35 = vadd.f32 %v8519_v1, %v8513_v60 }
 0x1ef   :  { %v6463_v59 = vpack.c.bf16 %v2201_v42, %v2200_v41  ;;  %v2199_v62 = vadd.f32 %v8555_v0, %v2151_v45  ;;  %v2146_v9 = vmax.f32 %v2128_v46, 0.0  ;;  %v2139_v55 = vadd.f32 %v6975_v52, %v8503_v51 }
 0x1f0   :  { %v2130_v43 = vpop.f32.mrf.mxu1  ;;  %v2156_v58 = vmax.f32 %v2027_v10, %v2148_v13  ;;  %v2332_v46 = vadd.f32 %v8539_v19, %v8527_v8  ;;  %v2361_v1 = vmax.f32 %v2337_v35, 0.0  ;;  %v2359_v52 = vmax.f32 %v2329_v37, 0.0 }
 0x1f1   :  { %6552 = vst [vmem:[#allocation3 + $0x28] sm:$0xff] %v6463_v59   ;;  %v6458_v12 = vpack.c.bf16 %v2199_v62, %v2198_v50  ;;  %v2131_v4 = vadd.f32 %v2130_v43, %v8507_v57  ;;  %v2149_v15 = vmax.f32 %v2139_v55, 0.0  ;;  %v2154_v17 = vmax.f32 %v2025_v44, %v2146_v9 }
 0x1f2   :  { %v2204_v25 = vadd.f32 %v8509_v53, %v2156_v58  ;;  %v2362_v50 = vmax.f32 %v2340_v38, 0.0  ;;  %v2360_v55 = vmax.f32 %v2332_v46, 0.0  ;;  %v2345_v58 = vadd.f32 %v2344_v56, %v8505_v7 }
 0x1f3   :  { %6551 = vst [vmem:[#allocation3 + $0x20] sm:$0xff] %v6458_v12   ;;  %v2147_v20 = vmax.f32 %v2131_v4, 0.0  ;;  %v2157_v21 = vmax.f32 %v2028_v14, %v2149_v15  ;;  %v2202_v28 = vadd.f32 %v8517_v63, %v2154_v17  ;;  %v8567_v33 = vpop.f32.mrf.mxu0  ;;  %v2353_v14 = vadd.f32 %v8545_v32, %v8501_v49 }
 0x1f4   :  { %v2363_v38 = vmax.f32 %v2345_v58, 0.0 }
 0x1f5   :  { %v2155_v23 = vmax.f32 %v2026_v18, %v2147_v20  ;;  %v2205_v26 = vadd.f32 %v8511_v54, %v2157_v21  ;;  %v8576_v41 = vpop.f32.mrf.mxu0  ;;  %v2365_v35 = vmax.f32 %v2353_v14, 0.0  ;;  %v2635_v14 = vadd.f32 %v8567_v33, %v8513_v60 }
 0x1f7   :  { %v2203_v29 = vadd.f32 %v8521_v3, %v2155_v23  ;;  %v6473_v30 = vpack.c.bf16 %v2205_v26, %v2204_v25  ;;  %v8582_v59 = vpop.f32.mrf.mxu0  ;;  %v2356_v26 = vadd.f32 %v6995_v24, %v8503_v51 }
 0x1f9   :  { %v6468_v31 = vpack.c.bf16 %v2203_v29, %v2202_v28  ;;  %6554 = vst [vmem:[#allocation3 + $0x38] sm:$0xff] %v6473_v30   ;;  %v2629_v18 = vpop.f32.mrf.mxu0  ;;  %v2348_v28 = vadd.f32 %v2347_v27, %v8507_v57 }
 0x1fa   :  { %v7010_v34 = vpop.f32.mrf.mxu1  ;;  %v2630_v33 = vadd.f32 %v2629_v18, %v8527_v8 }
 0x1fb   :  { %6553 = vst [vmem:[#allocation3 + $0x30] sm:$0xff] %v6468_v31   ;;  %v2458_v36 = vadd.f32 %v7010_v34, %v8513_v60 }
 0x1fc   :  { %v2449_v39 = vpop.f32.mrf.mxu1  ;;  %v2658_v18 = vmax.f32 %v2630_v33, 0.0 }
 0x1fd   :  { %v2482_v42 = vmax.f32 %v2458_v36, 0.0  ;;  %v2450_v45 = vadd.f32 %v2449_v39, %v8525_v6  ;;  %v8599_v39 = vpop.f32.mrf.mxu0 }
 0x1fe   :  { %v7011_v47 = vpop.f32.mrf.mxu1 }
 0x1ff   :  { %v2480_v48 = vmax.f32 %v2450_v45, 0.0  ;;  %v2461_v13 = vadd.f32 %v7011_v47, %v8515_v61  ;;  %v2490_v11 = vmax.f32 %v2361_v1, %v2482_v42  ;;  %v7322_v42 = vld [vmem:[#allocation3 + $0x28] sm:$0xff]   ;;  %v2366_v45 = vmax.f32 %v2356_v26, 0.0 }
 0x200   :  { %v2452_v5 = vpop.f32.mrf.mxu1  ;;  %v7320_v10 = vld [vmem:[#allocation3 + $0x38] sm:$0xff]   ;;  %v2364_v1 = vmax.f32 %v2348_v28, 0.0 }
 0x201   :  { %v2483_v62 = vmax.f32 %v2461_v13, 0.0  ;;  %v2453_v9 = vadd.f32 %v2452_v5, %v8527_v8  ;;  %v2488_v44 = vmax.f32 %v2359_v52, %v2480_v48  ;;  %3558 = vmatpush1.bf16.msra.mxu0 %v7320_v10  ;;  %v2498_v17 = vadd.f32 %v2490_v11, %v8537_v16  ;;  %v7323_v11 = vld [vmem:[#allocation3 + $0x20] sm:$0xff]  }
 0x202   :  { %v7014_v43 = vpop.f32.mrf.mxu1  ;;  %3559 = vmatprep.subr.bf16.mxu0 %v9605_v2  ;;  %v7321_v25 = vld [vmem:[#allocation3 + $0x30] sm:$0xff]  }
 0x203   :  { %v2491_v12 = vmax.f32 %v2362_v50, %v2483_v62  ;;  %v2481_v19 = vmax.f32 %v2453_v9, 0.0  ;;  %v2474_v4 = vadd.f32 %v7014_v43, %v8501_v49  ;;  %v2496_v56 = vadd.f32 %v2488_v44, %v8550_v40  ;;  %v2642_v50 = vpop.f32.mrf.mxu0  ;;  %v7324_v43 = vld [vmem:[#allocation3 + $0x18] sm:$0xff]  }
 0x204   :  { %v2465_v15 = vpop.f32.mrf.mxu1 }
 0x205   :  { %v2499_v20 = vadd.f32 %v2491_v12, %v8542_v22  ;;  %v2489_v21 = vmax.f32 %v2360_v55, %v2481_v19  ;;  %v2466_v23 = vadd.f32 %v2465_v15, %v8505_v7  ;;  %v2486_v29 = vmax.f32 %v2474_v4, 0.0  ;;  %3560 = vmatpush1.bf16.msra.mxu0 %v7321_v25  ;;  %v7035_v12 = vpop.f32.mrf.mxu0  ;;  %v7325_v15 = vld [vmem:[#allocation3 + $0x10] sm:$0xff]  }
 0x206   :  { %v7015_v32 = vpop.f32.mrf.mxu1  ;;  %3561 = vmatprep.subr.bf16.mxu0 %v9605_v2 }
 0x207   :  { %v6483_v30 = vpack.c.bf16 %v2499_v20, %v2498_v17  ;;  %v2497_v31 = vadd.f32 %v2489_v21, %v8555_v0  ;;  %v2484_v34 = vmax.f32 %v2466_v23, 0.0  ;;  %v2477_v36 = vadd.f32 %v7015_v32, %v8503_v51  ;;  %v2645_v23 = vpop.f32.mrf.mxu0 }
 0x208   :  { %v2468_v37 = vpop.f32.mrf.mxu1  ;;  %v2494_v46 = vmax.f32 %v2365_v35, %v2486_v29  ;;  %v2627_v17 = vadd.f32 %v8576_v41, %v8525_v6  ;;  %v2638_v20 = vadd.f32 %v8582_v59, %v8515_v61  ;;  %v2659_v29 = vmax.f32 %v2635_v14, 0.0  ;;  %v7326_v41 = vld [vmem:[#allocation3 + $0x8] sm:$0xff]  }
 0x209   :  { %6556 = vst [vmem:[#allocation3 + $0x48] sm:$0xff] %v6483_v30   ;;  %v6478_v24 = vpack.c.bf16 %v2497_v31, %v2496_v56  ;;  %v2469_v27 = vadd.f32 %v2468_v37, %v8507_v57  ;;  %v2487_v47 = vmax.f32 %v2477_v36, 0.0  ;;  %v2492_v48 = vmax.f32 %v2363_v38, %v2484_v34  ;;  %3562 = vmatpush1.bf16.msra.mxu0 %v7322_v42 }
 0x20a   :  { %3563 = vmatprep.subr.bf16.mxu0 %v9605_v2  ;;  %v2502_v62 = vadd.f32 %v2494_v46, %v8509_v53  ;;  %v2657_v31 = vmax.f32 %v2627_v17, 0.0  ;;  %v2660_v59 = vmax.f32 %v2638_v20, 0.0 }
 0x20b   :  { %6555 = vst [vmem:[#allocation3 + $0x40] sm:$0xff] %v6478_v24   ;;  %v2485_v13 = vmax.f32 %v2469_v27, 0.0  ;;  %v2495_v52 = vmax.f32 %v2366_v45, %v2487_v47  ;;  %v2500_v10 = vadd.f32 %v2492_v48, %v8517_v63  ;;  %v8618_v32 = vpop.f32.mrf.mxu0  ;;  %v2651_v48 = vadd.f32 %v8599_v39, %v8501_v49 }
 0x20d   :  { %v2493_v5 = vmax.f32 %v2364_v1, %v2485_v13  ;;  %v2503_v9 = vadd.f32 %v2495_v52, %v8511_v54  ;;  %3564 = vmatpush1.bf16.msra.mxu0 %v7323_v11  ;;  %v8623_v27 = vpop.f32.mrf.mxu0  ;;  %v7328_v1 = vld [vmem:[#allocation3] sm:$0xff]   ;;  %v2643_v13 = vadd.f32 %v2642_v50, %v8505_v7 }
 0x20e   :  { %3565 = vmatprep.subr.bf16.mxu0 %v9605_v2 }
 0x20f   :  { %v2501_v55 = vadd.f32 %v2493_v5, %v8521_v3  ;;  %v6493_v44 = vpack.c.bf16 %v2503_v9, %v2502_v62  ;;  %v7071_v50 = vpop.f32.mrf.mxu0 }
 0x211   :  { %v6488_v19 = vpack.c.bf16 %v2501_v55, %v2500_v10  ;;  %6558 = vst [vmem:[#allocation3 + $0x58] sm:$0xff] %v6493_v44   ;;  %3566 = vmatpush1.bf16.msra.mxu0 %v7324_v43  ;;  %v2654_v55 = vadd.f32 %v7035_v12, %v8503_v51  ;;  %v2646_v43 = vadd.f32 %v2645_v23, %v8507_v57  ;;  %v2661_v12 = vmax.f32 %v2643_v13, 0.0 }
 0x212   :  { %v7050_v4 = vpop.f32.mrf.mxu1  ;;  %3567 = vmatprep.subr.bf16.mxu0 %v9605_v2  ;;  %v2933_v13 = vadd.f32 %v8618_v32, %v8513_v60 }
 0x213   :  { %6557 = vst [vmem:[#allocation3 + $0x50] sm:$0xff] %v6488_v19   ;;  %v2756_v58 = vadd.f32 %v7050_v4, %v8513_v60  ;;  %v2664_v33 = vmax.f32 %v2654_v55, 0.0 }
 0x214   :  { %v2747_v21 = vpop.f32.mrf.mxu1 }
 0x215   :  { %v2780_v25 = vmax.f32 %v2756_v58, 0.0  ;;  %v2748_v26 = vadd.f32 %v2747_v21, %v8525_v6  ;;  %3568 = vmatpush1.bf16.msra.mxu0 %v7325_v15  ;;  %v2663_v15 = vmax.f32 %v2651_v48, 0.0 }
 0x216   :  { %v7051_v28 = vpop.f32.mrf.mxu1  ;;  %3569 = vmatprep.subr.bf16.mxu0 %v9605_v2 }
 0x217   :  { %v2778_v56 = vmax.f32 %v2748_v26, 0.0  ;;  %v2759_v30 = vadd.f32 %v7051_v28, %v8515_v61  ;;  %v2788_v35 = vmax.f32 %v2659_v29, %v2780_v25  ;;  %v7331_v26 = vld [vmem:[#allocation3 + $0x48] sm:$0xff]  }
 0x218   :  { %v2750_v34 = vpop.f32.mrf.mxu1  ;;  %v7327_v38 = vld [vmem:[#allocation3 + $0x58] sm:$0xff]  }
 0x219   :  { %v2781_v36 = vmax.f32 %v2759_v30, 0.0  ;;  %v2751_v37 = vadd.f32 %v2750_v34, %v8527_v8  ;;  %v2786_v42 = vmax.f32 %v2657_v31, %v2778_v56  ;;  %3570 = vmatpush1.bf16.msra.mxu0 %v7326_v41  ;;  %3767 = vmatpush1.bf16.msra.mxu1 %v7327_v38  ;;  %v2796_v5 = vadd.f32 %v2788_v35, %v8537_v16  ;;  %v7330_v25 = vld [vmem:[#allocation3 + $0x58] sm:$0xff]   ;;  %v2927_v30 = vpop.f32.mrf.mxu0 }
 0x21a   :  { %v7054_v24 = vpop.f32.mrf.mxu1  ;;  %3571 = vmatprep.subr.bf16.mxu0 %v9605_v2  ;;  %3768 = vmatprep.subr.bf16.mxu1 %v9605_v2  ;;  %v7329_v10 = vld [vmem:[#allocation3 + $0x50] sm:$0xff]   ;;  %v2662_v56 = vmax.f32 %v2646_v43, 0.0  ;;  %v7336_v43 = vld [vmem:[#allocation3 + $0x40] sm:$0xff]  }
 0x21b   :  { %v2789_v45 = vmax.f32 %v2660_v59, %v2781_v36  ;;  %v2779_v46 = vmax.f32 %v2751_v37, 0.0  ;;  %v2772_v47 = vadd.f32 %v7054_v24, %v8501_v49  ;;  %v2794_v19 = vadd.f32 %v2786_v42, %v8550_v40  ;;  %v7332_v35 = vld [vmem:[#allocation3 + $0x50] sm:$0xff]   ;;  %v7333_v36 = vld [vmem:[#allocation3 + $0x40] sm:$0xff]  }
 0x21c   :  { %v2763_v52 = vpop.f32.mrf.mxu1 }
 0x21d   :  { %v2797_v11 = vadd.f32 %v2789_v45, %v8542_v22  ;;  %v2787_v62 = vmax.f32 %v2658_v18, %v2779_v46  ;;  %v2764_v9 = vadd.f32 %v2763_v52, %v8505_v7  ;;  %v2784_v39 = vmax.f32 %v2772_v47, 0.0  ;;  %3572 = vmatpush1.bf16.msra.mxu0 %v7328_v1  ;;  %3769 = vmatpush1.bf16.msra.mxu1 %v7329_v10  ;;  %v7074_v18 = vpop.f32.mrf.mxu0  ;;  %v7335_v46 = vld [vmem:[#allocation3 + $0x38] sm:$0xff]   ;;  %v7334_v1 = vld [vmem:[#allocation3 + $0x48] sm:$0xff]  }
 0x21e   :  { %v7055_v44 = vpop.f32.mrf.mxu1  ;;  %3581 = vmatprep.subr.bf16.mxu0 %v9605_v2  ;;  %3770 = vmatprep.subr.bf16.mxu1 %v9605_v2  ;;  %v2936_v10 = vadd.f32 %v7071_v50, %v8515_v61 }
 0x21f   :  { %v6503_v4 = vpack.c.bf16 %v2797_v11, %v2796_v5  ;;  %v2795_v14 = vadd.f32 %v2787_v62, %v8555_v0  ;;  %v2782_v58 = vmax.f32 %v2764_v9, 0.0  ;;  %v2775_v17 = vadd.f32 %v7055_v44, %v8503_v51  ;;  %v2940_v52 = vpop.f32.mrf.mxu0  ;;  %v7337_v9 = vld [vmem:[#allocation3 + $0x30] sm:$0xff]   ;;  %v8663_v44 = vld [vmem:[%s9592_s7] ss:$8 sps:$4 sm:$0xff]  }
 0x220   :  { %v2766_v20 = vpop.f32.mrf.mxu1  ;;  %v2792_v28 = vmax.f32 %v2663_v15, %v2784_v39  ;;  %v2925_v11 = vadd.f32 %v8623_v27, %v8525_v6  ;;  %v2928_v39 = vadd.f32 %v2927_v30, %v8527_v8  ;;  %v2957_v27 = vmax.f32 %v2933_v13, 0.0  ;;  %v7341_v15 = vld [vmem:[#allocation3 + $0x28] sm:$0xff]  }
 0x221   :  { %6560 = vst [vmem:[#allocation3 + $0x68] sm:$0xff] %v6503_v4   ;;  %v6498_v21 = vpack.c.bf16 %v2795_v14, %v2794_v19  ;;  %v2767_v23 = vadd.f32 %v2766_v20, %v8507_v57  ;;  %v2785_v29 = vmax.f32 %v2775_v17, 0.0  ;;  %v2790_v41 = vmax.f32 %v2661_v12, %v2782_v58  ;;  %3582 = vmatpush2.bf16.msra.mxu0 %v7330_v25  ;;  %v7075_v19 = vpop.f32.mrf.mxu0 }
 0x222   :  { %3771 = vmatpush1.bf16.msra.mxu1 %v7331_v26  ;;  %3583 = vmatprep.subr.bf16.mxu0 %v9605_v2  ;;  %v2800_v37 = vadd.f32 %v2792_v28, %v8509_v53  ;;  %v2955_v50 = vmax.f32 %v2925_v11, 0.0  ;;  %v2958_v17 = vmax.f32 %v2936_v10, 0.0  ;;  %v2941_v30 = vadd.f32 %v2940_v52, %v8505_v7 }
 0x223   :  { %6559 = vst [vmem:[#allocation3 + $0x60] sm:$0xff] %v6498_v21   ;;  %v2783_v31 = vmax.f32 %v2767_v23, 0.0  ;;  %v2793_v59 = vmax.f32 %v2664_v33, %v2785_v29  ;;  %3772 = vmatprep.subr.bf16.mxu1 %v9605_v2  ;;  %v2798_v24 = vadd.f32 %v2790_v41, %v8517_v63  ;;  %v2956_v23 = vmax.f32 %v2928_v39, 0.0 }
 0x225   :  { %v2791_v34 = vmax.f32 %v2662_v56, %v2783_v31  ;;  %v2801_v38 = vadd.f32 %v2793_v59, %v8511_v54  ;;  %3584 = vmatpush2.bf16.msra.mxu0 %v7332_v35  ;;  %v2949_v56 = vadd.f32 %v7074_v18, %v8501_v49 }
 0x226   :  { %3773 = vmatpush1.bf16.msra.mxu1 %v7333_v36  ;;  %3585 = vmatprep.subr.bf16.mxu0 %v9605_v2  ;;  %v7342_v36 = vld [vmem:[#allocation3 + $0x20] sm:$0xff]  }
 0x227   :  { %v2799_v42 = vadd.f32 %v2791_v34, %v8521_v3  ;;  %v6513_v45 = vpack.c.bf16 %v2801_v38, %v2800_v37  ;;  %3774 = vmatprep.subr.bf16.mxu1 %v9605_v2 }
 0x229   :  { %v6508_v47 = vpack.c.bf16 %v2799_v42, %v2798_v24  ;;  %6562 = vst [vmem:[#allocation3 + $0x78] sm:$0xff] %v6513_v45   ;;  %3586 = vmatpush2.bf16.msra.mxu0 %v7334_v1  ;;  %v2959_v1 = vmax.f32 %v2941_v30, 0.0 }
 0x22a   :  { %v7090_v48 = vpop.f32.mrf.mxu1  ;;  %3775 = vmatpush1.bf16.msra.mxu1 %v7335_v46  ;;  %3587 = vmatprep.subr.bf16.mxu0 %v9605_v2 }
 0x22b   :  { %6561 = vst [vmem:[#allocation3 + $0x70] sm:$0xff] %v6508_v47   ;;  %v3054_v5 = vadd.f32 %v7090_v48, %v8513_v60  ;;  %3776 = vmatprep.subr.bf16.mxu1 %v9605_v2 }
 0x22c   :  { %v3045_v62 = vpop.f32.mrf.mxu1 }
 0x22d   :  { %v3078_v55 = vmax.f32 %v3054_v5, 0.0  ;;  %v3046_v32 = vadd.f32 %v3045_v62, %v8525_v6  ;;  %3588 = vmatpush2.bf16.msra.mxu0 %v7336_v43  ;;  %v8669_v6 = vld [vmem:[%s9592_s7 + $0x14] ss:$8 sps:$4 sm:$0xff]   ;;  %v8709_v43 = vld [vmem:[%s9592_s7 + $0x20] ss:$8 sps:$4 sm:$0xff]  }
 0x22e   :  { %v7091_v60 = vpop.f32.mrf.mxu1  ;;  %3777 = vmatpush1.bf16.msra.mxu1 %v7337_v9 }
 0x22f   :  { %v3076_v4 = vmax.f32 %v3046_v32, 0.0  ;;  %v3057_v14 = vadd.f32 %v7091_v60, %v8515_v61  ;;  %3778 = vmatprep.subr.bf16.mxu1 %v9605_v2  ;;  %v3086_v20 = vmax.f32 %v2957_v27, %v3078_v55  ;;  %v2943_v61 = vpop.f32.mrf.mxu0  ;;  %v8716_v27 = vld [vmem:[%s9592_s7 + $0x34] ss:$8 sps:$4 sm:$0xff]  }
 0x230   :  { %v3048_v58 = vpop.f32.mrf.mxu1  ;;  %3590 = vmatmul.mubr.bf16.vlgmr.msra.gmra.mxu0 %v8663_v44  ;;  %v2944_v37 = vadd.f32 %v2943_v61, %v8507_v57  ;;  %v7346_v13 = vld [vmem:[#allocation3 + $0x78] sm:$0xff]   ;;  %v8780_v61 = vld [vmem:[%s9592_s7 + $0x60] ss:$8 sps:$4 sm:$0xff]  }
 0x231   :  { %v3079_v12 = vmax.f32 %v3057_v14, 0.0  ;;  %v3049_v21 = vadd.f32 %v3048_v58, %v8527_v8  ;;  %v3084_v26 = vmax.f32 %v2955_v50, %v3076_v4  ;;  %6147 = vmatprep.mubr.msk.bf16.mxu0 %vm3532_vm2, %v8669_v6  ;;  %v8683_v8 = vld [vmem:[%s9592_s7 + $0x10] ss:$8 sps:$4 sm:$0xff]   ;;  %v3094_v31 = vadd.f32 %v3086_v20, %v8537_v16  ;;  %v8695_v16 = vld [vmem:[%s9592_s7 + $0x24] ss:$8 sps:$4 sm:$0xff]   ;;  %9675 = vst [vmem:[#allocation9_spill] sm:$0xff] %v8780_v61 }
 0x232   :  { %v7094_v25 = vpop.f32.mrf.mxu1  ;;  %3779 = vmatpush1.bf16.msra.mxu1 %v7341_v15  ;;  %v2960_v11 = vmax.f32 %v2944_v37, 0.0  ;;  %v7347_v55 = vld [vmem:[#allocation3 + $0x70] sm:$0xff]   ;;  %v8731_v4 = vld [vmem:[%s9592_s7 + $0x44] ss:$8 sps:$4 sm:$0xff]   ;;  %v7356_v14 = vld [vmem:[#allocation3 + $0x78] sm:$0xff]  }
 0x233   :  { %v3087_v33 = vmax.f32 %v2958_v17, %v3079_v12  ;;  %v3077_v28 = vmax.f32 %v3049_v21, 0.0  ;;  %v3070_v29 = vadd.f32 %v7094_v25, %v8501_v49  ;;  %3780 = vmatprep.subr.bf16.mxu1 %v9605_v2  ;;  %v2952_v49 = vadd.f32 %v7075_v19, %v8503_v51  ;;  %v7357_v50 = vld [vmem:[#allocation3 + $0x70] sm:$0xff]   ;;  %v8744_v58 = vld [vmem:[%s9592_s7 + $0x40] ss:$8 sps:$4 sm:$0xff]   ;;  %v8767_v21 = vld [vmem:[%s9592_s7 + $0x64] ss:$8 sps:$4 sm:$0xff]  }
 0x234   :  { %v3061_v41 = vpop.f32.mrf.mxu1  ;;  %v3092_v24 = vadd.f32 %v3084_v26, %v8550_v40  ;;  %v8749_v15 = vld [vmem:[%s9592_s7 + $0x54] ss:$8 sps:$4 sm:$0xff]   ;;  %v7361_v17 = vld [vmem:[#allocation3 + $0x68] sm:$0xff]   ;;  %v7362_v20 = vld [vmem:[#allocation3 + $0x60] sm:$0xff]   ;;  %9674 = vst [vmem:[#allocation8_spill] sm:$0xff] %v8767_v21 }
 0x235   :  { %v3095_v59 = vadd.f32 %v3087_v33, %v8542_v22  ;;  %v3085_v34 = vmax.f32 %v2956_v23, %v3077_v28  ;;  %v3062_v35 = vadd.f32 %v3061_v41, %v8505_v7  ;;  %v3082_v38 = vmax.f32 %v3070_v29, 0.0  ;;  %v8762_v12 = vld [vmem:[%s9592_s7 + $0x50] ss:$8 sps:$4 sm:$0xff]   ;;  %v8785_v26 = vld [vmem:[%s9592_s7 + $0x74] ss:$8 sps:$4 sm:$0xff]   ;;  %v7371_v33 = vld [vmem:[#allocation3 + $0x48] sm:$0xff]  }
 0x236   :  { %v7095_v18 = vpop.f32.mrf.mxu1  ;;  %3781 = vmatpush1.bf16.msra.mxu1 %v7342_v36  ;;  %v2961_v7 = vmax.f32 %v2949_v56, 0.0  ;;  %9673 = vst [vmem:[#allocation7_spill] sm:$0xff] %v8762_v12  ;;  %v7366_v23 = vld [vmem:[#allocation3 + $0x58] sm:$0xff]   ;;  %v7367_v25 = vld [vmem:[#allocation3 + $0x50] sm:$0xff]   ;;  %9676 = vst [vmem:[#allocation10_spill] sm:$0xff] %v8785_v26 }
 0x237   :  { %v6523_v42 = vpack.c.bf16 %v3095_v59, %v3094_v31  ;;  %v3093_v45 = vadd.f32 %v3085_v34, %v8555_v0  ;;  %v3080_v46 = vmax.f32 %v3062_v35, 0.0  ;;  %v3073_v22 = vadd.f32 %v7095_v18, %v8503_v51  ;;  %3790 = vmatprep.subr.bf16.mxu1 %v9605_v2  ;;  %v7372_v28 = vld [vmem:[#allocation3 + $0x40] sm:$0xff]   ;;  %v8798_v29 = vld [vmem:[%s9592_s7 + $0x70] ss:$8 sps:$4 sm:$0xff]  }
 0x238   :  { %v3064_v47 = vpop.f32.mrf.mxu1  ;;  %v2962_v0 = vmax.f32 %v2952_v49, 0.0  ;;  %v3090_v52 = vmax.f32 %v2961_v7, %v3082_v38  ;;  %3598 = vmatmul.mubr.bf16.gmra.mxu0 %v8683_v8  ;;  %9677 = vst [vmem:[#allocation11_spill] sm:$0xff] %v8798_v29  ;;  %v8818_v59 = vld [vmem:[%s9592_s7 + $0x4] ss:$8 sps:$4 sm:$0xff]  }
 0x239   :  { %6564 = vst [vmem:[#allocation3 + $0x88] sm:$0xff] %v6523_v42   ;;  %v6518_v48 = vpack.c.bf16 %v3093_v45, %v3092_v24  ;;  %v3065_v40 = vadd.f32 %v3064_v47, %v8507_v57  ;;  %v3083_v5 = vmax.f32 %v3073_v22, 0.0  ;;  %v3088_v62 = vmax.f32 %v2959_v1, %v3080_v46  ;;  %6148 = vmatprep.mubr.msk.bf16.mxu0 %vm3532_vm2, %v8695_v16 }
 0x23a   :  { %3791 = vmatpush2.bf16.msra.mxu1 %v7346_v13  ;;  %v3098_v57 = vadd.f32 %v3090_v52, %v8509_v53 }
 0x23b   :  { %6563 = vst [vmem:[#allocation3 + $0x80] sm:$0xff] %v6518_v48   ;;  %v3081_v9 = vmax.f32 %v3065_v40, 0.0  ;;  %v3091_v51 = vmax.f32 %v2962_v0, %v3083_v5  ;;  %3792 = vmatprep.subr.bf16.mxu1 %v9605_v2  ;;  %v3096_v39 = vadd.f32 %v3088_v62, %v8517_v63  ;;  %v7352_v63 = vld [vmem:[#allocation3 + $0x60] sm:$0xff]  }
 0x23c   :  { %v8887_v0 = vld [vmem:[%s9595_s10] sm:$0xff]  }
 0x23d   :  { %v3089_v10 = vmax.f32 %v2960_v11, %v3081_v9  ;;  %v3099_v32 = vadd.f32 %v3091_v51, %v8511_v54  ;;  %v7351_v54 = vld [vmem:[#allocation3 + $0x68] sm:$0xff]   ;;  %9688 = vst [vmem:[#allocation22_spill] sm:$0xff] %v8887_v0 }
 0x23e   :  { %3793 = vmatpush2.bf16.msra.mxu1 %v7347_v55 }
 0x23f   :  { %v3097_v60 = vadd.f32 %v3089_v10, %v8521_v3  ;;  %v6533_v19 = vpack.c.bf16 %v3099_v32, %v3098_v57  ;;  %3794 = vmatprep.subr.bf16.mxu1 %v9605_v2  ;;  %v8726_v3 = vld [vmem:[%s9592_s7 + $0x30] ss:$8 sps:$4 sm:$0xff]  }
 0x240   :  { %3606 = vmatmul.mubr.bf16.gmra.mxu0 %v8709_v43  ;;  %v7378_v41 = vld [vmem:[#allocation3 + $0x88] sm:$0xff]  }
 0x241   :  { %v6528_v53 = vpack.c.bf16 %v3097_v60, %v3096_v39  ;;  %6566 = vst [vmem:[#allocation3 + $0x98] sm:$0xff] %v6533_v19   ;;  %6149 = vmatprep.mubr.msk.bf16.mxu0 %vm3532_vm2, %v8716_v27 }
 0x242   :  { %3795 = vmatpush2.bf16.msra.mxu1 %v7351_v54  ;;  %v7379_v31 = vld [vmem:[#allocation3 + $0x80] sm:$0xff]  }
 0x243   :  { %6565 = vst [vmem:[#allocation3 + $0x90] sm:$0xff] %v6528_v53   ;;  %3796 = vmatprep.subr.bf16.mxu1 %v9605_v2 }
 0x246   :  { %3797 = vmatpush2.bf16.msra.mxu1 %v7352_v63 }
 0x247   :  { %4632 = vmatprep.subr.bf16.mxu1 %v9605_v2 }
 0x248   :  { %3614 = vmatmul.mubr.bf16.gmra.mxu0 %v8726_v3  ;;  %v7376_v56 = vld [vmem:[#allocation3 + $0x98] sm:$0xff]  }
 0x249   :  { %3799 = vmatmul.mubr.bf16.vlgmr.msra.gmra.mxu1 %v8663_v44  ;;  %6150 = vmatprep.mubr.msk.bf16.mxu0 %vm3532_vm2, %v8731_v4 }
 0x24a   :  { %4633 = vmatpush1.bf16.msra.mxu1 %v7356_v14  ;;  %6167 = vmatprep.mubr.msk.bf16.mxu1 %vm3532_vm2, %v8669_v6  ;;  %v7377_v30 = vld [vmem:[#allocation3 + $0x90] sm:$0xff]  }
 0x24b   :  { %4634 = vmatprep.subr.bf16.mxu1 %v9605_v2 }
 0x24e   :  { %4635 = vmatpush1.bf16.msra.mxu1 %v7357_v50 }
 0x24f   :  { %4636 = vmatprep.subr.bf16.mxu1 %v9605_v2 }
 0x250   :  { %3622 = vmatmul.mubr.bf16.gmra.mxu0 %v8744_v58 }
 0x251   :  { %3807 = vmatmul.mubr.bf16.gmra.mxu1 %v8683_v8  ;;  %6151 = vmatprep.mubr.msk.bf16.mxu0 %vm3532_vm2, %v8749_v15 }
 0x252   :  { %4637 = vmatpush1.bf16.msra.mxu1 %v7361_v17  ;;  %6168 = vmatprep.mubr.msk.bf16.mxu1 %vm3532_vm2, %v8695_v16 }
 0x253   :  { %4638 = vmatprep.subr.bf16.mxu1 %v9605_v2 }
 0x256   :  { %4639 = vmatpush1.bf16.msra.mxu1 %v7362_v20 }
 0x257   :  { %4640 = vmatprep.subr.bf16.mxu1 %v9605_v2 }
 0x258   :  { %3630 = vmatmul.mubr.bf16.gmra.mxu0 %v8762_v12 }
 0x259   :  { %3815 = vmatmul.mubr.bf16.gmra.mxu1 %v8709_v43  ;;  %6152 = vmatprep.mubr.msk.bf16.mxu0 %vm3532_vm2, %v8767_v21 }
 0x25a   :  { %4641 = vmatpush1.bf16.msra.mxu1 %v7366_v23  ;;  %6169 = vmatprep.mubr.msk.bf16.mxu1 %vm3532_vm2, %v8716_v27 }
 0x25b   :  { %4642 = vmatprep.subr.bf16.mxu1 %v9605_v2 }
 0x25e   :  { %4643 = vmatpush1.bf16.msra.mxu1 %v7367_v25 }
 0x25f   :  { %4644 = vmatprep.subr.bf16.mxu1 %v9605_v2 }
 0x260   :  { %3638 = vmatmul.mubr.bf16.gmra.mxu0 %v8780_v61 }
 0x261   :  { %3823 = vmatmul.mubr.bf16.gmra.mxu1 %v8726_v3  ;;  %6153 = vmatprep.mubr.msk.bf16.mxu0 %vm3532_vm2, %v8785_v26 }
 0x262   :  { %4645 = vmatpush1.bf16.msra.mxu1 %v7371_v33  ;;  %6170 = vmatprep.mubr.msk.bf16.mxu1 %vm3532_vm2, %v8731_v4 }
 0x263   :  { %4646 = vmatprep.subr.bf16.mxu1 %v9605_v2 }
 0x266   :  { %4647 = vmatpush1.bf16.msra.mxu1 %v7372_v28 }
 0x267   :  { %4656 = vmatprep.subr.bf16.mxu1 %v9605_v2 }
 0x268   :  { %3646 = vmatmul.mubr.bf16.gmra.mxu0 %v8798_v29 }
 0x269   :  { %3831 = vmatmul.mubr.bf16.gmra.mxu1 %v8744_v58  ;;  %7112 = vmatprep.mubr.bf16.mxu0 %v8887_v0 }
 0x26a   :  { %4657 = vmatpush2.bf16.msra.mxu1 %v7376_v56  ;;  %6171 = vmatprep.mubr.msk.bf16.mxu1 %vm3532_vm2, %v8749_v15 }
 0x26b   :  { %4658 = vmatprep.subr.bf16.mxu1 %v9605_v2 }
 0x26e   :  { %4659 = vmatpush2.bf16.msra.mxu1 %v7377_v30 }
 0x26f   :  { %4660 = vmatprep.subr.bf16.mxu1 %v9605_v2 }
 0x271   :  { %3839 = vmatmul.mubr.bf16.gmra.mxu1 %v8762_v12 }
 0x272   :  { %4661 = vmatpush2.bf16.msra.mxu1 %v7378_v41  ;;  %6172 = vmatprep.mubr.msk.bf16.mxu1 %vm3532_vm2, %v8767_v21 }
 0x273   :  { %4662 = vmatprep.subr.bf16.mxu1 %v9605_v2 }
 0x276   :  { %4663 = vmatpush2.bf16.msra.mxu1 %v7379_v31 }
 0x279   :  { %3847 = vmatmul.mubr.bf16.gmra.mxu1 %v8780_v61 }
 0x27a   :  { %6173 = vmatprep.mubr.msk.bf16.mxu1 %vm3532_vm2, %v8785_v26 }
 0x281   :  { %3855 = vmatmul.mubr.bf16.gmra.mxu1 %v8798_v29 }
 0x282   :  { %6218 = vmatprep.mubr.msk.bf16.mxu1 %vm3532_vm2, %v8818_v59 }
 0x289   :  { %4665 = vmatmul.mubr.bf16.vlgmr.msra.gmra.mxu1 %v8663_v44  ;;  %v8840_v44 = vpop.permute.xlu0 %3380 }
 0x28a   :  { %6219 = vmatprep.mubr.msk.bf16.mxu1 %vm3532_vm2, %v8669_v6  ;;  %9678 = vst [vmem:[#allocation12_spill] sm:$0xff] %v8840_v44  ;;  %v8842_v6 = vpop.permute.xlu1 %3385 }
 0x28b   :  { %9679 = vst [vmem:[#allocation13_spill] sm:$0xff] %v8842_v6 }
 0x28d   :  { %v8847_v34 = vpop.permute.xlu0 %3370 }
 0x28e   :  { %9680 = vst [vmem:[#allocation14_spill] sm:$0xff] %v8847_v34  ;;  %v8849_v35 = vpop.permute.xlu1 %3375 }
 0x28f   :  { %9681 = vst [vmem:[#allocation15_spill] sm:$0xff] %v8849_v35 }
 0x291   :  { %4673 = vmatmul.mubr.bf16.gmra.mxu1 %v8683_v8  ;;  %v8852_v36 = vpop.permute.xlu0 %3967 }
 0x292   :  { %6220 = vmatprep.mubr.msk.bf16.mxu1 %vm3532_vm2, %v8695_v16  ;;  %9682 = vst [vmem:[#allocation16_spill] sm:$0xff] %v8852_v36  ;;  %v8854_v49 = vpop.permute.xlu1 %3972 }
 0x293   :  { %9683 = vst [vmem:[#allocation17_spill] sm:$0xff] %v8854_v49 }
 0x295   :  { %v8856_v37 = vpop.permute.xlu0 %3360 }
 0x296   :  { %v8858_v38 = vpop.permute.xlu1 %3365 }
 0x299   :  { %4681 = vmatmul.mubr.bf16.gmra.mxu1 %v8709_v43  ;;  %v8860_v18 = vpop.permute.xlu0 %3957 }
 0x29a   :  { %6221 = vmatprep.mubr.msk.bf16.mxu1 %vm3532_vm2, %v8716_v27  ;;  %9684 = vst [vmem:[#allocation18_spill] sm:$0xff] %v8860_v18  ;;  %v8862_v24 = vpop.permute.xlu1 %3962 }
 0x29b   :  { %9685 = vst [vmem:[#allocation19_spill] sm:$0xff] %v8862_v24 }
 0x29d   :  { %v8864_v42 = vpop.permute.xlu0 %3350 }
 0x29e   :  { %v8866_v45 = vpop.permute.xlu1 %3355 }
 0x2a1   :  { %4689 = vmatmul.mubr.bf16.gmra.mxu1 %v8726_v3  ;;  %v8868_v46 = vpop.permute.xlu0 %3947 }
 0x2a2   :  { %6222 = vmatprep.mubr.msk.bf16.mxu1 %vm3532_vm2, %v8731_v4  ;;  %v8870_v7 = vpop.permute.xlu1 %3952 }
 0x2a3   :  { %9686 = vst [vmem:[#allocation20_spill] sm:$0xff] %v8870_v7 }
 0x2a5   :  { %v8872_v22 = vpop.permute.xlu0 %3340 }
 0x2a6   :  { %9687 = vst [vmem:[#allocation21_spill] sm:$0xff] %v8872_v22  ;;  %v8874_v47 = vpop.permute.xlu1 %3345 }
 0x2a9   :  { %4697 = vmatmul.mubr.bf16.gmra.mxu1 %v8744_v58  ;;  %v8876_v1 = vpop.permute.xlu0 %3937 }
 0x2aa   :  { %6223 = vmatprep.mubr.msk.bf16.mxu1 %vm3532_vm2, %v8749_v15  ;;  %v8878_v48 = vpop.permute.xlu1 %3942 }
 0x2ad   :  { %v8880_v40 = vpop.permute.xlu0 %3330 }
 0x2ae   :  { %v8882_v13 = vpop.permute.xlu1 %3335 }
 0x2b1   :  { %4705 = vmatmul.mubr.bf16.gmra.mxu1 %v8762_v12  ;;  %v8890_v11 = vpop.permute.xlu0 %3927 }
 0x2b2   :  { %6224 = vmatprep.mubr.msk.bf16.mxu1 %vm3532_vm2, %v8767_v21  ;;  %v8892_v62 = vpop.permute.xlu1 %3932 }
 0x2b5   :  { %v8894_v55 = vpop.permute.xlu0 %3320 }
 0x2b6   :  { %v8896_v57 = vpop.permute.xlu1 %3325 }
 0x2b9   :  { %4713 = vmatmul.mubr.bf16.gmra.mxu1 %v8780_v61  ;;  %v8898_v19 = vpop.permute.xlu0 %3917 }
 0x2ba   :  { %6225 = vmatprep.mubr.msk.bf16.mxu1 %vm3532_vm2, %v8785_v26  ;;  %9689 = vst [vmem:[#allocation23_spill] sm:$0xff] %v8898_v19  ;;  %v8900_v53 = vpop.permute.xlu1 %3922 }
 0x2bb   :  { %9690 = vst [vmem:[#allocation24_spill] sm:$0xff] %v8900_v53 }
 0x2bd   :  { %v8902_v50 = vpop.permute.xlu0 %3310 }
 0x2be   :  { %9691 = vst [vmem:[#allocation25_spill] sm:$0xff] %v8902_v50  ;;  %v8904_v17 = vpop.permute.xlu1 %3315 }
 0x2bf   :  { %9692 = vst [vmem:[#allocation26_spill] sm:$0xff] %v8904_v17 }
 0x2c1   :  { %4721 = vmatmul.mubr.bf16.gmra.mxu1 %v8798_v29  ;;  %v8910_v41 = vpop.permute.xlu0 %3907 }
 0x2c2   :  { %9693 = vst [vmem:[#allocation27_spill] sm:$0xff] %v8910_v41  ;;  %v8912_v31 = vpop.permute.xlu1 %3912 }
 0x2c3   :  { %9694 = vst [vmem:[#allocation28_spill] sm:$0xff] %v8912_v31 }
 0x2c5   :  { %v8919_v26 = vpop.permute.xlu0 %3897 }
 0x2c6   :  { %9695 = vst [vmem:[#allocation29_spill] sm:$0xff] %v8919_v26 }
 0x2f0   :  { %v3591_v52 = vpop.f32.mrf.mxu0 }
 0x2f1   :  { %v3592_v23 = vadd.f32 %v3591_v52, %v8902_v50 }
 0x2f2   :  { %v3593_v5 = vpop.f32.mrf.mxu0 }
 0x2f3   :  { %v3654_v5 = vmax.f32 %v3592_v23, 0.0  ;;  %v8921_v23 = vpop.permute.xlu1 %3902 }
 0x2f4   :  { %v3594_v9 = vpop.f32.mrf.mxu0 }
 0x2f6   :  { %v3596_v51 = vpop.f32.mrf.mxu0 }
 0x2f7   :  { %v3595_v51 = vadd.f32 %v3594_v9, %v8904_v17 }
 0x2f8   :  { %v3599_v10 = vpop.f32.mrf.mxu0 }
 0x2f9   :  { %v3600_v2 = vadd.f32 %v3599_v10, %v8894_v55 }
 0x2fa   :  { %v3601_v32 = vpop.f32.mrf.mxu0 }
 0x2fb   :  { %v3656_v61 = vmax.f32 %v3600_v2, 0.0 }
 0x2fc   :  { %v3602_v39 = vpop.f32.mrf.mxu0 }
 0x2fe   :  { %v3604_v60 = vpop.f32.mrf.mxu0 }
 0x300   :  { %v3607_v54 = vpop.f32.mrf.mxu0 }
 0x302   :  { %v3609_v63 = vpop.f32.mrf.mxu0 }
 0x304   :  { %v3610_v14 = vpop.f32.mrf.mxu0 }
 0x306   :  { %v3612_v20 = vpop.f32.mrf.mxu0 }
 0x308   :  { %v8907_v25 = vpop.f32.mrf.mxu0 }
 0x309   :  { %v3800_v33 = vpop.f32.mrf.mxu1 }
 0x30a   :  { %v3801_v28 = vadd.f32 %v3800_v33, %v8902_v50  ;;  %v3617_v56 = vpop.f32.mrf.mxu0  ;;  %v3655_v33 = vmax.f32 %v3595_v51, 0.0 }
 0x30b   :  { %v3802_v30 = vpop.f32.mrf.mxu1 }
 0x30c   :  { %v3863_v32 = vmax.f32 %v3801_v28, 0.0  ;;  %v3618_v60 = vpop.f32.mrf.mxu0 }
 0x30d   :  { %v3803_v63 = vpop.f32.mrf.mxu1 }
 0x30e   :  { %v3879_v20 = vmax.f32 %v3654_v5, %v3863_v32  ;;  %v3804_v52 = vadd.f32 %v3803_v63, %v8904_v17  ;;  %v3620_v0 = vpop.f32.mrf.mxu0  ;;  %v3603_v63 = vadd.f32 %v3602_v39, %v8896_v57 }
 0x30f   :  { %v3805_v29 = vpop.f32.mrf.mxu1 }
 0x310   :  { %v3864_v56 = vmax.f32 %v3804_v52, 0.0  ;;  %v8917_v30 = vpop.f32.mrf.mxu0  ;;  %v3975_v0 = vadd.f32 %v8919_v26, %v3879_v20  ;;  %v3657_v2 = vmax.f32 %v3603_v63, 0.0  ;;  %v3608_v20 = vadd.f32 %v3607_v54, %v8880_v40 }
 0x311   :  { %v3808_v50 = vpop.f32.mrf.mxu1 }
 0x312   :  { %v3880_v9 = vmax.f32 %v3655_v33, %v3864_v56  ;;  %v3809_v28 = vadd.f32 %v3808_v50, %v8894_v55  ;;  %v3625_v5 = vpop.f32.mrf.mxu0  ;;  %v3658_v63 = vmax.f32 %v3608_v20, 0.0  ;;  %v3619_v20 = vadd.f32 %v3618_v60, %v8874_v47 }
 0x313   :  { %v3810_v32 = vpop.f32.mrf.mxu1 }
 0x314   :  { %v3976_v29 = vadd.f32 %v8921_v23, %v3880_v9  ;;  %v3865_v10 = vmax.f32 %v3809_v28, 0.0  ;;  %v8927_v51 = vpop.f32.mrf.mxu0 }
 0x315   :  { %v3811_v52 = vpop.f32.mrf.mxu1 }
 0x316   :  { %v3881_v17 = vmax.f32 %v3656_v61, %v3865_v10  ;;  %v3812_v21 = vadd.f32 %v3811_v52, %v8896_v57  ;;  %v8930_v12 = vpack.c.bf16 %v3976_v29, %v3975_v0  ;;  %v3628_v33 = vpop.f32.mrf.mxu0  ;;  %v3611_v61 = vadd.f32 %v3610_v14, %v8882_v13 }
 0x317   :  { %v3813_v50 = vpop.f32.mrf.mxu1 }
 0x318   :  { %v3866_v56 = vmax.f32 %v3812_v21, 0.0  ;;  %v8932_v5 = vpop.f32.mrf.mxu0  ;;  %v3977_v10 = vadd.f32 %v8910_v41, %v3881_v17  ;;  %v3616_v17 = vadd.f32 %v8907_v25, %v8872_v22 }
 0x319   :  { %v3816_v39 = vpop.f32.mrf.mxu1 }
 0x31a   :  { %v3882_v32 = vmax.f32 %v3657_v2, %v3866_v56  ;;  %v3817_v9 = vadd.f32 %v3816_v39, %v8880_v40  ;;  %v3633_v28 = vpop.f32.mrf.mxu0  ;;  %v3659_v56 = vmax.f32 %v3611_v61, 0.0 }
 0x31b   :  { %v3818_v26 = vpop.f32.mrf.mxu1 }
 0x31c   :  { %v3978_v0 = vadd.f32 %v8912_v31, %v3882_v32  ;;  %v3867_v29 = vmax.f32 %v3817_v9, 0.0  ;;  %v8939_v52 = vpop.f32.mrf.mxu0 }
 0x31d   :  { %v3819_v21 = vpop.f32.mrf.mxu1 }
 0x31e   :  { %v3820_v33 = vadd.f32 %v3819_v21, %v8882_v13  ;;  %v8942_v50 = vpack.c.bf16 %v3978_v0, %v3977_v10  ;;  %v3636_v54 = vpop.f32.mrf.mxu0  ;;  %v3883_v39 = vmax.f32 %v3658_v63, %v3867_v29  ;;  %v3660_v63 = vmax.f32 %v3616_v17, 0.0 }
 0x31f   :  { %v3821_v2 = vpop.f32.mrf.mxu1 }
 0x320   :  { %v3868_v26 = vmax.f32 %v3820_v33, 0.0  ;;  %v3639_v28 = vpop.f32.mrf.mxu0  ;;  %v3979_v10 = vadd.f32 %v8898_v19, %v3883_v39 }
 0x321   :  { %v3824_v14 = vpop.f32.mrf.mxu1 }
 0x322   :  { %v3884_v32 = vmax.f32 %v3659_v56, %v3868_v26  ;;  %v3825_v9 = vadd.f32 %v3824_v14, %v8872_v22  ;;  %v3641_v31 = vpop.f32.mrf.mxu0  ;;  %v3661_v56 = vmax.f32 %v3619_v20, 0.0 }
 0x323   :  { %v3826_v41 = vpop.f32.mrf.mxu1 }
 0x324   :  { %v3980_v0 = vadd.f32 %v8900_v53, %v3884_v32  ;;  %v3869_v21 = vmax.f32 %v3825_v9, 0.0  ;;  %v3642_v61 = vpop.f32.mrf.mxu0 }
 0x325   :  { %v3827_v29 = vpop.f32.mrf.mxu1 }
 0x326   :  { %v3828_v33 = vadd.f32 %v3827_v29, %v8874_v47  ;;  %v8951_v54 = vpack.c.bf16 %v3980_v0, %v3979_v10  ;;  %v3644_v25 = vpop.f32.mrf.mxu0  ;;  %v3885_v26 = vmax.f32 %v3660_v63, %v3869_v21 }
 0x327   :  { %v3829_v2 = vpop.f32.mrf.mxu1 }
 0x328   :  { %v3870_v31 = vmax.f32 %v3828_v33, 0.0  ;;  %v3647_v41 = vpop.f32.mrf.mxu0  ;;  %v3981_v32 = vadd.f32 %v8890_v11, %v3885_v26  ;;  %v3643_v26 = vadd.f32 %v3642_v61, %v8849_v35 }
 0x329   :  { %v3832_v14 = vpop.f32.mrf.mxu1 }
 0x32a   :  { %v3886_v60 = vmax.f32 %v3661_v56, %v3870_v31  ;;  %v3649_v22 = vpop.f32.mrf.mxu0  ;;  %v3667_v61 = vmax.f32 %v3643_v26, 0.0  ;;  %v3627_v26 = vadd.f32 %v8927_v51, %v8866_v45 }
 0x32b   :  { %v3834_v39 = vpop.f32.mrf.mxu1 }
 0x32c   :  { %v3982_v9 = vadd.f32 %v8892_v62, %v3886_v60  ;;  %v3650_v53 = vpop.f32.mrf.mxu0  ;;  %v3648_v60 = vadd.f32 %v3647_v41, %v8840_v44 }
 0x32d   :  { %v3835_v17 = vpop.f32.mrf.mxu1 }
 0x32e   :  { %v8955_v19 = vpack.c.bf16 %v3982_v9, %v3981_v32  ;;  %v3652_v0 = vpop.f32.mrf.mxu0  ;;  %v3640_v9 = vadd.f32 %v3639_v28, %v8847_v34  ;;  %v3632_v28 = vadd.f32 %v8932_v5, %v8856_v37 }
 0x32f   :  { %v3837_v10 = vpop.f32.mrf.mxu1 }
 0x330   :  { %v3651_v10 = vadd.f32 %v3650_v53, %v8842_v6  ;;  %v3666_v53 = vmax.f32 %v3640_v9, 0.0  ;;  %v3624_v9 = vadd.f32 %v8917_v30, %v8864_v42 }
 0x331   :  { %v3840_v29 = vpop.f32.mrf.mxu1 }
 0x332   :  { %v3841_v41 = vadd.f32 %v3840_v29, %v8856_v37  ;;  %v3662_v30 = vmax.f32 %v3624_v9, 0.0 }
 0x333   :  { %v3842_v25 = vpop.f32.mrf.mxu1 }
 0x335   :  { %v3843_v20 = vpop.f32.mrf.mxu1 }
 0x336   :  { %v3844_v25 = vadd.f32 %v3843_v20, %v8858_v38  ;;  %v3836_v20 = vadd.f32 %v3835_v17, %v8866_v45  ;;  %v3664_v17 = vmax.f32 %v3632_v28, 0.0 }
 0x337   :  { %v3845_v21 = vpop.f32.mrf.mxu1 }
 0x339   :  { %v3848_v63 = vpop.f32.mrf.mxu1 }
 0x33a   :  { %v3849_v39 = vadd.f32 %v3848_v63, %v8847_v34 }
 0x33b   :  { %v3850_v33 = vpop.f32.mrf.mxu1 }
 0x33c   :  { %v3875_v63 = vmax.f32 %v3849_v39, 0.0  ;;  %v3833_v39 = vadd.f32 %v3832_v14, %v8864_v42 }
 0x33d   :  { %v3851_v2 = vpop.f32.mrf.mxu1 }
 0x33e   :  { %v3852_v22 = vadd.f32 %v3851_v2, %v8849_v35  ;;  %v3635_v2 = vadd.f32 %v8939_v52, %v8858_v38  ;;  %v3668_v35 = vmax.f32 %v3648_v60, 0.0  ;;  %v3871_v14 = vmax.f32 %v3833_v39, 0.0 }
 0x33f   :  { %v3853_v56 = vpop.f32.mrf.mxu1 }
 0x340   :  { %v3876_v21 = vmax.f32 %v3852_v22, 0.0  ;;  %v3665_v60 = vmax.f32 %v3635_v2, 0.0  ;;  %v3663_v2 = vmax.f32 %v3627_v26, 0.0 }
 0x341   :  { %v3856_v31 = vpop.f32.mrf.mxu1 }
 0x342   :  { %v3857_v32 = vadd.f32 %v3856_v31, %v8840_v44  ;;  %v3892_v44 = vmax.f32 %v3667_v61, %v3876_v21 }
 0x343   :  { %v3858_v0 = vpop.f32.mrf.mxu1 }
 0x344   :  { %v3877_v33 = vmax.f32 %v3857_v32, 0.0  ;;  %v3669_v0 = vmax.f32 %v3651_v10, 0.0  ;;  %v3874_v32 = vmax.f32 %v3844_v25, 0.0  ;;  %v3872_v10 = vmax.f32 %v3836_v20, 0.0 }
 0x345   :  { %v3859_v56 = vpop.f32.mrf.mxu1 }
 0x346   :  { %v3860_v31 = vadd.f32 %v3859_v56, %v8842_v6  ;;  %v3893_v34 = vmax.f32 %v3668_v35, %v3877_v33  ;;  %v3873_v56 = vmax.f32 %v3841_v41, 0.0  ;;  %v3891_v6 = vmax.f32 %v3666_v53, %v3875_v63 }
 0x347   :  { %v3861_v22 = vpop.f32.mrf.mxu1  ;;  %v3890_v21 = vmax.f32 %v3665_v60, %v3874_v32  ;;  %v3988_v35 = vadd.f32 %v8862_v24, %v3892_v44  ;;  %v3888_v28 = vmax.f32 %v3663_v2, %v3872_v10 }
 0x348   :  { %v3878_v52 = vmax.f32 %v3860_v31, 0.0  ;;  %v3989_v33 = vadd.f32 %v8852_v36, %v3893_v34  ;;  %v3889_v41 = vmax.f32 %v3664_v17, %v3873_v56  ;;  %v3987_v63 = vadd.f32 %v8860_v18, %v3891_v6 }
 0x349   :  { %v8974_v29 = vpop.f32.mrf.mxu1  ;;  %v3887_v34 = vmax.f32 %v3662_v30, %v3871_v14  ;;  %v7383_v30 = vld [vmem:[#allocation3 + $0x90] sm:$0xff]  }
 0x34a   :  { %v3894_v5 = vmax.f32 %v3669_v0, %v3878_v52  ;;  %v3986_v0 = vadd.f32 %v8870_v7, %v3890_v21  ;;  %v3997_v20 = vpack.c.bf16 %v3988_v35, %v3987_v63  ;;  %v3985_v22 = vadd.f32 %v8868_v46, %v3889_v41  ;;  %v7382_v63 = vld [vmem:[#allocation3 + $0x98] sm:$0xff]  }
 0x34b   :  { %v4668_v25 = vpop.f32.mrf.mxu1  ;;  %v3984_v52 = vadd.f32 %v8878_v48, %v3888_v28  ;;  %v3983_v60 = vadd.f32 %v8876_v1, %v3887_v34  ;;  %v9696_v41 = vmov 0   ;;  %v7386_v34 = vld [vmem:[#allocation3 + $0x88] sm:$0xff]  }
 0x34c   :  { %v3990_v51 = vadd.f32 %v8854_v49, %v3894_v5  ;;  %v3996_v26 = vpack.c.bf16 %v3986_v0, %v3985_v22  ;;  %v9033_v0 = vld [vmem:[%s9595_s10 + $0x20] sm:$0xff]  }
 0x34d   :  { %v8982_v61 = vpop.f32.mrf.mxu1  ;;  %v3995_v56 = vpack.c.bf16 %v3984_v52, %v3983_v60  ;;  %9698 = vst [vmem:[#allocation31_spill] sm:$0xff] %v9033_v0  ;;  %v7387_v52 = vld [vmem:[#allocation3 + $0x80] sm:$0xff]  }
 0x34e   :  { %v3998_v31 = vpack.c.bf16 %v3990_v51, %v3989_v33 }
 0x34f   :  { %v4671_v53 = vpop.f32.mrf.mxu1 }
 0x350   :  { %7096 = vmatprep.subr.bf16.mxu0 %v3998_v31 }
 0x351   :  { %7097 = vmatpush3.bf16.msra.mxu0 %v3998_v31  ;;  %v8986_v44 = vpop.f32.mrf.mxu1 }
 0x352   :  { %7098 = vmatprep.subr.bf16.mxu0 %v3997_v20 }
 0x353   :  { %v4676_v32 = vpop.f32.mrf.mxu1 }
 0x355   :  { %7099 = vmatpush3.bf16.msra.mxu0 %v3997_v20  ;;  %v8990_v6 = vpop.f32.mrf.mxu1 }
 0x356   :  { %7100 = vmatprep.subr.bf16.mxu0 %v3996_v26 }
 0x357   :  { %v4679_v39 = vpop.f32.mrf.mxu1 }
 0x358   :  { %v9051_v39 = vld [vmem:[%s9595_s10 + $0x30] sm:$0xff]  }
 0x359   :  { %7101 = vmatpush3.bf16.msra.mxu0 %v3996_v26  ;;  %v8993_v5 = vpop.f32.mrf.mxu1  ;;  %v9044_v26 = vld [vmem:[%s9595_s10 + $0x28] sm:$0xff]   ;;  %9700 = vst [vmem:[#allocation33_spill] sm:$0xff] %v9051_v39 }
 0x35a   :  { %7102 = vmatprep.subr.bf16.mxu0 %v3995_v56  ;;  %9699 = vst [vmem:[#allocation32_spill] sm:$0xff] %v9044_v26 }
 0x35b   :  { %v4684_v9 = vpop.f32.mrf.mxu1 }
 0x35c   :  { %v7390_v9 = vld [vmem:[#allocation3 + $0x78] sm:$0xff]  }
 0x35d   :  { %7103 = vmatpush3.bf16.msra.mxu0 %v3995_v56  ;;  %v8995_v17 = vpop.f32.mrf.mxu1 }
 0x35e   :  { %7104 = vmatprep.subr.bf16.mxu0 %v8955_v19 }
 0x35f   :  { %v4687_v10 = vpop.f32.mrf.mxu1 }
 0x361   :  { %7105 = vmatpush3.bf16.msra.mxu0 %v8955_v19  ;;  %v8999_v25 = vpop.f32.mrf.mxu1  ;;  %v7381_v19 = vld [vmem:[%s9595_s10 + $0x8] sm:$0xff]  }
 0x362   :  { %7106 = vmatprep.subr.bf16.mxu0 %v8951_v54 }
 0x363   :  { %v4692_v21 = vpop.f32.mrf.mxu1 }
 0x365   :  { %7107 = vmatpush3.bf16.msra.mxu0 %v8951_v54  ;;  %v9003_v35 = vpop.f32.mrf.mxu1  ;;  %v7384_v54 = vld [vmem:[%s9595_s10 + $0x10] sm:$0xff]  }
 0x366   :  { %7108 = vmatprep.subr.bf16.mxu0 %v8942_v50 }
 0x367   :  { %v4695_v33 = vpop.f32.mrf.mxu1 }
 0x368   :  { %v7391_v33 = vld [vmem:[#allocation3 + $0x70] sm:$0xff]  }
 0x369   :  { %7109 = vmatpush3.bf16.msra.mxu0 %v8942_v50  ;;  %v9007_v51 = vpop.f32.mrf.mxu1 }
 0x36a   :  { %7110 = vmatprep.subr.bf16.mxu0 %v8930_v12 }
 0x36b   :  { %v4700_v2 = vpop.f32.mrf.mxu1 }
 0x36c   :  { %v9062_v2 = vld [vmem:[%s9595_s10 + $0x38] sm:$0xff]  }
 0x36d   :  { %7111 = vmatpush3.bf16.msra.mxu0 %v8930_v12  ;;  %v9014_v14 = vpop.f32.mrf.mxu1  ;;  %v9026_v12 = vld [vmem:[%s9595_s10 + $0x18] sm:$0xff]   ;;  %9702 = vst [vmem:[#allocation35_spill] sm:$0xff] %v9062_v2 }
 0x36e   :  { %4841 = vmatprep.subr.bf16.mxu0 %v9696_v41  ;;  %9697 = vst [vmem:[#allocation30_spill] sm:$0xff] %v9026_v12 }
 0x36f   :  { %v4703_v50 = vpop.f32.mrf.mxu1 }
 0x370   :  { %7113 = vmatmul.mubr.bf16.vlgmr.msra.gmra.mxu0 %v7381_v19  ;;  %v7394_v50 = vld [vmem:[#allocation3 + $0x68] sm:$0xff]  }
 0x371   :  { %v9020_v31 = vpop.f32.mrf.mxu1  ;;  %4842 = vmatpush1.bf16.msra.mxu0 %v7382_v63  ;;  %7116 = vmatprep.mubr.bf16.mxu0 %v7384_v54  ;;  %v9069_v54 = vld [vmem:[%s9595_s10 + $0x40] sm:$0xff]  }
 0x372   :  { %4843 = vmatprep.subr.bf16.mxu0 %v9696_v41  ;;  %9704 = vst [vmem:[#allocation37_spill] sm:$0xff] %v9069_v54 }
 0x373   :  { %v4708_v53 = vpop.f32.mrf.mxu1 }
 0x374   :  { %v7395_v53 = vld [vmem:[#allocation3 + $0x60] sm:$0xff]  }
 0x375   :  { %v9028_v28 = vpop.f32.mrf.mxu1  ;;  %4844 = vmatpush1.bf16.msra.mxu0 %v7383_v30  ;;  %v9078_v30 = vld [vmem:[%s9595_s10 + $0x48] sm:$0xff]  }
 0x376   :  { %4845 = vmatprep.subr.bf16.mxu0 %v9696_v41  ;;  %9705 = vst [vmem:[#allocation38_spill] sm:$0xff] %v9078_v30 }
 0x377   :  { %v4711_v20 = vpop.f32.mrf.mxu1 }
 0x378   :  { %7117 = vmatmul.mubr.bf16.gmra.mxu0 %v9026_v12  ;;  %v9083_v20 = vld [vmem:[%s9595_s10 + $0x50] sm:$0xff]  }
 0x379   :  { %v9037_v22 = vpop.f32.mrf.mxu1  ;;  %4846 = vmatpush1.bf16.msra.mxu0 %v7386_v34  ;;  %7120 = vmatprep.mubr.bf16.mxu0 %v9033_v0  ;;  %9706 = vst [vmem:[#allocation39_spill] sm:$0xff] %v9083_v20  ;;  %v7402_v34 = vld [vmem:[#allocation3 + $0xb8] sm:$0xff]  }
 0x37a   :  { %4847 = vmatprep.subr.bf16.mxu0 %v9696_v41 }
 0x37b   :  { %v4716_v32 = vpop.f32.mrf.mxu1 }
 0x37c   :  { %v7403_v32 = vld [vmem:[#allocation3 + $0xb0] sm:$0xff]  }
 0x37d   :  { %v9046_v60 = vpop.f32.mrf.mxu1  ;;  %4848 = vmatpush1.bf16.msra.mxu0 %v7387_v52  ;;  %v9092_v52 = vld [vmem:[%s9595_s10 + $0x58] sm:$0xff]  }
 0x37e   :  { %4849 = vmatprep.subr.bf16.mxu0 %v9696_v41  ;;  %9707 = vst [vmem:[#allocation40_spill] sm:$0xff] %v9092_v52 }
 0x37f   :  { %v4719_v56 = vpop.f32.mrf.mxu1 }
 0x380   :  { %7121 = vmatmul.mubr.bf16.gmra.mxu0 %v9044_v26  ;;  %v9097_v56 = vld [vmem:[%s9595_s10 + $0x60] sm:$0xff]  }
 0x381   :  { %v9055_v10 = vpop.f32.mrf.mxu1  ;;  %4850 = vmatpush1.bf16.msra.mxu0 %v7390_v9  ;;  %7124 = vmatprep.mubr.bf16.mxu0 %v9051_v39  ;;  %9708 = vst [vmem:[#allocation41_spill] sm:$0xff] %v9097_v56  ;;  %v7406_v9 = vld [vmem:[#allocation3 + $0xa8] sm:$0xff]  }
 0x382   :  { %9701 = vst [vmem:[#allocation34_spill] sm:$0xff] %v9055_v10  ;;  %4851 = vmatprep.subr.bf16.mxu0 %v9696_v41 }
 0x383   :  { %v4724_v21 = vpop.f32.mrf.mxu1 }
 0x384   :  { %v7407_v21 = vld [vmem:[#allocation3 + $0xa0] sm:$0xff]  }
 0x385   :  { %v9064_v19 = vpop.f32.mrf.mxu1  ;;  %4852 = vmatpush1.bf16.msra.mxu0 %v7391_v33  ;;  %v9106_v33 = vld [vmem:[%s9595_s10 + $0x68] sm:$0xff]  }
 0x386   :  { %9703 = vst [vmem:[#allocation36_spill] sm:$0xff] %v9064_v19  ;;  %4853 = vmatprep.subr.bf16.mxu0 %v9696_v41  ;;  %9709 = vst [vmem:[#allocation42_spill] sm:$0xff] %v9106_v33 }
 0x387   :  { %v4727_v63 = vpop.f32.mrf.mxu1 }
 0x388   :  { %7125 = vmatmul.mubr.bf16.gmra.mxu0 %v9062_v2  ;;  %v9118_v63 = vld [vmem:[%s9595_s10 + $0x78] sm:$0xff]  }
 0x389   :  { %4854 = vmatpush1.bf16.msra.mxu0 %v7394_v50  ;;  %7128 = vmatprep.mubr.bf16.mxu0 %v9069_v54  ;;  %v9111_v50 = vld [vmem:[%s9595_s10 + $0x70] sm:$0xff]   ;;  %9711 = vst [vmem:[#allocation44_spill] sm:$0xff] %v9118_v63 }
 0x38a   :  { %4855 = vmatprep.subr.bf16.mxu0 %v9696_v41  ;;  %9710 = vst [vmem:[#allocation43_spill] sm:$0xff] %v9111_v50 }
 0x38d   :  { %4856 = vmatpush1.bf16.msra.mxu0 %v7395_v53  ;;  %v7655_v53 = vld [vmem:[%s9592_s7 + $0x14] ss:$8 sps:$4 sm:$0xff]  }
 0x38e   :  { %4865 = vmatprep.subr.bf16.mxu0 %v9696_v41 }
 0x390   :  { %7129 = vmatmul.mubr.bf16.gmra.mxu0 %v9078_v30 }
 0x391   :  { %7132 = vmatprep.mubr.bf16.mxu0 %v9083_v20  ;;  %4866 = vmatpush2.bf16.msra.mxu0 %v7402_v34 }
 0x392   :  { %4867 = vmatprep.subr.bf16.mxu0 %v9696_v41 }
 0x395   :  { %4868 = vmatpush2.bf16.msra.mxu0 %v7403_v32 }
 0x396   :  { %4869 = vmatprep.subr.bf16.mxu0 %v9696_v41 }
 0x398   :  { %7133 = vmatmul.mubr.bf16.gmra.mxu0 %v9092_v52 }
 0x399   :  { %7136 = vmatprep.mubr.bf16.mxu0 %v9097_v56  ;;  %4870 = vmatpush2.bf16.msra.mxu0 %v7406_v9 }
 0x39a   :  { %4871 = vmatprep.subr.bf16.mxu0 %v9696_v41  ;;  %v7654_v41 = vld [vmem:[%s9592_s7] ss:$8 sps:$4 sm:$0xff]  }
 0x39d   :  { %4872 = vmatpush2.bf16.msra.mxu0 %v7407_v21 }
 0x3a0   :  { %7137 = vmatmul.mubr.bf16.gmra.mxu0 %v9106_v33 }
 0x3a1   :  { %7140 = vmatprep.mubr.bf16.mxu0 %v9111_v50 }
 0x3a8   :  { %7141 = vmatmul.mubr.bf16.gmra.mxu0 %v9118_v63 }
 0x3a9   :  { %6238 = vmatprep.mubr.msk.bf16.mxu0 %vm3532_vm2, %v8818_v59  ;;  %v9712_v59 = vld [vmem:[#allocation7_spill] sm:$0xff] }
 0x3b0   :  { %4874 = vmatmul.mubr.bf16.vlgmr.msra.gmra.mxu0 %v7654_v41 }
 0x3b1   :  { %6239 = vmatprep.mubr.msk.bf16.mxu0 %vm3532_vm2, %v7655_v53 }
 0x3b8   :  { %4882 = vmatmul.mubr.bf16.gmra.mxu0 %v8683_v8  ;;  %v9713_v8 = vld [vmem:[#allocation8_spill] sm:$0xff] }
 0x3b9   :  { %6240 = vmatprep.mubr.msk.bf16.mxu0 %vm3532_vm2, %v8695_v16  ;;  %v9714_v16 = vld [vmem:[#allocation9_spill] sm:$0xff] }
 0x3c0   :  { %4890 = vmatmul.mubr.bf16.gmra.mxu0 %v8709_v43  ;;  %v9715_v43 = vld [vmem:[#allocation10_spill] sm:$0xff] }
 0x3c1   :  { %6241 = vmatprep.mubr.msk.bf16.mxu0 %vm3532_vm2, %v8716_v27  ;;  %v9716_v27 = vld [vmem:[#allocation11_spill] sm:$0xff] }
 0x3c8   :  { %4898 = vmatmul.mubr.bf16.gmra.mxu0 %v8726_v3  ;;  %v9717_v3 = vld [vmem:[#allocation22_spill] sm:$0xff] }
 0x3c9   :  { %6242 = vmatprep.mubr.msk.bf16.mxu0 %vm3532_vm2, %v8731_v4  ;;  %v9150_v4 = vpop.permute.xlu0 %4031 }
 0x3ca   :  { %9718 = vst [vmem:[#allocation7_spill] sm:$0xff] %v9150_v4 }
 0x3cd   :  { %v9154_v34 = vpop.permute.xlu0 %4021 }
 0x3ce   :  { %9720 = vst [vmem:[#allocation9_spill] sm:$0xff] %v9154_v34 }
 0x3d0   :  { %4906 = vmatmul.mubr.bf16.gmra.mxu0 %v8744_v58  ;;  %v9152_v58 = vpop.permute.xlu1 %4036 }
 0x3d1   :  { %6243 = vmatprep.mubr.msk.bf16.mxu0 %vm3532_vm2, %v8749_v15  ;;  %9719 = vst [vmem:[#allocation8_spill] sm:$0xff] %v9152_v58  ;;  %v9158_v9 = vpop.permute.xlu0 %4011 }
 0x3d2   :  { %9722 = vst [vmem:[#allocation11_spill] sm:$0xff] %v9158_v9 }
 0x3d4   :  { %v9156_v15 = vpop.permute.xlu1 %4026 }
 0x3d5   :  { %9721 = vst [vmem:[#allocation10_spill] sm:$0xff] %v9156_v15 }
 0x3d8   :  { %4914 = vmatmul.mubr.bf16.gmra.mxu0 %v9712_v59  ;;  %v9160_v41 = vpop.permute.xlu1 %4016 }
 0x3d9   :  { %6244 = vmatprep.mubr.msk.bf16.mxu0 %vm3532_vm2, %v9713_v8  ;;  %9723 = vst [vmem:[#allocation22_spill] sm:$0xff] %v9160_v41  ;;  %v9162_v8 = vpop.permute.xlu0 %4001 }
 0x3da   :  { %9724 = vst [vmem:[#allocation45_spill] sm:$0xff] %v9162_v8 }
 0x3dd   :  { %v9166_v63 = vpop.permute.xlu0 %4071 }
 0x3e0   :  { %4922 = vmatmul.mubr.bf16.gmra.mxu0 %v9714_v16 }
 0x3e1   :  { %6245 = vmatprep.mubr.msk.bf16.mxu0 %vm3532_vm2, %v9715_v43  ;;  %v9164_v43 = vpop.permute.xlu1 %4006  ;;  %v9173_v30 = vpop.permute.xlu0 %4151 }
 0x3e2   :  { %9725 = vst [vmem:[#allocation46_spill] sm:$0xff] %v9164_v43  ;;  %9726 = vst [vmem:[#allocation47_spill] sm:$0xff] %v9173_v30 }
 0x3e5   :  { %v9168_v33 = vpop.permute.xlu1 %4076 }
 0x3e8   :  { %4930 = vmatmul.mubr.bf16.gmra.mxu0 %v9716_v27 }
 0x3e9   :  { %7200 = vmatprep.mubr.bf16.mxu0 %v9717_v3  ;;  %v9176_v39 = vpop.permute.xlu1 %4156 }
 0x3ea   :  { %9727 = vst [vmem:[#allocation48_spill] sm:$0xff] %v9176_v39 }
 0x430   :  { %v7114_v32 = vpop.f32.mrf.mxu0 }
 0x431   :  { %v4298_v52 = vadd.f32 %v7114_v32, %v9158_v9  ;;  %v9183_v9 = vpop.permute.xlu0 %4061 }
 0x432   :  { %v4289_v21 = vpop.f32.mrf.mxu0 }
 0x433   :  { %v6192_v26 = vmul.f32 -1.442695, %v4298_v52 }
 0x434   :  { %v7115_v53 = vpop.f32.mrf.mxu0 }
 0x435   :  { %v4301_v54 = vadd.f32 %v7115_v53, %v9160_v41  ;;  %7428 = vpow2.f32 %v6192_v26  ;;  %v9185_v41 = vpop.permute.xlu1 %4066 }
 0x436   :  { %v4292_v59 = vpop.f32.mrf.mxu0 }
 0x437   :  { %v4293_v0 = vadd.f32 %v4292_v59, %v9164_v43  ;;  %v6193_v36 = vmul.f32 -1.442695, %v4301_v54  ;;  %v7408_v54 = vld [vmem:[%s9596_s11] sm:$0xff]  }
 0x438   :  { %v7118_v16 = vpop.f32.mrf.mxu0  ;;  %7152 = vmatprep.mubr.msk.bf16.mxu1 %vm3532_vm2, %v7408_v54 }
 0x439   :  { %v4314_v49 = vadd.f32 %v7118_v16, %v9150_v4  ;;  %v6191_v18 = vmul.f32 -1.442695, %v4293_v0  ;;  %7430 = vpow2.f32 %v6193_v36  ;;  %v9193_v0 = vpop.permute.xlu0 %4141  ;;  %v9195_v26 = vpop.permute.xlu1 %4146 }
 0x43a   :  { %v4305_v27 = vpop.f32.mrf.mxu0  ;;  %9728 = vst [vmem:[#allocation49_spill] sm:$0xff] %v9193_v0  ;;  %9729 = vst [vmem:[#allocation50_spill] sm:$0xff] %v9195_v26 }
 0x43b   :  { %v4306_v32 = vadd.f32 %v4305_v27, %v9154_v34  ;;  %v6196_v53 = vmul.f32 -1.442695, %v4314_v49  ;;  %7432 = vpow2.f32 %v6191_v18 }
 0x43c   :  { %v7119_v3 = vpop.f32.mrf.mxu0 }
 0x43d   :  { %v6194_v10 = vmul.f32 -1.442695, %v4306_v32  ;;  %v4317_v59 = vadd.f32 %v7119_v3, %v9152_v58  ;;  %7434 = vpow2.f32 %v6196_v53  ;;  %v4290_v58 = vadd.f32 %v4289_v21, %v9162_v8  ;;  %v9198_v18 = vpop.permute.xlu0 %4051 }
 0x43e   :  { %v4308_v50 = vpop.f32.mrf.mxu0  ;;  %9730 = vst [vmem:[#allocation51_spill] sm:$0xff] %v9198_v18 }
 0x43f   :  { %v4309_v16 = vadd.f32 %v4308_v50, %v9156_v15  ;;  %7436 = vpow2.f32 %v6194_v10  ;;  %v6197_v36 = vmul.f32 -1.442695, %v4317_v59  ;;  %v9201_v15 = vpop.permute.xlu1 %4056  ;;  %v6190_v59 = vmul.f32 -1.442695, %v4290_v58 }
 0x440   :  { %v7122_v56 = vpop.f32.mrf.mxu0 }
 0x441   :  { %v6195_v32 = vmul.f32 -1.442695, %v4309_v16  ;;  %7438 = vpow2.f32 %v6197_v36  ;;  %v4330_v54 = vadd.f32 %v7122_v56, %v9198_v18 }
 0x442   :  { %v9171_v20 = vpop.f32.mrf.mxu0  ;;  %v7429_v53 = vpop.eup %7428 }
 0x443   :  { %7440 = vpow2.f32 %v6195_v32  ;;  %v4458_v16 = vadd.f32 1.0, %v7429_v53  ;;  %v6200_v4 = vmul.f32 -1.442695, %v4330_v54  ;;  %v9206_v58 = vpop.permute.xlu1 %4136 }
 0x444   :  { %v7123_v2 = vpop.f32.mrf.mxu0  ;;  %7442 = vpow2.f32 %v6190_v59  ;;  %9731 = vst [vmem:[#allocation52_spill] sm:$0xff] %v9206_v58  ;;  %v9210_v59 = vpop.permute.xlu0 %4131 }
 0x445   :  { %v4333_v34 = vadd.f32 %v7123_v2, %v9201_v15  ;;  %7444 = vrcp.f32 %v4458_v16  ;;  %9732 = vst [vmem:[#allocation53_spill] sm:$0xff] %v9210_v59 }
 0x446   :  { %v9179_v12 = vpop.f32.mrf.mxu0  ;;  %v7431_v10 = vpop.eup %7430  ;;  %7446 = vpow2.f32 %v6200_v4 }
 0x447   :  { %v4459_v36 = vadd.f32 1.0, %v7431_v10 }
 0x448   :  { %v7126_v24 = vpop.f32.mrf.mxu0 }
 0x449   :  { %v4346_v8 = vadd.f32 %v7126_v24, %v9166_v63  ;;  %7448 = vrcp.f32 %v4459_v36  ;;  %v9214_v36 = vpop.permute.xlu0 %4041 }
 0x44a   :  { %v4337_v19 = vpop.f32.mrf.mxu0  ;;  %9734 = vst [vmem:[#allocation55_spill] sm:$0xff] %v9214_v36 }
 0x44b   :  { %v6204_v54 = vmul.f32 -1.442695, %v4346_v8 }
 0x44c   :  { %v7127_v52 = vpop.f32.mrf.mxu0 }
 0x44d   :  { %v4349_v53 = vadd.f32 %v7127_v52, %v9168_v33  ;;  %v9212_v52 = vpop.permute.xlu1 %4046 }
 0x44e   :  { %v4340_v27 = vpop.f32.mrf.mxu0  ;;  %9733 = vst [vmem:[#allocation54_spill] sm:$0xff] %v9212_v52 }
 0x44f   :  { %v4341_v10 = vadd.f32 %v4340_v27, %v9185_v41 }
 0x450   :  { %v7130_v49 = vpop.f32.mrf.mxu0 }
 0x451   :  { %v6203_v4 = vmul.f32 -1.442695, %v4341_v10 }
 0x452   :  { %v4353_v3 = vpop.f32.mrf.mxu0 }
 0x454   :  { %v7131_v43 = vpop.f32.mrf.mxu0 }
 0x455   :  { %v7433_v43 = vpop.eup %7432 }
 0x456   :  { %v4355_v50 = vpop.f32.mrf.mxu0  ;;  %v7435_v21 = vpop.eup %7434  ;;  %v4457_v56 = vadd.f32 1.0, %v7433_v43  ;;  %v6205_v43 = vmul.f32 -1.442695, %v4349_v53 }
 0x457   :  { %v6201_v50 = vmul.f32 -1.442695, %v4333_v34  ;;  %v7437_v7 = vpop.eup %7436  ;;  %v4462_v2 = vadd.f32 1.0, %v7435_v21 }
 0x458   :  { %v7134_v49 = vpop.f32.mrf.mxu0  ;;  %v7439_v34 = vpop.eup %7438 }
 0x459   :  { %v4338_v49 = vadd.f32 %v4337_v19, %v9183_v9  ;;  %7450 = vpow2.f32 %v6201_v50  ;;  %v4463_v8 = vadd.f32 1.0, %v7439_v34 }
 0x45a   :  { %v4365_v3 = vpop.f32.mrf.mxu0  ;;  %7452 = vrcp.f32 %v4457_v56 }
 0x45b   :  { %v4460_v3 = vadd.f32 1.0, %v7437_v7  ;;  %v6202_v16 = vmul.f32 -1.442695, %v4338_v49  ;;  %7454 = vrcp.f32 %v4462_v2  ;;  %v4325_v2 = vadd.f32 %v9179_v12, %v9212_v52 }
 0x45c   :  { %v7135_v32 = vpop.f32.mrf.mxu0  ;;  %7456 = vpow2.f32 %v6204_v54  ;;  %v4322_v12 = vadd.f32 %v9171_v20, %v9214_v36 }
 0x45d   :  { %7458 = vrcp.f32 %v4460_v3  ;;  %v9223_v3 = vpop.permute.xlu1 %4126 }
 0x45e   :  { %v4367_v18 = vpop.f32.mrf.mxu0  ;;  %7460 = vpow2.f32 %v6202_v16  ;;  %9735 = vst [vmem:[#allocation56_spill] sm:$0xff] %v9223_v3 }
 0x45f   :  { %v7441_v18 = vpop.eup %7440  ;;  %7462 = vpow2.f32 %v6205_v43 }
 0x460   :  { %v7138_v24 = vpop.f32.mrf.mxu0  ;;  %v4461_v27 = vadd.f32 1.0, %v7441_v18  ;;  %7464 = vpow2.f32 %v6203_v4  ;;  %v7443_v49 = vpop.eup %7442 }
 0x461   :  { %7466 = vrcp.f32 %v4463_v8  ;;  %v4386_v53 = vadd.f32 %v7138_v24, %v9210_v59  ;;  %v9221_v10 = vpop.eup %7444  ;;  %v9234_v8 = vpop.permute.xlu0 %4121 }
 0x462   :  { %v4377_v19 = vpop.f32.mrf.mxu0  ;;  %7468 = vrcp.f32 %v4461_v27  ;;  %v9226_v16 = vpop.eup %7446  ;;  %9736 = vst [vmem:[#allocation57_spill] sm:$0xff] %v9234_v8  ;;  %v6199_v27 = vmul.f32 -1.442695, %v4325_v2 }
 0x463   :  { %v9229_v4 = vpop.eup %7448 }
 0x464   :  { %v7139_v21 = vpop.f32.mrf.mxu0 }
 0x465   :  { %v4389_v32 = vadd.f32 %v7139_v21, %v9206_v58 }
 0x466   :  { %v4380_v7 = vpop.f32.mrf.mxu0  ;;  %v7451_v21 = vpop.eup %7450 }
 0x467   :  { %v4381_v18 = vadd.f32 %v4380_v7, %v9223_v3 }
 0x468   :  { %v7142_v50 = vpop.f32.mrf.mxu0 }
 0x469   :  { %v4402_v56 = vadd.f32 %v7142_v50, %v9173_v30 }
 0x46a   :  { %v4393_v54 = vpop.f32.mrf.mxu0 }
 0x46b   :  { %7470 = vtanh.f32 %v4402_v56  ;;  %v4394_v34 = vadd.f32 %v4393_v54, %v9193_v0  ;;  %v9236_v56 = vpop.eup %7452  ;;  %v4378_v54 = vadd.f32 %v4377_v19, %v9234_v8 }
 0x46c   :  { %7472 = vtanh.f32 %v4389_v32  ;;  %v7143_v43 = vpop.f32.mrf.mxu0  ;;  %v9737_v32 = vld [vmem:[#allocation25_spill] sm:$0xff]  ;;  %v7455_v20 = vpop.eup %7454 }
 0x46d   :  { %7474 = vtanh.f32 %v4394_v34  ;;  %v4405_v24 = vadd.f32 %v7143_v43, %v9176_v39  ;;  %v4667_v7 = vadd.f32 %v8974_v29, %v9737_v32  ;;  %v4456_v34 = vadd.f32 1.0, %v7443_v49  ;;  %v7457_v36 = vpop.eup %7456  ;;  %v9738_v29 = vld [vmem:[#allocation26_spill] sm:$0xff] }
 0x46e   :  { %7476 = vtanh.f32 %v4386_v53  ;;  %v4396_v50 = vpop.f32.mrf.mxu0  ;;  %v6198_v39 = vmul.f32 -1.442695, %v4322_v12  ;;  %v7459_v53 = vpop.eup %7458  ;;  %v4670_v19 = vadd.f32 %v8982_v61, %v9738_v29  ;;  %v4467_v49 = vadd.f32 1.0, %v7451_v21 }
 0x46f   :  { %7478 = vtanh.f32 %v4405_v24  ;;  %v4397_v52 = vadd.f32 %v4396_v50, %v9195_v26  ;;  %v7461_v30 = vpop.eup %7460  ;;  %v4729_v3 = vmax.f32 %v4667_v7, 0.0  ;;  %v4470_v12 = vadd.f32 1.0, %v7457_v36 }
 0x470   :  { %7480 = vtanh.f32 %v4381_v18  ;;  %v4875_v43 = vpop.f32.mrf.mxu0  ;;  %v7463_v50 = vpop.eup %7462  ;;  %v4730_v61 = vmax.f32 %v4670_v19, 0.0 }
 0x471   :  { %7482 = vtanh.f32 %v4397_v52  ;;  %v4876_v2 = vadd.f32 %v4875_v43, %v9737_v32  ;;  %v7465_v8 = vpop.eup %7464 }
 0x472   :  { %7484 = vpow2.f32 %v6199_v27  ;;  %v4877_v0 = vpop.f32.mrf.mxu0  ;;  %v7467_v43 = vpop.eup %7466  ;;  %v4468_v27 = vadd.f32 1.0, %v7461_v30  ;;  %v4469_v21 = vadd.f32 1.0, %v7465_v8 }
 0x473   :  { %7486 = vtanh.f32 %v4378_v54  ;;  %v4938_v24 = vmax.f32 %v4876_v2, 0.0  ;;  %v4675_v0 = vadd.f32 %v8986_v44, %v8894_v55  ;;  %v7469_v26 = vpop.eup %7468  ;;  %v4471_v54 = vadd.f32 1.0, %v7463_v50 }
 0x474   :  { %7488 = vrcp.f32 %v4456_v34  ;;  %v4878_v18 = vpop.f32.mrf.mxu0  ;;  %v4678_v44 = vadd.f32 %v8990_v6, %v8896_v57 }
 0x475   :  { %7490 = vpow2.f32 %v6198_v39  ;;  %v4954_v52 = vmax.f32 %v4729_v3, %v4938_v24  ;;  %v4879_v32 = vadd.f32 %v4878_v18, %v9738_v29  ;;  %v4731_v24 = vmax.f32 %v4675_v0, 0.0 }
 0x476   :  { %v4880_v7 = vpop.f32.mrf.mxu0  ;;  %7492 = vrcp.f32 %v4467_v49 }
 0x477   :  { %v4939_v2 = vmax.f32 %v4879_v32, 0.0  ;;  %7494 = vrcp.f32 %v4470_v12 }
 0x478   :  { %v7471_v58 = vpop.eup %7470  ;;  %v4883_v34 = vpop.f32.mrf.mxu0  ;;  %7496 = vrcp.f32 %v4468_v27 }
 0x479   :  { %v7473_v59 = vpop.eup %7472  ;;  %v9248_v39 = vmul.f32 %v7471_v58, %v7455_v20  ;;  %v4955_v36 = vmax.f32 %v4730_v61, %v4939_v2  ;;  %v4884_v3 = vadd.f32 %v4883_v34, %v8894_v55  ;;  %7498 = vrcp.f32 %v4471_v54  ;;  %v9739_v55 = vld [vmem:[#allocation29_spill] sm:$0xff] }
 0x47a   :  { %v7475_v29 = vpop.eup %7474  ;;  %v4885_v30 = vpop.f32.mrf.mxu0  ;;  %7500 = vrcp.f32 %v4469_v21  ;;  %v9257_v58 = vmul.f32 %v7473_v59, %v9229_v4  ;;  %v4970_v20 = vadd.f32 %v4954_v52, %v9739_v55  ;;  %v4732_v52 = vmax.f32 %v4678_v44, 0.0  ;;  %v9740_v44 = vld [vmem:[#allocation27_spill] sm:$0xff] }
 0x47b   :  { %v7477_v19 = vpop.eup %7476  ;;  %v9253_v50 = vmul.f32 %v7475_v29, %v7459_v53  ;;  %v4971_v8 = vadd.f32 %v4955_v36, %v8921_v23  ;;  %v4940_v49 = vmax.f32 %v4884_v3, 0.0  ;;  %7502 = vtanh.f32 %v9248_v39 }
 0x47c   :  { %v7479_v18 = vpop.eup %7478  ;;  %v4886_v12 = vpop.f32.mrf.mxu0  ;;  %v9265_v23 = vmul.f32 %v7477_v19, %v9221_v10  ;;  %v4466_v2 = vadd.f32 1.0, %v9226_v16  ;;  %v4686_v29 = vadd.f32 %v8995_v17, %v8882_v13  ;;  %v9741_v19 = vld [vmem:[#allocation28_spill] sm:$0xff] }
 0x47d   :  { %v7481_v32 = vpop.eup %7480  ;;  %v9261_v6 = vmul.f32 %v7479_v18, %v7467_v43  ;;  %v4956_v0 = vmax.f32 %v4731_v24, %v4940_v49  ;;  %v4887_v53 = vadd.f32 %v4886_v12, %v8896_v57  ;;  %7504 = vtanh.f32 %v9253_v50 }
 0x47e   :  { %v7483_v27 = vpop.eup %7482  ;;  %v4888_v7 = vpop.f32.mrf.mxu0  ;;  %v9268_v59 = vpack.c.bf16 %v4971_v8, %v4970_v20  ;;  %v4683_v57 = vadd.f32 %v8993_v5, %v8880_v40  ;;  %v9278_v34 = vmul.f32 %v7481_v32, %v9236_v56 }
 0x47f   :  { %v7485_v4 = vpop.eup %7484  ;;  %7506 = vtanh.f32 %v9261_v6  ;;  %v9271_v61 = vmul.f32 %v7483_v27, %v7469_v26  ;;  %v4941_v43 = vmax.f32 %v4887_v53, 0.0  ;;  %v4972_v30 = vadd.f32 %v4956_v0, %v9740_v44 }
 0x480   :  { %v7487_v54 = vpop.eup %7486  ;;  %7508 = vtanh.f32 %v9257_v58  ;;  %v4891_v10 = vpop.f32.mrf.mxu0  ;;  %v4465_v24 = vadd.f32 1.0, %v7485_v4  ;;  %v4733_v49 = vmax.f32 %v4683_v57, 0.0  ;;  %v4734_v27 = vmax.f32 %v4686_v29, 0.0 }
 0x481   :  { %v7489_v21 = vpop.eup %7488  ;;  %7510 = vtanh.f32 %v9271_v61  ;;  %v4957_v36 = vmax.f32 %v4732_v52, %v4941_v43  ;;  %v4892_v26 = vadd.f32 %v4891_v10, %v8880_v40  ;;  %v9742_v52 = vld [vmem:[#allocation21_spill] sm:$0xff] }
 0x482   :  { %v7491_v3 = vpop.eup %7490  ;;  %7512 = vtanh.f32 %v9265_v23  ;;  %v4893_v5 = vpop.f32.mrf.mxu0  ;;  %v9285_v16 = vmul.f32 %v7489_v21, %v7487_v54  ;;  %v4691_v43 = vadd.f32 %v8999_v25, %v9742_v52  ;;  %v4694_v21 = vadd.f32 %v9003_v35, %v8874_v47 }
 0x483   :  { %v4973_v56 = vadd.f32 %v4957_v36, %v9741_v19  ;;  %v4942_v8 = vmax.f32 %v4892_v26, 0.0  ;;  %7514 = vrcp.f32 %v4466_v2  ;;  %v7493_v55 = vpop.eup %7492  ;;  %v4464_v40 = vadd.f32 1.0, %v7491_v3  ;;  %v9743_v3 = vld [vmem:[#allocation23_spill] sm:$0xff] }
 0x484   :  { %v4894_v18 = vpop.f32.mrf.mxu0  ;;  %7516 = vtanh.f32 %v9278_v34  ;;  %v7495_v12 = vpop.eup %7494  ;;  %v4735_v19 = vmax.f32 %v4691_v43, 0.0  ;;  %v4699_v43 = vadd.f32 %v9007_v51, %v8864_v42 }
 0x485   :  { %v4895_v17 = vadd.f32 %v4894_v18, %v8882_v13  ;;  %v9291_v20 = vpack.c.bf16 %v4973_v56, %v4972_v30  ;;  %7518 = vrcp.f32 %v4465_v24  ;;  %v7497_v53 = vpop.eup %7496  ;;  %v4958_v0 = vmax.f32 %v4733_v49, %v4942_v8  ;;  %v9744_v24 = vld [vmem:[#allocation24_spill] sm:$0xff] }
 0x486   :  { %v4896_v32 = vpop.f32.mrf.mxu0  ;;  %7520 = vtanh.f32 %v9285_v16  ;;  %v7499_v4 = vpop.eup %7498 }
 0x487   :  { %v4943_v7 = vmax.f32 %v4895_v17, 0.0  ;;  %v7501_v57 = vpop.eup %7500  ;;  %7522 = vrcp.f32 %v4464_v40  ;;  %v4974_v29 = vadd.f32 %v4958_v0, %v9743_v3  ;;  %v4736_v32 = vmax.f32 %v4694_v21, 0.0 }
 0x488   :  { %v4899_v54 = vpop.f32.mrf.mxu0  ;;  %v7503_v10 = vpop.eup %7502 }
 0x489   :  { %v4959_v2 = vmax.f32 %v4734_v27, %v4943_v7  ;;  %v4900_v13 = vadd.f32 %v4899_v54, %v9742_v52  ;;  %v4534_v49 = vmul.f32 %v7503_v10, %v7495_v12 }
 0x48a   :  { %v4901_v36 = vpop.f32.mrf.mxu0  ;;  %v7505_v26 = vpop.eup %7504 }
 0x48b   :  { %v4975_v5 = vadd.f32 %v4959_v2, %v9744_v24  ;;  %v4944_v44 = vmax.f32 %v4900_v13, 0.0  ;;  %v4532_v27 = vmul.f32 %v7505_v26, %v7497_v53  ;;  %v4702_v53 = vadd.f32 %v9014_v14, %v8866_v45 }
 0x48c   :  { %v7507_v30 = vpop.eup %7506  ;;  %v4902_v25 = vpop.f32.mrf.mxu0 }
 0x48d   :  { %v7509_v56 = vpop.eup %7508  ;;  %v4903_v8 = vadd.f32 %v4902_v25, %v8874_v47  ;;  %v4535_v18 = vmul.f32 %v7507_v30, %v7499_v4  ;;  %v9302_v40 = vpack.c.bf16 %v4975_v5, %v4974_v29  ;;  %v4960_v52 = vmax.f32 %v4735_v19, %v4944_v44 }
 0x48e   :  { %v7511_v17 = vpop.eup %7510  ;;  %v4904_v35 = vpop.f32.mrf.mxu0  ;;  %v4531_v4 = vmul.f32 %v7509_v56, %v7493_v55  ;;  %v4737_v44 = vmax.f32 %v4699_v43, 0.0 }
 0x48f   :  { %v7513_v7 = vpop.eup %7512  ;;  %v4945_v0 = vmax.f32 %v4903_v8, 0.0  ;;  %v4997_v54 = vpack.c.bf16 %v4535_v18, %v4534_v49  ;;  %v4533_v2 = vmul.f32 %v7511_v17, %v7501_v57  ;;  %v4976_v57 = vadd.f32 %v4960_v52, %v8890_v11 }
 0x490   :  { %v4907_v13 = vpop.f32.mrf.mxu0  ;;  %v7515_v36 = vpop.eup %7514  ;;  %v4738_v8 = vmax.f32 %v4702_v53, 0.0  ;;  %v4707_v17 = vadd.f32 %v9020_v31, %v8856_v37 }
 0x491   :  { %v4961_v3 = vmax.f32 %v4736_v32, %v4945_v0  ;;  %v4908_v47 = vadd.f32 %v4907_v13, %v8864_v42  ;;  %7144 = vmatprep.subr.bf16.mxu1 %v4997_v54  ;;  %v4996_v12 = vpack.c.bf16 %v4533_v2, %v4532_v27  ;;  %v7517_v10 = vpop.eup %7516  ;;  %v4530_v24 = vmul.f32 %v7515_v36, %v7513_v7 }
 0x492   :  { %v4909_v21 = vpop.f32.mrf.mxu0  ;;  %7145 = vmatpush3.bf16.msra.mxu1 %v4997_v54  ;;  %v7519_v26 = vpop.eup %7518  ;;  %v4710_v7 = vadd.f32 %v9028_v28, %v8858_v38  ;;  %v4739_v43 = vmax.f32 %v4707_v17, 0.0 }
 0x493   :  { %v4977_v29 = vadd.f32 %v4961_v3, %v8892_v62  ;;  %v4946_v51 = vmax.f32 %v4908_v47, 0.0  ;;  %7146 = vmatprep.subr.bf16.mxu1 %v4996_v12  ;;  %v7521_v5 = vpop.eup %7520  ;;  %v4995_v55 = vpack.c.bf16 %v4531_v4, %v4530_v24  ;;  %v4529_v19 = vmul.f32 %v7519_v26, %v7517_v10  ;;  %v9746_v21 = vld [vmem:[#allocation15_spill] sm:$0xff] }
 0x494   :  { %v4910_v42 = vpop.f32.mrf.mxu0  ;;  %v7523_v14 = vpop.eup %7522  ;;  %v4740_v28 = vmax.f32 %v4710_v7, 0.0  ;;  %v4718_v26 = vadd.f32 %v9046_v60, %v9746_v21 }
 0x495   :  { %v4911_v30 = vadd.f32 %v4910_v42, %v8866_v45  ;;  %v9312_v25 = vpack.c.bf16 %v4977_v29, %v4976_v57  ;;  %v4962_v49 = vmax.f32 %v4737_v44, %v4946_v51  ;;  %v4528_v62 = vmul.f32 %v7523_v14, %v7521_v5  ;;  %v9747_v29 = vld [vmem:[#allocation20_spill] sm:$0xff] }
 0x496   :  { %v4912_v56 = vpop.f32.mrf.mxu0  ;;  %7147 = vmatpush3.bf16.msra.mxu1 %v4996_v12  ;;  %v9745_v12 = vld [vmem:[#allocation14_spill] sm:$0xff]  ;;  %v4742_v60 = vmax.f32 %v4718_v26, 0.0 }
 0x497   :  { %v4947_v11 = vmax.f32 %v4911_v30, 0.0  ;;  %7148 = vmatprep.subr.bf16.mxu1 %v4995_v55  ;;  %v4994_v45 = vpack.c.bf16 %v4529_v19, %v4528_v62  ;;  %v4978_v52 = vadd.f32 %v4962_v49, %v8876_v1  ;;  %v7410_v1 = vld [vmem:[%s9596_s11 + $0x10] sm:$0xff]   ;;  %v4715_v4 = vadd.f32 %v9037_v22, %v9745_v12  ;;  %v7411_v30 = vld [vmem:[%s9596_s11 + $0x18] sm:$0xff]   ;;  %v7412_v19 = vld [vmem:[%s9596_s11 + $0x20] sm:$0xff]  }
 0x498   :  { %v4915_v18 = vpop.f32.mrf.mxu0  ;;  %v9749_v49 = vld [vmem:[#allocation34_spill] sm:$0xff] }
 0x499   :  { %v4963_v32 = vmax.f32 %v4738_v8, %v4947_v11  ;;  %v4916_v35 = vadd.f32 %v4915_v18, %v8856_v37  ;;  %v7409_v37 = vld [vmem:[%s9596_s11 + $0x8] sm:$0xff]   ;;  %v4741_v44 = vmax.f32 %v4715_v4, 0.0  ;;  %v7415_v26 = vld [vmem:[%s9596_s11 + $0x38] sm:$0xff]  }
 0x49a   :  { %v4917_v27 = vpop.f32.mrf.mxu0  ;;  %7149 = vmatpush3.bf16.msra.mxu1 %v4995_v55  ;;  %v9748_v8 = vld [vmem:[#allocation12_spill] sm:$0xff] }
 0x49b   :  { %v4979_v0 = vadd.f32 %v4963_v32, %v8878_v48  ;;  %v4948_v54 = vmax.f32 %v4916_v35, 0.0  ;;  %7150 = vmatprep.subr.bf16.mxu1 %v4994_v45  ;;  %v4723_v11 = vadd.f32 %v9749_v49, %v9748_v8  ;;  %v9750_v32 = vld [vmem:[#allocation13_spill] sm:$0xff]  ;;  %v9751_v35 = vld [vmem:[#allocation36_spill] sm:$0xff]  ;;  %v9752_v27 = vld [vmem:[#allocation18_spill] sm:$0xff] }
 0x49c   :  { %v4918_v2 = vpop.f32.mrf.mxu0  ;;  %v9754_v4 = vld [vmem:[#allocation16_spill] sm:$0xff]  ;;  %v9767_v49 = vld [vmem:[#allocation43_spill] sm:$0xff] }
 0x49d   :  { %v4919_v13 = vadd.f32 %v4918_v2, %v8858_v38  ;;  %v9322_v31 = vpack.c.bf16 %v4979_v0, %v4978_v52  ;;  %v4964_v48 = vmax.f32 %v4739_v43, %v4948_v54  ;;  %v9753_v52 = vld [vmem:[#allocation19_spill] sm:$0xff]  ;;  %v4743_v43 = vmax.f32 %v4723_v11, 0.0  ;;  %v9768_v11 = vld [vmem:[#allocation44_spill] sm:$0xff] }
 0x49e   :  { %v4920_v36 = vpop.f32.mrf.mxu0  ;;  %7151 = vmatpush3.bf16.msra.mxu1 %v4994_v45  ;;  %v4726_v45 = vadd.f32 %v9751_v35, %v9750_v32 }
 0x49f   :  { %v4949_v3 = vmax.f32 %v4919_v13, 0.0  ;;  %v4980_v57 = vadd.f32 %v4964_v48, %v8868_v46  ;;  %v7413_v36 = vld [vmem:[%s9596_s11 + $0x28] sm:$0xff]  }
 0x4a0   :  { %v4923_v47 = vpop.f32.mrf.mxu0  ;;  %v4744_v48 = vmax.f32 %v4726_v45, 0.0 }
 0x4a1   :  { %v4965_v38 = vmax.f32 %v4740_v28, %v4949_v3  ;;  %v4924_v10 = vadd.f32 %v4923_v47, %v9745_v12  ;;  %7153 = vmatmul.mubr.msk.bf16.vlgmr.msra.gmra.mxu1 %vm3532_vm2, %v7409_v37  ;;  %v7414_v28 = vld [vmem:[%s9596_s11 + $0x30] sm:$0xff]  }
 0x4a2   :  { %v4925_v53 = vpop.f32.mrf.mxu0  ;;  %7156 = vmatprep.mubr.msk.bf16.mxu1 %vm3532_vm2, %v7410_v1 }
 0x4a3   :  { %v4981_v51 = vadd.f32 %v4965_v38, %v9747_v29  ;;  %v4950_v24 = vmax.f32 %v4924_v10, 0.0  ;;  %v9755_v10 = vld [vmem:[#allocation17_spill] sm:$0xff]  ;;  %v7417_v29 = vld [vmem:[%s9596_s11 + $0x48] sm:$0xff]  }
 0x4a4   :  { %v4926_v5 = vpop.f32.mrf.mxu0 }
 0x4a5   :  { %v4927_v22 = vadd.f32 %v4926_v5, %v9746_v21  ;;  %v4991_v42 = vpack.c.bf16 %v4981_v51, %v4980_v57  ;;  %v4966_v14 = vmax.f32 %v4741_v44, %v4950_v24  ;;  %v7416_v57 = vld [vmem:[%s9596_s11 + $0x40] sm:$0xff]   ;;  %v7418_v51 = vld [vmem:[%s9596_s11 + $0x50] sm:$0xff]   ;;  %v7419_v24 = vld [vmem:[%s9596_s11 + $0x58] sm:$0xff]  }
 0x4a6   :  { %v4928_v55 = vpop.f32.mrf.mxu0  ;;  %v7420_v5 = vld [vmem:[%s9596_s11 + $0x60] sm:$0xff]   ;;  %v7422_v44 = vld [vmem:[%s9596_s11 + $0x70] sm:$0xff]  }
 0x4a7   :  { %v4951_v46 = vmax.f32 %v4927_v22, 0.0  ;;  %v4982_v7 = vadd.f32 %v4966_v14, %v9752_v27  ;;  %v9756_v22 = vld [vmem:[#allocation30_spill] sm:$0xff]  ;;  %v9760_v55 = vld [vmem:[#allocation35_spill] sm:$0xff] }
 0x4a8   :  { %v4931_v56 = vpop.f32.mrf.mxu0  ;;  %v9763_v14 = vld [vmem:[#allocation39_spill] sm:$0xff] }
 0x4a9   :  { %v4967_v62 = vmax.f32 %v4742_v60, %v4951_v46  ;;  %v4932_v18 = vadd.f32 %v4931_v56, %v9748_v8  ;;  %7157 = vmatmul.mubr.msk.bf16.gmra.mxu1 %vm3532_vm2, %v7411_v30  ;;  %v9759_v30 = vld [vmem:[#allocation33_spill] sm:$0xff]  ;;  %v9762_v60 = vld [vmem:[#allocation38_spill] sm:$0xff]  ;;  %v9764_v46 = vld [vmem:[#allocation40_spill] sm:$0xff] }
 0x4aa   :  { %v4933_v17 = vpop.f32.mrf.mxu0  ;;  %7160 = vmatprep.mubr.msk.bf16.mxu1 %vm3532_vm2, %v7412_v19  ;;  %v9761_v19 = vld [vmem:[#allocation37_spill] sm:$0xff]  ;;  %v9766_v8 = vld [vmem:[#allocation42_spill] sm:$0xff] }
 0x4ab   :  { %v4983_v0 = vadd.f32 %v4967_v62, %v9753_v52  ;;  %v4952_v54 = vmax.f32 %v4932_v18, 0.0  ;;  %v9765_v56 = vld [vmem:[#allocation41_spill] sm:$0xff] }
 0x4ac   :  { %v4934_v2 = vpop.f32.mrf.mxu0 }
 0x4ad   :  { %v4935_v13 = vadd.f32 %v4934_v2, %v9750_v32  ;;  %v4992_v37 = vpack.c.bf16 %v4983_v0, %v4982_v7  ;;  %v4968_v3 = vmax.f32 %v4743_v43, %v4952_v54 }
 0x4ae   :  { %v4936_v1 = vpop.f32.mrf.mxu0 }
 0x4af   :  { %v4953_v47 = vmax.f32 %v4935_v13, 0.0  ;;  %v4984_v38 = vadd.f32 %v4968_v3, %v9754_v4  ;;  %v7424_v13 = vld [vmem:[%s9598_s13] sm:$0xff]  }
 0x4b1   :  { %v4969_v12 = vmax.f32 %v4744_v48, %v4953_v47  ;;  %7161 = vmatmul.mubr.msk.bf16.gmra.mxu1 %vm3532_vm2, %v7413_v36 }
 0x4b2   :  { %7164 = vmatprep.mubr.msk.bf16.mxu1 %vm3532_vm2, %v7414_v28 }
 0x4b3   :  { %v4985_v53 = vadd.f32 %v4969_v12, %v9755_v10 }
 0x4b5   :  { %v4993_v21 = vpack.c.bf16 %v4985_v53, %v4984_v38 }
 0x4b7   :  { %7184 = vmatprep.subr.bf16.mxu0 %v4993_v21 }
 0x4b8   :  { %7185 = vmatpush3.bf16.msra.mxu0 %v4993_v21  ;;  %v9769_v21 = vld [vmem:[#allocation11_spill] sm:$0xff] }
 0x4b9   :  { %7186 = vmatprep.subr.bf16.mxu0 %v4992_v37  ;;  %7165 = vmatmul.mubr.msk.bf16.gmra.mxu1 %vm3532_vm2, %v7415_v26 }
 0x4ba   :  { %7168 = vmatprep.mubr.msk.bf16.mxu1 %vm3532_vm2, %v7416_v57 }
 0x4bc   :  { %7187 = vmatpush3.bf16.msra.mxu0 %v4992_v37 }
 0x4bd   :  { %7188 = vmatprep.subr.bf16.mxu0 %v4991_v42 }
 0x4c0   :  { %7189 = vmatpush3.bf16.msra.mxu0 %v4991_v42  ;;  %v9757_v42 = vld [vmem:[#allocation31_spill] sm:$0xff] }
 0x4c1   :  { %7190 = vmatprep.subr.bf16.mxu0 %v9322_v31  ;;  %7169 = vmatmul.mubr.msk.bf16.gmra.mxu1 %vm3532_vm2, %v7417_v29 }
 0x4c2   :  { %7172 = vmatprep.mubr.msk.bf16.mxu1 %vm3532_vm2, %v7418_v51  ;;  %v9770_v51 = vld [vmem:[#allocation22_spill] sm:$0xff] }
 0x4c4   :  { %7191 = vmatpush3.bf16.msra.mxu0 %v9322_v31  ;;  %v7421_v31 = vld [vmem:[%s9596_s11 + $0x68] sm:$0xff]  }
 0x4c5   :  { %7192 = vmatprep.subr.bf16.mxu0 %v9312_v25 }
 0x4c8   :  { %7193 = vmatpush3.bf16.msra.mxu0 %v9312_v25  ;;  %v7656_v25 = vld [vmem:[%s9595_s10 + $0x8] sm:$0xff]  }
 0x4c9   :  { %7194 = vmatprep.subr.bf16.mxu0 %v9302_v40  ;;  %7173 = vmatmul.mubr.msk.bf16.gmra.mxu1 %vm3532_vm2, %v7419_v24 }
 0x4ca   :  { %7176 = vmatprep.mubr.msk.bf16.mxu1 %vm3532_vm2, %v7420_v5 }
 0x4cc   :  { %7195 = vmatpush3.bf16.msra.mxu0 %v9302_v40  ;;  %v7423_v40 = vld [vmem:[%s9596_s11 + $0x78] sm:$0xff]  }
 0x4cd   :  { %7196 = vmatprep.subr.bf16.mxu0 %v9291_v20 }
 0x4d0   :  { %7197 = vmatpush3.bf16.msra.mxu0 %v9291_v20  ;;  %v7657_v20 = vld [vmem:[%s9595_s10 + $0x10] sm:$0xff]  }
 0x4d1   :  { %7198 = vmatprep.subr.bf16.mxu0 %v9268_v59  ;;  %7177 = vmatmul.mubr.msk.bf16.gmra.mxu1 %vm3532_vm2, %v7421_v31 }
 0x4d2   :  { %7180 = vmatprep.mubr.msk.bf16.mxu1 %vm3532_vm2, %v7422_v44 }
 0x4d4   :  { %7199 = vmatpush3.bf16.msra.mxu0 %v9268_v59  ;;  %v9758_v59 = vld [vmem:[#allocation32_spill] sm:$0xff] }
 0x4d7   :  { %7201 = vmatmul.mubr.bf16.vlgmr.msra.gmra.mxu0 %v7656_v25 }
 0x4d8   :  { %7204 = vmatprep.mubr.bf16.mxu0 %v7657_v20 }
 0x4d9   :  { %7181 = vmatmul.mubr.msk.bf16.gmra.mxu1 %vm3532_vm2, %v7423_v40  ;;  %v9771_v40 = vld [vmem:[#allocation7_spill] sm:$0xff] }
 0x4da   :  { %7240 = vmatprep.mubr.msk.bf16.mxu1 %vm3532_vm2, %v7424_v13 }
 0x4df   :  { %7205 = vmatmul.mubr.bf16.gmra.mxu0 %v9756_v22 }
 0x4e0   :  { %7208 = vmatprep.mubr.bf16.mxu0 %v9757_v42 }
 0x4e7   :  { %7209 = vmatmul.mubr.bf16.gmra.mxu0 %v9758_v59 }
 0x4e8   :  { %7212 = vmatprep.mubr.bf16.mxu0 %v9759_v30 }
 0x4ef   :  { %7213 = vmatmul.mubr.bf16.gmra.mxu0 %v9760_v55  ;;  %v9458_v55 = vpop.permute.xlu0 %4111 }
 0x4f0   :  { %7216 = vmatprep.mubr.bf16.mxu0 %v9761_v19 }
 0x4f7   :  { %7217 = vmatmul.mubr.bf16.gmra.mxu0 %v9762_v60  ;;  %v9772_v60 = vld [vmem:[#allocation9_spill] sm:$0xff] }
 0x4f8   :  { %7220 = vmatprep.mubr.bf16.mxu0 %v9763_v14 }
 0x4ff   :  { %7221 = vmatmul.mubr.bf16.gmra.mxu0 %v9764_v46 }
 0x500   :  { %7224 = vmatprep.mubr.bf16.mxu0 %v9765_v56 }
 0x507   :  { %7225 = vmatmul.mubr.bf16.gmra.mxu0 %v9766_v8 }
 0x508   :  { %7228 = vmatprep.mubr.bf16.mxu0 %v9767_v49 }
 0x50f   :  { %7229 = vmatmul.mubr.bf16.gmra.mxu0 %v9768_v11  ;;  %v9465_v11 = vpop.permute.xlu1 %4116 }
 0x561   :  { %v7154_v62 = vpop.f32.mrf.mxu1 }
 0x563   :  { %v5160_v18 = vpop.f32.mrf.mxu1 }
 0x565   :  { %v7155_v17 = vpop.f32.mrf.mxu1 }
 0x567   :  { %v5163_v32 = vpop.f32.mrf.mxu1 }
 0x569   :  { %v7158_v35 = vpop.f32.mrf.mxu1 }
 0x56b   :  { %v5176_v45 = vpop.f32.mrf.mxu1 }
 0x56d   :  { %v7159_v27 = vpop.f32.mrf.mxu1 }
 0x56f   :  { %v5179_v7 = vpop.f32.mrf.mxu1 }
 0x571   :  { %v7162_v52 = vpop.f32.mrf.mxu1 }
 0x573   :  { %v9431_v0 = vpop.f32.mrf.mxu1 }
 0x575   :  { %v7163_v54 = vpop.f32.mrf.mxu1 }
 0x577   :  { %v9433_v2 = vpop.f32.mrf.mxu1 }
 0x579   :  { %v9435_v43 = vpop.f32.mrf.mxu1 }
 0x57b   :  { %v9440_v37 = vpop.f32.mrf.mxu1 }
 0x57d   :  { %v9443_v36 = vpop.f32.mrf.mxu1 }
 0x57f   :  { %v9445_v28 = vpop.f32.mrf.mxu1 }
 0x581   :  { %v9447_v47 = vpop.f32.mrf.mxu1 }
 0x583   :  { %v9449_v53 = vpop.f32.mrf.mxu1 }
 0x585   :  { %v9453_v31 = vpop.f32.mrf.mxu1 }
 0x587   :  { %v9456_v30 = vpop.f32.mrf.mxu1 }
 0x589   :  { %v9463_v49 = vpop.f32.mrf.mxu1 }
 0x597   :  { %v7202_v1 = vpop.f32.mrf.mxu0 }
 0x598   :  { %v5330_v12 = vadd.f32 %v7202_v1, %v7154_v62 }
 0x599   :  { %v5321_v48 = vpop.f32.mrf.mxu0 }
 0x59a   :  { %v5450_v26 = vadd.f32 %v5330_v12, %v9769_v21  ;;  %v5322_v62 = vadd.f32 %v5321_v48, %v5160_v18 }
 0x59b   :  { %v7203_v3 = vpop.f32.mrf.mxu0 }
 0x59c   :  { %v5333_v38 = vadd.f32 %v7203_v3, %v7155_v17  ;;  %v6280_v44 = vmul.f32 -1.442695, %v5450_v26  ;;  %v9470_v3 = vpop.permute.xlu0 %4101 }
 0x59d   :  { %v5324_v4 = vpop.f32.mrf.mxu0 }
 0x59e   :  { %v5451_v24 = vadd.f32 %v5333_v38, %v9770_v51  ;;  %7524 = vpow2.f32 %v6280_v44  ;;  %v5325_v12 = vadd.f32 %v5324_v4, %v5163_v32  ;;  %v9472_v38 = vpop.f32.mrf.mxu1  ;;  %v9476_v51 = vpop.permute.xlu1 %4106 }
 0x59f   :  { %v7206_v10 = vpop.f32.mrf.mxu0 }
 0x5a0   :  { %v5346_v57 = vadd.f32 %v7206_v10, %v7158_v35  ;;  %v6281_v42 = vmul.f32 -1.442695, %v5451_v24  ;;  %v9773_v35 = vld [vmem:[#allocation8_spill] sm:$0xff]  ;;  %v9774_v10 = vld [vmem:[#allocation45_spill] sm:$0xff]  ;;  %v9776_v24 = vld [vmem:[#allocation46_spill] sm:$0xff] }
 0x5a1   :  { %v5337_v29 = vpop.f32.mrf.mxu0  ;;  %v5448_v21 = vadd.f32 %v5322_v62, %v9774_v10 }
 0x5a2   :  { %v5454_v25 = vadd.f32 %v5346_v57, %v9771_v40  ;;  %v5338_v20 = vadd.f32 %v5337_v29, %v5176_v45  ;;  %7526 = vpow2.f32 %v6281_v42  ;;  %v9775_v57 = vld [vmem:[#allocation10_spill] sm:$0xff]  ;;  %v9479_v40 = vpop.f32.mrf.mxu1 }
 0x5a3   :  { %v7207_v5 = vpop.f32.mrf.mxu0  ;;  %v6278_v32 = vmul.f32 -1.442695, %v5448_v21 }
 0x5a4   :  { %v6284_v19 = vmul.f32 -1.442695, %v5454_v25  ;;  %v5452_v14 = vadd.f32 %v5338_v20, %v9772_v60  ;;  %v5349_v46 = vadd.f32 %v7207_v5, %v7159_v27  ;;  %v4092_v25 = vpop.permute.xlu0 %4091  ;;  %v9484_v62 = vpop.f32.mrf.mxu1 }
 0x5a5   :  { %v5340_v22 = vpop.f32.mrf.mxu0 }
 0x5a6   :  { %7528 = vpow2.f32 %v6284_v19  ;;  %v6282_v17 = vmul.f32 -1.442695, %v5452_v14  ;;  %v5455_v45 = vadd.f32 %v5349_v46, %v9773_v35  ;;  %v5341_v13 = vadd.f32 %v5340_v22, %v5179_v7  ;;  %v9777_v22 = vld [vmem:[#allocation51_spill] sm:$0xff] }
 0x5a7   :  { %v7210_v59 = vpop.f32.mrf.mxu0  ;;  %v5449_v7 = vadd.f32 %v5325_v12, %v9776_v24 }
 0x5a8   :  { %7530 = vpow2.f32 %v6282_v17  ;;  %v6285_v26 = vmul.f32 -1.442695, %v5455_v45  ;;  %v5453_v29 = vadd.f32 %v5341_v13, %v9775_v57  ;;  %v5362_v18 = vadd.f32 %v7210_v59, %v7162_v52  ;;  %v9487_v13 = vpop.f32.mrf.mxu1  ;;  %v4082_v21 = vpop.permute.xlu0 %4081 }
 0x5a9   :  { %v9461_v56 = vpop.f32.mrf.mxu0  ;;  %v6279_v60 = vmul.f32 -1.442695, %v5449_v7 }
 0x5aa   :  { %7532 = vpow2.f32 %v6285_v26  ;;  %v6283_v20 = vmul.f32 -1.442695, %v5453_v29  ;;  %v5458_v42 = vadd.f32 %v5362_v18, %v9777_v22 }
 0x5ab   :  { %v7211_v8 = vpop.f32.mrf.mxu0  ;;  %v7525_v4 = vpop.eup %7524  ;;  %7534 = vpow2.f32 %v6278_v32 }
 0x5ac   :  { %v5365_v5 = vadd.f32 %v7211_v8, %v7163_v54  ;;  %v4097_v54 = vpop.permute.xlu1 %4096  ;;  %v5554_v8 = vadd.f32 1.0, %v7525_v4  ;;  %7536 = vpow2.f32 %v6283_v20  ;;  %v6288_v17 = vmul.f32 -1.442695, %v5458_v42  ;;  %v9493_v32 = vpop.f32.mrf.mxu1 }
 0x5ad   :  { %v9468_v1 = vpop.f32.mrf.mxu0  ;;  %7538 = vpow2.f32 %v6279_v60 }
 0x5ae   :  { %v5459_v52 = vadd.f32 %v5365_v5, %v9201_v15  ;;  %7540 = vrcp.f32 %v5554_v8 }
 0x5af   :  { %v7214_v27 = vpop.f32.mrf.mxu0  ;;  %v7527_v14 = vpop.eup %7526  ;;  %7542 = vpow2.f32 %v6288_v17 }
 0x5b0   :  { %v5378_v59 = vadd.f32 %v7214_v27, %v9435_v43  ;;  %v5555_v10 = vadd.f32 1.0, %v7527_v14  ;;  %v6289_v43 = vmul.f32 -1.442695, %v5459_v52  ;;  %v4087_v22 = vpop.permute.xlu1 %4086 }
 0x5b1   :  { %v5369_v48 = vpop.f32.mrf.mxu0 }
 0x5b2   :  { %v5462_v27 = vadd.f32 %v5378_v59, %v9166_v63  ;;  %v5370_v26 = vadd.f32 %v5369_v48, %v9440_v37  ;;  %7544 = vrcp.f32 %v5555_v10 }
 0x5b3   :  { %v7215_v44 = vpop.f32.mrf.mxu0  ;;  %v7529_v12 = vpop.eup %7528  ;;  %7546 = vpow2.f32 %v6289_v43 }
 0x5b4   :  { %v5558_v24 = vadd.f32 1.0, %v7529_v12  ;;  %v6292_v37 = vmul.f32 -1.442695, %v5462_v27  ;;  %v5460_v48 = vadd.f32 %v5370_v26, %v9183_v9 }
 0x5b5   :  { %v5372_v19 = vpop.f32.mrf.mxu0  ;;  %v7531_v4 = vpop.eup %7530 }
 0x5b6   :  { %v5556_v52 = vadd.f32 1.0, %v7531_v4  ;;  %v6290_v9 = vmul.f32 -1.442695, %v5460_v48 }
 0x5b7   :  { %v7218_v46 = vpop.f32.mrf.mxu0 }
 0x5b8   :  { %v5394_v35 = vadd.f32 %v7218_v46, %v9447_v47  ;;  %v7179_v46 = vpop.f32.mrf.mxu1 }
 0x5b9   :  { %v5385_v45 = vpop.f32.mrf.mxu0 }
 0x5ba   :  { %v5386_v15 = vadd.f32 %v5385_v45, %v9449_v53  ;;  %v5466_v57 = vadd.f32 %v5394_v35, %v4092_v25  ;;  %v5381_v25 = vadd.f32 %v7215_v44, %v9443_v36  ;;  %v5373_v44 = vadd.f32 %v5372_v19, %v9445_v28 }
 0x5bb   :  { %v7219_v29 = vpop.f32.mrf.mxu0 }
 0x5bc   :  { %v5464_v18 = vadd.f32 %v5386_v15, %v4082_v21  ;;  %v5397_v47 = vadd.f32 %v7219_v29, %v9453_v31  ;;  %v6296_v7 = vmul.f32 -1.442695, %v5466_v57  ;;  %v5463_v36 = vadd.f32 %v5381_v25, %v9168_v33  ;;  %v5259_v21 = vpop.f32.mrf.mxu1 }
 0x5bd   :  { %v5388_v5 = vpop.f32.mrf.mxu0 }
 0x5be   :  { %v6294_v53 = vmul.f32 -1.442695, %v5464_v18  ;;  %v5467_v20 = vadd.f32 %v5397_v47, %v4097_v54  ;;  %v5389_v63 = vadd.f32 %v5388_v5, %v9456_v30  ;;  %7548 = vpow2.f32 %v6296_v7  ;;  %v7533_v54 = vpop.eup %7532 }
 0x5bf   :  { %v7222_v31 = vpop.f32.mrf.mxu0  ;;  %7550 = vrcp.f32 %v5558_v24  ;;  %v9505_v10 = vpop.eup %7534  ;;  %v5559_v15 = vadd.f32 1.0, %v7533_v54  ;;  %v6293_v27 = vmul.f32 -1.442695, %v5463_v36 }
 0x5c0   :  { %v6297_v42 = vmul.f32 -1.442695, %v5467_v20  ;;  %v5465_v60 = vadd.f32 %v5389_v63, %v4087_v22  ;;  %v5410_v14 = vadd.f32 %v7222_v31, %v9463_v49  ;;  %7552 = vpow2.f32 %v6294_v53 }
 0x5c1   :  { %v5401_v59 = vpop.f32.mrf.mxu0  ;;  %7554 = vpow2.f32 %v6292_v37 }
 0x5c2   :  { %v6295_v30 = vmul.f32 -1.442695, %v5465_v60  ;;  %v5470_v8 = vadd.f32 %v5410_v14, %v9458_v55  ;;  %v5402_v17 = vadd.f32 %v5401_v59, %v9472_v38  ;;  %7556 = vpow2.f32 %v6297_v42  ;;  %v7537_v38 = vpop.eup %7536  ;;  %v9779_v60 = vld [vmem:[#allocation52_spill] sm:$0xff] }
 0x5c3   :  { %v7223_v35 = vpop.f32.mrf.mxu0  ;;  %7558 = vrcp.f32 %v5556_v52  ;;  %v9509_v19 = vpop.eup %7538  ;;  %v5557_v47 = vadd.f32 1.0, %v7537_v38 }
 0x5c4   :  { %v6300_v49 = vmul.f32 -1.442695, %v5470_v8  ;;  %v5468_v45 = vadd.f32 %v5402_v17, %v9470_v3  ;;  %v5413_v12 = vadd.f32 %v7223_v35, %v9479_v40  ;;  %7560 = vpow2.f32 %v6295_v30  ;;  %v9514_v18 = vpop.eup %7540  ;;  %v9780_v8 = vld [vmem:[#allocation56_spill] sm:$0xff] }
 0x5c5   :  { %v5404_v55 = vpop.f32.mrf.mxu0  ;;  %7562 = vpow2.f32 %v6290_v9  ;;  %v5461_v3 = vadd.f32 %v5373_v44, %v9185_v41  ;;  %v9518_v24 = vpop.eup %7542 }
 0x5c6   :  { %v6298_v43 = vmul.f32 -1.442695, %v5468_v45  ;;  %v5471_v33 = vadd.f32 %v5413_v12, %v9465_v11  ;;  %v5405_v28 = vadd.f32 %v5404_v55, %v9484_v62  ;;  %7564 = vpow2.f32 %v6300_v49  ;;  %v7182_v62 = vpop.f32.mrf.mxu1  ;;  %v9520_v5 = vpop.eup %7544  ;;  %v9781_v12 = vld [vmem:[#allocation47_spill] sm:$0xff] }
 0x5c7   :  { %v7226_v40 = vpop.f32.mrf.mxu0  ;;  %7566 = vrcp.f32 %v5559_v15  ;;  %v6291_v41 = vmul.f32 -1.442695, %v5461_v3  ;;  %v9522_v53 = vpop.eup %7546  ;;  %v9782_v3 = vld [vmem:[#allocation49_spill] sm:$0xff] }
 0x5c8   :  { %v6301_v26 = vmul.f32 -1.442695, %v5471_v33  ;;  %v5469_v57 = vadd.f32 %v5405_v28, %v9476_v51  ;;  %v5426_v29 = vadd.f32 %v7226_v40, %v9487_v13  ;;  %7568 = vpow2.f32 %v6298_v43  ;;  %v9778_v51 = vld [vmem:[#allocation53_spill] sm:$0xff]  ;;  %v5272_v22 = vpop.f32.mrf.mxu1 }
 0x5c9   :  { %v9516_v11 = vpop.f32.mrf.mxu0  ;;  %7570 = vpow2.f32 %v6293_v27  ;;  %v5357_v28 = vadd.f32 %v9468_v1, %v9433_v2 }
 0x5ca   :  { %v6299_v7 = vmul.f32 -1.442695, %v5469_v57  ;;  %7572 = vpow2.f32 %v6301_v26  ;;  %v5474_v13 = vadd.f32 %v5426_v29, %v9778_v51  ;;  %v7183_v9 = vpop.f32.mrf.mxu1  ;;  %v5354_v51 = vadd.f32 %v9461_v56, %v9431_v0  ;;  %v9786_v0 = vld [vmem:[#allocation55_spill] sm:$0xff] }
 0x5cb   :  { %v7227_v4 = vpop.f32.mrf.mxu0  ;;  %v7549_v63 = vpop.eup %7548  ;;  %7574 = vrcp.f32 %v5557_v47  ;;  %v5418_v1 = vadd.f32 %v9516_v11, %v9493_v32 }
 0x5cc   :  { %v5429_v20 = vadd.f32 %v7227_v4, %v7179_v46  ;;  %v9525_v48 = vpop.eup %7550  ;;  %v5570_v25 = vadd.f32 1.0, %v7549_v63  ;;  %7576 = vpow2.f32 %v6299_v7  ;;  %v5275_v27 = vpop.f32.mrf.mxu1  ;;  %v9783_v7 = vld [vmem:[#allocation48_spill] sm:$0xff]  ;;  %v5456_v56 = vadd.f32 %v5354_v51, %v9786_v0 }
 0x5cd   :  { %v5420_v37 = vpop.f32.mrf.mxu0  ;;  %v7553_v42 = vpop.eup %7552  ;;  %7578 = vpow2.f32 %v6291_v41 }
 0x5ce   :  { %v5421_v31 = vadd.f32 %v5420_v37, %v5259_v21  ;;  %v5475_v14 = vadd.f32 %v5429_v20, %v9779_v60  ;;  %v9528_v59 = vpop.eup %7554  ;;  %v5568_v54 = vadd.f32 1.0, %v7553_v42  ;;  %7580 = vtanh.f32 %v5474_v13  ;;  %v9784_v20 = vld [vmem:[#allocation54_spill] sm:$0xff] }
 0x5cf   :  { %v7230_v52 = vpop.f32.mrf.mxu0  ;;  %v7557_v46 = vpop.eup %7556  ;;  %7582 = vrcp.f32 %v5570_v25  ;;  %v5457_v63 = vadd.f32 %v5357_v28, %v9784_v20  ;;  %v5553_v60 = vadd.f32 1.0, %v9509_v19 }
 0x5d0   :  { %v5442_v30 = vadd.f32 %v7230_v52, %v7182_v62  ;;  %v5473_v17 = vadd.f32 %v5421_v31, %v9780_v8  ;;  %v9531_v44 = vpop.eup %7558  ;;  %7584 = vrcp.f32 %v5568_v54  ;;  %v5571_v35 = vadd.f32 1.0, %v7557_v46  ;;  %v9787_v54 = vld [vmem:[#allocation57_spill] sm:$0xff] }
 0x5d1   :  { %v5433_v36 = vpop.f32.mrf.mxu0  ;;  %v7561_v45 = vpop.eup %7560  ;;  %7586 = vtanh.f32 %v5475_v14  ;;  %v5472_v32 = vadd.f32 %v5418_v1, %v9787_v54  ;;  %v5552_v8 = vadd.f32 1.0, %v9505_v10 }
 0x5d2   :  { %v5434_v49 = vadd.f32 %v5433_v36, %v5272_v22  ;;  %v5478_v15 = vadd.f32 %v5442_v30, %v9781_v12  ;;  %v7563_v21 = vpop.eup %7562  ;;  %7588 = vrcp.f32 %v5571_v35  ;;  %v5569_v38 = vadd.f32 1.0, %v7561_v45  ;;  %v9785_v22 = vld [vmem:[#allocation50_spill] sm:$0xff] }
 0x5d3   :  { %v7231_v55 = vpop.f32.mrf.mxu0  ;;  %v7565_v33 = vpop.eup %7564  ;;  %7590 = vtanh.f32 %v5473_v17  ;;  %v6287_v30 = vmul.f32 -1.442695, %v5457_v63  ;;  %v6286_v36 = vmul.f32 -1.442695, %v5456_v56  ;;  %v5566_v12 = vadd.f32 1.0, %v9528_v59 }
 0x5d4   :  { %v5445_v43 = vadd.f32 %v7231_v55, %v7183_v9  ;;  %v5476_v40 = vadd.f32 %v5434_v49, %v9782_v3  ;;  %v9537_v57 = vpop.eup %7566  ;;  %7592 = vrcp.f32 %v5569_v38  ;;  %v5574_v29 = vadd.f32 1.0, %v7565_v33 }
 0x5d5   :  { %v5436_v26 = vpop.f32.mrf.mxu0  ;;  %v7569_v62 = vpop.eup %7568  ;;  %7594 = vtanh.f32 %v5478_v15  ;;  %v5564_v55 = vadd.f32 1.0, %v7563_v21 }
 0x5d6   :  { %v5437_v47 = vadd.f32 %v5436_v26, %v5275_v27  ;;  %v5479_v41 = vadd.f32 %v5445_v43, %v9783_v7  ;;  %v7571_v4 = vpop.eup %7570  ;;  %7596 = vrcp.f32 %v5574_v29  ;;  %v5572_v2 = vadd.f32 1.0, %v7569_v62 }
 0x5d7   :  { %v7573_v13 = vpop.eup %7572  ;;  %7598 = vtanh.f32 %v5476_v40  ;;  %v5567_v43 = vadd.f32 1.0, %v7571_v4 }
 0x5d8   :  { %v5477_v37 = vadd.f32 %v5437_v47, %v9785_v22  ;;  %v7575_v25 = vpop.eup %7574  ;;  %7600 = vrcp.f32 %v5572_v2  ;;  %v5575_v31 = vadd.f32 1.0, %v7573_v13  ;;  %v5563_v13 = vadd.f32 1.0, %v9522_v53 }
 0x5d9   :  { %v7577_v42 = vpop.eup %7576  ;;  %7602 = vtanh.f32 %v5479_v41 }
 0x5da   :  { %v7579_v14 = vpop.eup %7578  ;;  %7604 = vrcp.f32 %v5575_v31  ;;  %v5573_v52 = vadd.f32 1.0, %v7577_v42 }
 0x5db   :  { %v7581_v11 = vpop.eup %7580  ;;  %7606 = vtanh.f32 %v5477_v37  ;;  %v5565_v27 = vadd.f32 1.0, %v7579_v14 }
 0x5dc   :  { %v7583_v46 = vpop.eup %7582  ;;  %7608 = vrcp.f32 %v5573_v52  ;;  %v5642_v4 = vmul.f32 %v7581_v11, %v9514_v18 }
 0x5dd   :  { %v7585_v17 = vpop.eup %7584  ;;  %7610 = vrcp.f32 %v5553_v60  ;;  %v5626_v21 = vmul.f32 %v7583_v46, %v9265_v23 }
 0x5de   :  { %v7587_v9 = vpop.eup %7586  ;;  %7612 = vtanh.f32 %v5472_v32 }
 0x5df   :  { %v7589_v19 = vpop.eup %7588  ;;  %7614 = vpow2.f32 %v6287_v30  ;;  %v5643_v62 = vmul.f32 %v7587_v9, %v9520_v5  ;;  %v5650_v20 = vadd.f32 %v5642_v4, %v5626_v21  ;;  %v5725_v21 = vpop.permute.xlu0 %5724 }
 0x5e0   :  { %v7591_v35 = vpop.eup %7590  ;;  %7616 = vrcp.f32 %v5552_v8  ;;  %v5627_v3 = vmul.f32 %v7589_v19, %v9257_v58 }
 0x5e1   :  { %v7593_v49 = vpop.eup %7592  ;;  %7618 = vpow2.f32 %v6286_v36 }
 0x5e2   :  { %v7595_v45 = vpop.eup %7594  ;;  %7620 = vrcp.f32 %v5566_v12 }
 0x5e3   :  { %v7597_v15 = vpop.eup %7596  ;;  %v5646_v33 = vmul.f32 %v7595_v45, %v9525_v48  ;;  %7622 = vrcp.f32 %v5564_v55 }
 0x5e4   :  { %v7599_v38 = vpop.eup %7598  ;;  %v5630_v10 = vmul.f32 %v7597_v15, %v9248_v39  ;;  %7624 = vrcp.f32 %v5567_v43 }
 0x5e5   :  { %v7601_v28 = vpop.eup %7600  ;;  %v5644_v47 = vmul.f32 %v7599_v38, %v9531_v44  ;;  %7626 = vrcp.f32 %v5565_v27  ;;  %v5625_v44 = vmul.f32 %v7593_v49, %v9278_v34  ;;  %v5562_v34 = vadd.f32 1.0, %v9518_v24  ;;  %v7425_v27 = vld [vmem:[%s9598_s13 + $0x8] sm:$0xff]  }
 0x5e6   :  { %v7603_v40 = vpop.eup %7602  ;;  %v5654_v26 = vadd.f32 %v5646_v33, %v5630_v10  ;;  %v5628_v29 = vmul.f32 %v7601_v28, %v9253_v50  ;;  %v5651_v50 = vadd.f32 %v5643_v62, %v5627_v3  ;;  %v7426_v3 = vld [vmem:[%s9598_s13 + $0x10] sm:$0xff]  }
 0x5e7   :  { %v7605_v59 = vpop.eup %7604  ;;  %v5647_v58 = vmul.f32 %v7603_v40, %v9537_v57  ;;  %v5624_v57 = vmul.f32 %v7585_v17, %v9285_v16  ;;  %v7427_v40 = vld [vmem:[%s9598_s13 + $0x18] sm:$0xff]  }
 0x5e8   :  { %v7607_v39 = vpop.eup %7606  ;;  %v5652_v48 = vadd.f32 %v5644_v47, %v5628_v29  ;;  %v5631_v7 = vmul.f32 %v7605_v59, %v9261_v6  ;;  %7628 = vtanh.f32 %v5654_v26  ;;  %v7681_v26 = vmov 0.0   ;;  %v5730_v47 = vpop.permute.xlu1 %5729 }
 0x5e9   :  { %v7609_v41 = vpop.eup %7608  ;;  %v5645_v5 = vmul.f32 %v7607_v39, %v7575_v25 }
 0x5ea   :  { %v7611_v51 = vpop.eup %7610  ;;  %v5655_v2 = vadd.f32 %v5647_v58, %v5631_v7  ;;  %v5629_v23 = vmul.f32 %v7609_v41, %v9271_v61  ;;  %7630 = vtanh.f32 %v5652_v48  ;;  %v5715_v58 = vpop.permute.xlu0 %5714 }
 0x5eb   :  { %v7613_v1 = vpop.eup %7612  ;;  %v5641_v63 = vmul.f32 %v7611_v51, %v7591_v35 }
 0x5ec   :  { %v7615_v6 = vpop.eup %7614  ;;  %7632 = vtanh.f32 %v5655_v2  ;;  %v5653_v18 = vadd.f32 %v5645_v5, %v5629_v23  ;;  %v5720_v48 = vpop.permute.xlu1 %5719 }
 0x5ed   :  { %v7617_v22 = vpop.eup %7616  ;;  %7634 = vtanh.f32 %v5651_v50  ;;  %v5649_v31 = vadd.f32 %v5641_v63, %v5625_v44  ;;  %v5561_v25 = vadd.f32 1.0, %v7615_v6 }
 0x5ee   :  { %v5640_v37 = vmul.f32 %v7617_v22, %v7613_v1  ;;  %7636 = vtanh.f32 %v5653_v18  ;;  %v7619_v61 = vpop.eup %7618 }
 0x5ef   :  { %7638 = vrcp.f32 %v5563_v13  ;;  %v5560_v42 = vadd.f32 1.0, %v7619_v61  ;;  %v7621_v60 = vpop.eup %7620 }
 0x5f0   :  { %7640 = vtanh.f32 %v5650_v20  ;;  %v5648_v53 = vadd.f32 %v5640_v37, %v5624_v57  ;;  %v7623_v16 = vpop.eup %7622  ;;  %v5710_v51 = vpop.permute.xlu1 %5709 }
 0x5f1   :  { %7642 = vrcp.f32 %v5562_v34  ;;  %v7625_v14 = vpop.eup %7624  ;;  %v5705_v20 = vpop.permute.xlu0 %5704 }
 0x5f2   :  { %7644 = vtanh.f32 %v5649_v31  ;;  %v7627_v0 = vpop.eup %7626 }
 0x5f3   :  { %7646 = vrcp.f32 %v5561_v25 }
 0x5f4   :  { %7648 = vtanh.f32 %v5648_v53  ;;  %v5700_v34 = vpop.permute.xlu1 %5699 }
 0x5f5   :  { %7650 = vrcp.f32 %v5560_v42  ;;  %v7629_v24 = vpop.eup %7628  ;;  %v5695_v25 = vpop.permute.xlu0 %5694 }
 0x5f6   :  { %v5670_v32 = vmul.f32 %v7629_v24, %v7621_v60  ;;  %v5837_v24 = vld [vmem:[%s9600_s15] sm:$0x3] }
 0x5f7   :  { %v7631_v56 = vpop.eup %7630 }
 0x5f8   :  { %v5668_v17 = vmul.f32 %v7631_v56, %v7623_v16 }
 0x5f9   :  { %v7633_v52 = vpop.eup %7632  ;;  %v5846_v56 = vpop.permute.xlu0 %5845 }
 0x5fa   :  { %v7635_v54 = vpop.eup %7634  ;;  %v5671_v11 = vmul.f32 %v7633_v52, %v7625_v14 }
 0x5fb   :  { %v7637_v30 = vpop.eup %7636 }
 0x5fc   :  { %v7639_v46 = vpop.eup %7638  ;;  %v5683_v8 = vpack.c.bf16 %v5671_v11, %v5670_v32  ;;  %v5669_v9 = vmul.f32 %v7637_v30, %v7627_v0 }
 0x5fd   :  { %v7641_v36 = vpop.eup %7640  ;;  %v5667_v49 = vmul.f32 %v7639_v46, %v7635_v54 }
 0x5fe   :  { %v7643_v19 = vpop.eup %7642  ;;  %7232 = vmatprep.subr.bf16.mxu1 %v5683_v8  ;;  %v5682_v35 = vpack.c.bf16 %v5669_v9, %v5668_v17 }
 0x5ff   :  { %v7645_v45 = vpop.eup %7644  ;;  %7233 = vmatpush3.bf16.msra.mxu1 %v5683_v8  ;;  %v5666_v15 = vmul.f32 %v7643_v19, %v7641_v36 }
 0x600   :  { %v7647_v12 = vpop.eup %7646  ;;  %7234 = vmatprep.subr.bf16.mxu1 %v5682_v35 }
 0x601   :  { %v7649_v55 = vpop.eup %7648  ;;  %v5681_v38 = vpack.c.bf16 %v5667_v49, %v5666_v15  ;;  %v5665_v43 = vmul.f32 %v7647_v12, %v7645_v45 }
 0x602   :  { %v7651_v10 = vpop.eup %7650 }
 0x603   :  { %7235 = vmatpush3.bf16.msra.mxu1 %v5682_v35  ;;  %v5664_v33 = vmul.f32 %v7651_v10, %v7649_v55 }
 0x604   :  { %7236 = vmatprep.subr.bf16.mxu1 %v5681_v38 }
 0x605   :  { %v5680_v28 = vpack.c.bf16 %v5665_v43, %v5664_v33 }
 0x607   :  { %7237 = vmatpush3.bf16.msra.mxu1 %v5681_v38 }
 0x608   :  { %7238 = vmatprep.subr.bf16.mxu1 %v5680_v28 }
 0x60b   :  { %7239 = vmatpush3.bf16.msra.mxu1 %v5680_v28 }
 0x60c   :  { %7248 = vmatprep.subr.bf16.mxu1 %v7681_v26 }
 0x60e   :  { %7241 = vmatmul.mubr.msk.bf16.vlgmr.msra.gmra.mxu1 %vm3532_vm2, %v7425_v27 }
 0x60f   :  { %7244 = vmatprep.mubr.msk.bf16.mxu1 %vm3532_vm2, %v7426_v3 }
 0x616   :  { %7245 = vmatmul.mubr.msk.bf16.gmra.mxu1 %vm3532_vm2, %v7427_v40 }
 0x617   :  { %7256 = vmatprep.mubr.msk.bf16.mxu1 %vm7682_vm3, %v7681_v26 }
 0x6ce   :  { %v7242_v29 = vpop.f32.mrf.mxu1 }
 0x6cf   :  { %v5807_v18 = vadd.f32 %v7242_v29, %v5705_v20 }
 0x6d0   :  { %v5798_v59 = vpop.f32.mrf.mxu1 }
 0x6d1   :  { %v5831_v53 = vmax.f32 %v5807_v18, 0.0  ;;  %v5799_v42 = vadd.f32 %v5798_v59, %v5695_v25 }
 0x6d2   :  { %v7243_v62 = vpop.f32.mrf.mxu1 }
 0x6d3   :  { %v5810_v6 = vadd.f32 %v7243_v62, %v5710_v51  ;;  %v5829_v14 = vmax.f32 %v5799_v42, 0.0 }
 0x6d4   :  { %v5801_v39 = vpop.f32.mrf.mxu1 }
 0x6d5   :  { %v5832_v37 = vmax.f32 %v5810_v6, 0.0  ;;  %v5802_v31 = vadd.f32 %v5801_v39, %v5700_v34 }
 0x6d6   :  { %v7246_v7 = vpop.f32.mrf.mxu1 }
 0x6d7   :  { %v5823_v4 = vadd.f32 %v7246_v7, %v5725_v21  ;;  %v5839_v60 = vpack.c.bf16 %v5832_v37, %v5831_v53  ;;  %v5830_v16 = vmax.f32 %v5802_v31, 0.0 }
 0x6d8   :  { %v5814_v41 = vpop.f32.mrf.mxu1 }
 0x6d9   :  { %v5835_v23 = vmax.f32 %v5823_v4, 0.0  ;;  %v5815_v5 = vadd.f32 %v5814_v41, %v5715_v58  ;;  %v5838_v0 = vpack.c.bf16 %v5830_v16, %v5829_v14 }
 0x6da   :  { %v7247_v50 = vpop.f32.mrf.mxu1 }
 0x6db   :  { %v5826_v44 = vadd.f32 %v7247_v50, %v5730_v47  ;;  %v5833_v22 = vmax.f32 %v5815_v5, 0.0 }
 0x6dc   :  { %v5817_v2 = vpop.f32.mrf.mxu1 }
 0x6dd   :  { %v5836_v1 = vmax.f32 %v5826_v44, 0.0  ;;  %v5818_v13 = vadd.f32 %v5817_v2, %v5720_v48 }
 0x6df   :  { %v5841_v57 = vpack.c.bf16 %v5836_v1, %v5835_v23  ;;  %v5834_v63 = vmax.f32 %v5818_v13, 0.0 }
 0x6e1   :  { %7249 = vmatpush3.bf16.msra.mxu1 %v5841_v57  ;;  %v5840_v61 = vpack.c.bf16 %v5834_v63, %v5833_v22 }
 0x6e2   :  { %7250 = vmatprep.subr.bf16.mxu1 %v7681_v26 }
 0x6e5   :  { %7251 = vmatpush3.bf16.msra.mxu1 %v5840_v61 }
 0x6e6   :  { %7252 = vmatprep.subr.bf16.mxu1 %v7681_v26 }
 0x6e9   :  { %7253 = vmatpush3.bf16.msra.mxu1 %v5839_v60 }
 0x6ea   :  { %7254 = vmatprep.subr.bf16.mxu1 %v7681_v26 }
 0x6ed   :  { %7255 = vmatpush3.bf16.msra.mxu1 %v5838_v0 }
 0x6f0   :  { %7257 = vmatmul.mubr.msk.bf16.vlgmr.msra.gmra.mxu1 %vm3532_vm2, %v5837_v24 }
 0x7b0   :  { %v5885_v52 = vpop.f32.mrf.mxu1 }
 0x7b1   :  { %v5886_v54 = vadd.f32 %v5885_v52, %v5846_v56 }
 0x7b2   :  { %v7258_v32 = vpop.f32.mrf.mxu1 }
 0x7b3   :  { %5891 = vst [vmem:[#allocation4] sm:$0x7] %v5886_v54 }
 0x7b4   :  { %v5888_v11 = vpop.f32.mrf.mxu1 }
 0x7b5   :  { %7669 = shalt.err (!%p7666_p4)
}
 0x7b6   :  { %5901 = dma.vmem_to_hbm [thread:$0]  %s5899_s20, 64, %s9602_s17, [#allocation5]   ;;  %v7259_v30 = vpop.f32.mrf.mxu1 }
 0x7b7   :  { %7678 = dma.done.wait [#allocation5], 64  }
 0x7b8   :  { %7679 = vsyncadd [#allocation5], 4294967232 }
 0x7b9   :  { %5905 = vsyncpa [#allocation5], 1 }

</bundles_post_ra>
